<compile_context>
chip_gen: v5e
topology: v5e:2x2
jax: 0.10.0
libtpu: 0.0.40
codegen_flags: <defaults>
</compile_context>

<pallas_src>
import math

import jax
import jax.numpy as jnp
from jax.experimental import pallas as pl
from jax.experimental.pallas import tpu as pltpu


def _make_kernel(out_pad):
    def posterior_guide_kernel(obs_ref, w1_ref, w2_ref, w3_ref, bias_ref, out_ref):
        def bmatvec(w_ref, x, b):
            # w: (B, n_out, n_in); x: (B, n_in); b: (B, n_out)
            # Upcast so bf16-stored weights stay a pure DMA win (v5e has no
            # bf16 VPU path); f32 accumulate everywhere.
            w = w_ref[...].astype(jnp.float32)
            return jnp.sum(w * x[:, None, :], axis=-1) + b

        biases = bias_ref[...]                      # (B, 3, H) f32
        b1 = biases[:, 0, :]                        # (B, H)  (-0.5*obs folded in)
        b2 = biases[:, 1, :]                        # (B, H)
        b3 = biases[:, 2, :out_pad]                 # (B, OUT_PAD)

        x = obs_ref[...]                            # (B, DIN_PAD)
        h1 = jnp.maximum(bmatvec(w1_ref, x, b1), 0.0)     # (B, H)
        h2 = jnp.maximum(bmatvec(w2_ref, h1, b2), 0.0)    # (B, H)
        h3 = bmatvec(w3_ref, h2, b3)                      # (B, OUT_PAD)

        # Columns: [mu0, mu1, sig0, sig1, pad...]; softplus only cols 2:4.
        col = jax.lax.broadcasted_iota(jnp.int32, h3.shape, 1)
        is_sigma = (col >= 2) & (col < 4)
        out_ref[...] = jnp.where(is_sigma, jax.nn.softplus(h3), h3)

    return posterior_guide_kernel


def posterior_guide_forward(observation, params):
    """observation: (B, d_in) or (E, B, d_in) float32.

    Returns (knot0_mu, knot0_sigma, knot1_mu, knot1_sigma), each (B,) or (E, B).
    """
    single = observation.ndim == 2
    obs = observation[None] if single else observation
    E, B, d_in = obs.shape

    H = params['w1'].shape[1]
    d_in_pad = params['w1'].shape[-1]
    out_pad = params['w3'].shape[1]

    # Zero-pad the observation lane dim to the padded w1 contraction dim
    # (padded weight columns are zero, so the padding value is inert).
    obs_p = jnp.pad(obs, ((0, 0), (0, 0), (0, d_in_pad - d_in))).astype(jnp.float32)

    kernel = _make_kernel(out_pad)

    flops = 2 * E * B * (H * d_in_pad + H * H + out_pad * H)
    transcendentals = 2 * E * B * out_pad      # softplus ~ exp + log per elem
    bytes_accessed = (
        sum(int(v.size) * int(v.dtype.itemsize) for v in params.values())
        + int(obs_p.size) * 4 + E * B * out_pad * 4)
    cost = pl.CostEstimate(flops=flops, transcendentals=transcendentals,
                           bytes_accessed=bytes_accessed)

    if single:
        # Whole problem < 0.5 MiB: no grid, whole-array VMEM blocks.
        vmem = lambda: pl.BlockSpec(memory_space=pltpu.MemorySpace.VMEM)
        out = pl.pallas_call(
            kernel,
            out_shape=jax.ShapeDtypeStruct((B, out_pad), jnp.float32),
            in_specs=[vmem() for _ in range(5)],
            out_specs=vmem(),
            cost_estimate=cost,
        )(obs_p[0], params['w1'], params['w2'], params['w3'], params['biases'])
        out = out[None]
    else:
        # Amortize many evaluations in one call; "parallel" lets v7x shard
        # the E axis across its two TensorCores.
        def full(arr):
            return pl.BlockSpec(arr.shape, lambda e: (0,) * arr.ndim)

        out = pl.pallas_call(
            kernel,
            out_shape=jax.ShapeDtypeStruct((E, B, out_pad), jnp.float32),
            grid=(E,),
            in_specs=[pl.BlockSpec((None, B, d_in_pad), lambda e: (e, 0, 0)),
                      full(params['w1']), full(params['w2']),
                      full(params['w3']), full(params['biases'])],
            out_specs=pl.BlockSpec((None, B, out_pad), lambda e: (e, 0, 0)),
            compiler_params=pltpu.CompilerParams(
                dimension_semantics=("parallel",)),
            cost_estimate=cost,
        )(obs_p, params['w1'], params['w2'], params['w3'], params['biases'])

    knot0_mu, knot1_mu = out[..., 0], out[..., 1]
    knot0_sigma, knot1_sigma = out[..., 2], out[..., 3]
    if single:
        knot0_mu, knot1_mu = knot0_mu[0], knot1_mu[0]
        knot0_sigma, knot1_sigma = knot0_sigma[0], knot1_sigma[0]
    return knot0_mu, knot0_sigma, knot1_mu, knot1_sigma


def init_raw_params(key, batching, observation_dim, n_hidden=64):
    """PyTorch-layout params. TensorLinear.reset_parameters: kaiming_uniform
    (a=sqrt(5)) and bias uniform both reduce to bound = 1/sqrt(fan_in).
    w3/b3 rows follow the module's output order [mu0, sig0, mu1, sig1]."""
    B = batching
    keys = jax.random.split(key, 6)

    def w_and_b(kw, kb, out_f, in_f):
        bound = 1.0 / math.sqrt(in_f)
        w = jax.random.uniform(kw, (B, out_f, in_f), jnp.float32, -bound, bound)
        b = jax.random.uniform(kb, (B, out_f), jnp.float32, -bound, bound)
        return w, b

    w1, b1 = w_and_b(keys[0], keys[1], n_hidden, observation_dim)
    w2, b2 = w_and_b(keys[2], keys[3], n_hidden, n_hidden)
    w3, b3 = w_and_b(keys[4], keys[5], 4, n_hidden)
    return dict(w1=w1, b1=b1, w2=w2, b2=b2, w3=w3, b3=b3)


def pack_params(raw, d_in_pad=32, out_pad=8, weight_dtype=jnp.float32):
    """Kernel-ready layout: padded/merged weights + one packed bias buffer."""
    w1, b1 = raw['w1'], raw['b1']
    w2, b2 = raw['w2'], raw['b2']
    w3, b3 = raw['w3'], raw['b3']
    B, H, d_in = w1.shape

    # Fold the constant -0.5 observation shift into b1.
    b1_eff = b1 - 0.5 * jnp.sum(w1, axis=-1)

    # Pad first-layer contraction dim with zero columns (identical math).
    w1_p = jnp.pad(w1, ((0, 0), (0, 0), (0, d_in_pad - d_in)))

    # Merge heads: reorder output rows [mu0, sig0, mu1, sig1] ->
    # [mu0, mu1, sig0, sig1] and pad to out_pad rows.
    order = jnp.array([0, 2, 1, 3])
    w3_p = jnp.zeros((B, out_pad, H), jnp.float32).at[:, :4, :].set(w3[:, order, :])
    b3_p = jnp.zeros((B, out_pad), jnp.float32).at[:, :4].set(b3[:, order])

    # Pack all biases (kept f32) into a single operand.
    biases = jnp.zeros((B, 3, H), jnp.float32)
    biases = biases.at[:, 0, :].set(b1_eff)
    biases = biases.at[:, 1, :].set(b2)
    biases = biases.at[:, 2, :out_pad].set(b3_p)

    return dict(w1=w1_p.astype(weight_dtype),
                w2=w2.astype(weight_dtype),
                w3=w3_p.astype(weight_dtype),
                biases=biases)


def reference_forward(observation, raw):
    """Pure-JAX mirror of the PyTorch forward (original layout, no folding)."""
    y = observation - 0.5
    h1 = jax.nn.relu(jnp.einsum('bod,bd->bo', raw['w1'], y) + raw['b1'])
    h2 = jax.nn.relu(jnp.einsum('bod,bd->bo', raw['w2'], h1) + raw['b2'])
    final = jnp.einsum('bod,bd->bo', raw['w3'], h2) + raw['b3']
    return (final[:, 0], jax.nn.softplus(final[:, 1]),
            final[:, 2], jax.nn.softplus(final[:, 3]))


if __name__ == "__main__":
    # Shapes from the module: design_size = observation_dim = 20,
    # num_parallel (batching) = 10, n_hidden = 64, output dim = 4.
    design_size = 20
    num_parallel = 10

    key = jax.random.PRNGKey(0)
    k_obs, k_par, k_obs_e = jax.random.split(key, 3)

    observation = jax.random.normal(k_obs, (num_parallel, design_size), jnp.float32)
    design_prototype = jnp.zeros((num_parallel, design_size), jnp.float32)  # defines plate batch shape only

    raw = init_raw_params(k_par, num_parallel, design_size, n_hidden=64)
    params = pack_params(raw)

    # 1) single evaluation (grid=()), float32 weights.
    got = posterior_guide_forward(observation, params)
    jax.block_until_ready(got)
    ref = reference_forward(observation, raw)
    for g, r in zip(got, ref):
        assert jnp.allclose(g, r, atol=1e-4, rtol=1e-4)

    # 2) amortized multi-evaluation path: one pallas_call over E evaluations,
    #    grid=(E,) marked "parallel" (megacore sharding on v7x).
    E = 4
    obs_e = jax.random.normal(k_obs_e, (E, num_parallel, design_size), jnp.float32)
    got_e = posterior_guide_forward(obs_e, params)
    jax.block_until_ready(got_e)
    ref_e = jax.vmap(lambda o: reference_forward(o, raw))(obs_e)
    for g, r in zip(got_e, ref_e):
        assert jnp.allclose(g, r, atol=1e-4, rtol=1e-4)

    # 3) bf16 weight storage (halves HBM->VMEM traffic on v5e/v6e); kernel
    #    upcasts to f32, so only storage precision changes.
    params_bf16 = pack_params(raw, weight_dtype=jnp.bfloat16)
    got_bf = posterior_guide_forward(observation, params_bf16)
    jax.block_until_ready(got_bf)
    for g, r in zip(got_bf, ref):
        assert jnp.allclose(g, r, atol=3e-2, rtol=3e-2)

    print("KERNEL_OK")
</pallas_src>

<mosaic_0001>
module attributes {stable_mosaic.version = 11 : i64} {
  func.func @posterior_guide_kernel(%arg0: memref<10x32xf32, #tpu.memory_space<vmem>>, %arg1: memref<10x64x32xf32, #tpu.memory_space<vmem>>, %arg2: memref<10x64x64xf32, #tpu.memory_space<vmem>>, %arg3: memref<10x8x64xf32, #tpu.memory_space<vmem>>, %arg4: memref<10x3x64xf32, #tpu.memory_space<vmem>>, %arg5: memref<10x8xf32, #tpu.memory_space<vmem>>) attributes {dimension_semantics = [], scalar_prefetch = 0 : i64, scratch_operands = 0 : i64, tpu.core_type = #tpu.core_type<tc>} {
    %c0 = arith.constant 0 : index
    %c0_0 = arith.constant 0 : index
    %c0_1 = arith.constant 0 : index
    %0 = vector.load %arg4[%c0, %c0_0, %c0_1] : memref<10x3x64xf32, #tpu.memory_space<vmem>>, vector<10x3x64xf32>
    %1 = vector.extract_strided_slice %0 {offsets = [0, 0, 0], sizes = [10, 1, 64], strides = [1, 1, 1]} : vector<10x3x64xf32> to vector<10x1x64xf32>
    %2 = vector.shape_cast %1 : vector<10x1x64xf32> to vector<10x64xf32>
    %3 = vector.extract_strided_slice %0 {offsets = [0, 1, 0], sizes = [10, 1, 64], strides = [1, 1, 1]} : vector<10x3x64xf32> to vector<10x1x64xf32>
    %4 = vector.shape_cast %3 : vector<10x1x64xf32> to vector<10x64xf32>
    %5 = vector.extract_strided_slice %0 {offsets = [0, 2, 0], sizes = [10, 1, 8], strides = [1, 1, 1]} : vector<10x3x64xf32> to vector<10x1x8xf32>
    %6 = vector.shape_cast %5 : vector<10x1x8xf32> to vector<10x8xf32>
    %c0_2 = arith.constant 0 : index
    %c0_3 = arith.constant 0 : index
    %7 = vector.load %arg0[%c0_2, %c0_3] : memref<10x32xf32, #tpu.memory_space<vmem>>, vector<10x32xf32>
    %c0_4 = arith.constant 0 : index
    %c0_5 = arith.constant 0 : index
    %c0_6 = arith.constant 0 : index
    %8 = vector.load %arg1[%c0_4, %c0_5, %c0_6] : memref<10x64x32xf32, #tpu.memory_space<vmem>>, vector<10x64x32xf32>
    %9 = vector.shape_cast %7 : vector<10x32xf32> to vector<10x1x32xf32>
    %10 = vector.broadcast %9 : vector<10x1x32xf32> to vector<10x64x32xf32>
    %11 = arith.mulf %8, %10 : vector<10x64x32xf32>
    %cst = arith.constant dense<0.000000e+00> : vector<10x64xf32>
    %12 = vector.multi_reduction <add>, %11, %cst [2] : vector<10x64x32xf32> to vector<10x64xf32>
    %13 = arith.addf %12, %2 : vector<10x64xf32>
    %cst_7 = arith.constant 0.000000e+00 : f32
    %14 = vector.broadcast %cst_7 : f32 to vector<10x64xf32>
    %15 = arith.maximumf %13, %14 : vector<10x64xf32>
    %c0_8 = arith.constant 0 : index
    %c0_9 = arith.constant 0 : index
    %c0_10 = arith.constant 0 : index
    %16 = vector.load %arg2[%c0_8, %c0_9, %c0_10] : memref<10x64x64xf32, #tpu.memory_space<vmem>>, vector<10x64x64xf32>
    %17 = vector.shape_cast %15 : vector<10x64xf32> to vector<10x1x64xf32>
    %18 = vector.broadcast %17 : vector<10x1x64xf32> to vector<10x64x64xf32>
    %19 = arith.mulf %16, %18 : vector<10x64x64xf32>
    %cst_11 = arith.constant dense<0.000000e+00> : vector<10x64xf32>
    %20 = vector.multi_reduction <add>, %19, %cst_11 [2] : vector<10x64x64xf32> to vector<10x64xf32>
    %21 = arith.addf %20, %4 : vector<10x64xf32>
    %cst_12 = arith.constant 0.000000e+00 : f32
    %22 = vector.broadcast %cst_12 : f32 to vector<10x64xf32>
    %23 = arith.maximumf %21, %22 : vector<10x64xf32>
    %c0_13 = arith.constant 0 : index
    %c0_14 = arith.constant 0 : index
    %c0_15 = arith.constant 0 : index
    %24 = vector.load %arg3[%c0_13, %c0_14, %c0_15] : memref<10x8x64xf32, #tpu.memory_space<vmem>>, vector<10x8x64xf32>
    %25 = vector.shape_cast %23 : vector<10x64xf32> to vector<10x1x64xf32>
    %26 = vector.broadcast %25 : vector<10x1x64xf32> to vector<10x8x64xf32>
    %27 = arith.mulf %24, %26 : vector<10x8x64xf32>
    %cst_16 = arith.constant dense<0.000000e+00> : vector<10x8xf32>
    %28 = vector.multi_reduction <add>, %27, %cst_16 [2] : vector<10x8x64xf32> to vector<10x8xf32>
    %29 = arith.addf %28, %6 : vector<10x8xf32>
    %30 = tpu.iota {dimensions = array<i32: 1>} : vector<10x8xi32>
    %c2_i32 = arith.constant 2 : i32
    %31 = vector.broadcast %c2_i32 : i32 to vector<10x8xi32>
    %32 = arith.cmpi sge, %30, %31 : vector<10x8xi32>
    %c4_i32 = arith.constant 4 : i32
    %33 = vector.broadcast %c4_i32 : i32 to vector<10x8xi32>
    %34 = arith.cmpi slt, %30, %33 : vector<10x8xi32>
    %35 = arith.andi %32, %34 : vector<10x8xi1>
    %cst_17 = arith.constant 0.000000e+00 : f32
    %36 = vector.broadcast %cst_17 : f32 to vector<10x8xf32>
    %37 = arith.maximumf %29, %36 : vector<10x8xf32>
    %38 = vector.broadcast %cst_17 : f32 to vector<10x8xf32>
    %39 = arith.subf %29, %38 : vector<10x8xf32>
    %40 = arith.cmpf one, %39, %39 : vector<10x8xf32>
    %41 = vector.broadcast %cst_17 : f32 to vector<10x8xf32>
    %42 = arith.addf %29, %41 : vector<10x8xf32>
    %43 = math.absf %39 : vector<10x8xf32>
    %cst_18 = arith.constant 0.000000e+00 : f32
    %44 = vector.broadcast %cst_18 : f32 to vector<10x8xf32>
    %45 = arith.subf %44, %43 : vector<10x8xf32>
    %46 = math.exp %45 : vector<10x8xf32>
    %47 = math.log1p %46 : vector<10x8xf32>
    %48 = arith.addf %37, %47 : vector<10x8xf32>
    %49 = arith.select %40, %42, %48 : vector<10x8xi1>, vector<10x8xf32>
    %50 = arith.select %35, %49, %29 : vector<10x8xi1>, vector<10x8xf32>
    %c0_19 = arith.constant 0 : index
    %c0_20 = arith.constant 0 : index
    %51 = vector.load %arg5[%c0_19, %c0_20] : memref<10x8xf32, #tpu.memory_space<vmem>>, vector<10x8xf32>
    tpu.vector_store %arg5[%c0_19, %c0_20], %50 {strides = array<i32>} : memref<10x8xf32, #tpu.memory_space<vmem>>, vector<10x8xf32>,
    return
  }
}

</mosaic_0001>

<bundles_post_ra>
// kernel: tpu_custom_call.1
= control target key start
LH: loop header
LB: loop body
LE: loop exit
PB: predicated region body
PF: predicated region fallthrough
CT: control target
= control target key end

     0   :  { %vm222_vm0 = vcmask 261120   ;;  %vm1608_vm1 = vcmask 130112   ;;  %vm1612_vm2 = vcmask 195712   ;;  %vm1616_vm3 = vcmask 261312   ;;  %s6685_s0 = inlined_call_operand.vmem [shape: f32[10,32], index: 0, kind: input, shape index: {}]   ;;  %s6686_s1 = inlined_call_operand.vmem [shape: f32[10,64,32], index: 1, kind: input, shape index: {}]   ;;  %s6687_s4 = inlined_call_operand.vmem [shape: f32[10,3,64], index: 4, kind: input, shape index: {}]   ;;  %s6688_s2 = inlined_call_operand.vmem [shape: f32[10,64,64], index: 2, kind: input, shape index: {}]   ;;  %s6689_s3 = inlined_call_operand.vmem [shape: f32[10,8,64], index: 3, kind: input, shape index: {}]   ;;  %s6690_s5 = inlined_call_operand.vmem [shape: f32[10,8], index: 5, kind: output, shape index: {}]  }
   0x1   :  { %v4141_v0 = vld [vmem:[%s6685_s0] sm:$0xff]  ;;  %v34_v2 = vld [vmem:[%s6686_s1 + $0x10] sm:$0xff]  ;;  %v37_v8 = vld [vmem:[%s6686_s1 + $0x28] sm:$0xff]  ;;  %vm1620_vm4 = vcmask 326912   ;;  %vm1624_vm5 = vcmask 392512   ;;  %vm1628_vm6 = vcmask 458112  }
   0x2   :  { %v36_v1 = vld [vmem:[%s6686_s1 + $0x20] sm:$0xff]  ;;  %v122_v3 = vperm.slane %v4141_v0, 0  ;;  %v35_v9 = vld [vmem:[%s6686_s1 + $0x18] sm:$0xff]  ;;  %v33_v13 = vld [vmem:[%s6686_s1 + $0x8] sm:$0xff]  ;;  %v114_v16 = vrot.slane %v4141_v0, 1  ;;  %v115_v45 = vrot.slane %v4141_v0, 2 }
   0x3   :  { %v32_v4 = vld [vmem:[%s6686_s1] sm:$0xff]  ;;  %v39_v22 = vld [vmem:[%s6686_s1 + $0x38] sm:$0xff]  ;;  %v38_v24 = vld [vmem:[%s6686_s1 + $0x30] sm:$0xff]  ;;  %vm1632_vm7 = vcmask 523712   ;;  %vm1926_vm8 = vcmask 523264  }
   0x4   :  { %v146_v5 = vmul.f32 %v122_v3, %v36_v1  ;;  %v144_v6 = vmul.f32 %v122_v3, %v34_v2  ;;  %v142_v7 = vmul.f32 %v122_v3, %v32_v4  ;;  %v147_v14 = vmul.f32 %v122_v3, %v37_v8  ;;  %v40_v23 = vld [vmem:[%s6686_s1 + $0x40] sm:$0xff]  ;;  %v42_v31 = vld [vmem:[%s6686_s1 + $0x50] sm:$0xff]  ;;  %v43_v32 = vld [vmem:[%s6686_s1 + $0x58] sm:$0xff] }
   0x5   :  { %v145_v15 = vmul.f32 %v122_v3, %v35_v9  ;;  %v143_v17 = vmul.f32 %v122_v3, %v33_v13  ;;  %v123_v20 = vperm.slane %v114_v16, 0  ;;  %v149_v25 = vmul.f32 %v122_v3, %v39_v22  ;;  %v41_v33 = vld [vmem:[%s6686_s1 + $0x48] sm:$0xff]  ;;  %v46_v41 = vld [vmem:[%s6686_s1 + $0x70] sm:$0xff]  ;;  %v44_v42 = vld [vmem:[%s6686_s1 + $0x60] sm:$0xff] }
   0x6   :  { %v235_v10 = vsel %vm222_vm0, %v146_v5, 0.0  ;;  %v229_v11 = vsel %vm222_vm0, %v144_v6, 0.0  ;;  %v223_v12 = vsel %vm222_vm0, %v142_v7, 0.0  ;;  %v238_v18 = vsel %vm222_vm0, %v147_v14, 0.0  ;;  %v45_v40 = vld [vmem:[%s6686_s1 + $0x68] sm:$0xff]  ;;  %v48_v51 = vld [vmem:[%s6686_s1 + $0x80] sm:$0xff] }
   0x7   :  { %236 = vadd.xlane.f32.xlu2 %v235_v10  ;;  %230 = vadd.xlane.f32.xlu1 %v229_v11  ;;  %v232_v19 = vsel %vm222_vm0, %v145_v15, 0.0  ;;  %v226_v21 = vsel %vm222_vm0, %v143_v17, 0.0  ;;  %v150_v26 = vmul.f32 %v123_v20, %v40_v23  ;;  %v148_v27 = vmul.f32 %v122_v3, %v38_v24  ;;  %v49_v52 = vld [vmem:[%s6686_s1 + $0x88] sm:$0xff]  ;;  %v47_v53 = vld [vmem:[%s6686_s1 + $0x78] sm:$0xff]  ;;  %v52_v61 = vld [vmem:[%s6686_s1 + $0xa0] sm:$0xff] }
   0x8   :  { %224 = vadd.xlane.f32.xlu0 %v223_v12  ;;  %v244_v28 = vsel %vm222_vm0, %v149_v25, 0.0  ;;  %v152_v34 = vmul.f32 %v123_v20, %v42_v31  ;;  %v153_v35 = vmul.f32 %v123_v20, %v43_v32  ;;  %v151_v36 = vmul.f32 %v123_v20, %v41_v33  ;;  %v51_v60 = vld [vmem:[%s6686_s1 + $0x98] sm:$0xff]  ;;  %v50_v62 = vld [vmem:[%s6686_s1 + $0x90] sm:$0xff]  ;;  %v53_v8 = vld [vmem:[%s6686_s1 + $0xa8] sm:$0xff] }
   0x9   :  { %v247_v29 = vsel %vm222_vm0, %v150_v26, 0.0  ;;  %v241_v30 = vsel %vm222_vm0, %v148_v27, 0.0  ;;  %v155_v43 = vmul.f32 %v123_v20, %v45_v40  ;;  %v156_v44 = vmul.f32 %v123_v20, %v46_v41  ;;  %v54_v6 = vld [vmem:[%s6686_s1 + $0xb0] sm:$0xff]  ;;  %v55_v7 = vld [vmem:[%s6686_s1 + $0xb8] sm:$0xff]  ;;  %v57_v17 = vld [vmem:[%s6686_s1 + $0xc8] sm:$0xff] }
   0xa   :  { %v253_v37 = vsel %vm222_vm0, %v152_v34, 0.0  ;;  %v256_v38 = vsel %vm222_vm0, %v153_v35, 0.0  ;;  %v250_v39 = vsel %vm222_vm0, %v151_v36, 0.0  ;;  %v154_v46 = vmul.f32 %v123_v20, %v44_v42  ;;  %v60_v26 = vld [vmem:[%s6686_s1 + $0xe0] sm:$0xff]  ;;  %v61_v27 = vld [vmem:[%s6686_s1 + $0xe8] sm:$0xff] }
   0xb   :  { %v262_v47 = vsel %vm222_vm0, %v155_v43, 0.0  ;;  %v265_v48 = vsel %vm222_vm0, %v156_v44, 0.0  ;;  %v124_v49 = vperm.slane %v115_v45, 0  ;;  %v157_v56 = vmul.f32 %v123_v20, %v47_v53 }
   0xc   :  { %v259_v50 = vsel %vm222_vm0, %v154_v46, 0.0  ;;  %v116_v11 = vrot.slane %v4141_v0, 3  ;;  %v117_v31 = vrot.slane %v4141_v0, 4  ;;  %v66_v46 = vld [vmem:[%s6686_s1 + $0x110] sm:$0xff] }
   0xd   :  { %v158_v54 = vmul.f32 %v124_v49, %v48_v51  ;;  %v159_v55 = vmul.f32 %v124_v49, %v49_v52  ;;  %v268_v59 = vsel %vm222_vm0, %v157_v56, 0.0  ;;  %v161_v63 = vmul.f32 %v124_v49, %v51_v60  ;;  %v70_v56 = vld [vmem:[%s6686_s1 + $0x130] sm:$0xff] }
   0xe   :  { %v162_v1 = vmul.f32 %v124_v49, %v52_v61  ;;  %v160_v2 = vmul.f32 %v124_v49, %v50_v62  ;;  %v164_v9 = vmul.f32 %v124_v49, %v54_v6  ;;  %v165_v10 = vmul.f32 %v124_v49, %v55_v7 }
   0xf   :  { %239 = vadd.xlane.f32.xlu2 %v238_v18  ;;  %233 = vadd.xlane.f32.xlu1 %v232_v19  ;;  %v271_v57 = vsel %vm222_vm0, %v158_v54, 0.0  ;;  %v274_v58 = vsel %vm222_vm0, %v159_v55, 0.0  ;;  %v280_v3 = vsel %vm222_vm0, %v161_v63, 0.0  ;;  %v163_v12 = vmul.f32 %v124_v49, %v53_v8  ;;  %v58_v18 = vld [vmem:[%s6686_s1 + $0xd0] sm:$0xff]  ;;  %v56_v19 = vld [vmem:[%s6686_s1 + $0xc0] sm:$0xff]  ;;  %v69_v55 = vld [vmem:[%s6686_s1 + $0x128] sm:$0xff] }
  0x10   :  { %227 = vadd.xlane.f32.xlu0 %v226_v21  ;;  %v283_v4 = vsel %vm222_vm0, %v162_v1, 0.0  ;;  %v277_v5 = vsel %vm222_vm0, %v160_v2, 0.0  ;;  %v289_v13 = vsel %vm222_vm0, %v164_v9, 0.0  ;;  %v292_v14 = vsel %vm222_vm0, %v165_v10, 0.0 }
  0x11   :  { %v125_v15 = vperm.slane %v116_v11, 0  ;;  %v286_v16 = vsel %vm222_vm0, %v163_v12, 0.0  ;;  %v126_v35 = vperm.slane %v117_v31, 0  ;;  %v118_v60 = vrot.slane %v4141_v0, 5  ;;  %v75_v12 = vld [vmem:[%s6686_s1 + $0x158] sm:$0xff] }
  0x13   :  { %v167_v20 = vmul.f32 %v125_v15, %v57_v17  ;;  %v168_v21 = vmul.f32 %v125_v15, %v58_v18  ;;  %v166_v22 = vmul.f32 %v125_v15, %v56_v19  ;;  %v176_v49 = vmul.f32 %v126_v35, %v66_v46  ;;  %v83_v46 = vld [vmem:[%s6686_s1 + $0x198] sm:$0xff] }
  0x14   :  { %v127_v1 = vperm.slane %v118_v60, 0 }
  0x15   :  { %v298_v23 = vsel %vm222_vm0, %v167_v20, 0.0  ;;  %v301_v24 = vsel %vm222_vm0, %v168_v21, 0.0  ;;  %v295_v25 = vsel %vm222_vm0, %v166_v22, 0.0  ;;  %v325_v52 = vsel %vm222_vm0, %v176_v49, 0.0  ;;  %v78_v21 = vld [vmem:[%s6686_s1 + $0x170] sm:$0xff]  ;;  %v79_v22 = vld [vmem:[%s6686_s1 + $0x178] sm:$0xff] }
  0x16   :  { %v120_v49 = vrot.slane %v4141_v0, 7 }
  0x17   :  { %245 = vadd.xlane.f32.xlu1 %v244_v28  ;;  %248 = vadd.xlane.f32.xlu2 %v247_v29  ;;  %v59_v28 = vld [vmem:[%s6686_s1 + $0xd8] sm:$0xff]  ;;  %v170_v29 = vmul.f32 %v125_v15, %v60_v26  ;;  %v119_v26 = vrot.slane %v4141_v0, 6  ;;  %v86_v0 = vld [vmem:[%s6686_s1 + $0x1b0] sm:$0xff] }
  0x18   :  { %242 = vadd.xlane.f32.xlu0 %v241_v30  ;;  %v171_v30 = vmul.f32 %v125_v15, %v61_v27  ;;  %v169_v32 = vmul.f32 %v125_v15, %v59_v28 }
  0x19   :  { %v307_v33 = vsel %vm222_vm0, %v170_v29, 0.0  ;;  %v128_v31 = vperm.slane %v119_v26, 0 }
  0x1a   :  { %v310_v34 = vsel %vm222_vm0, %v171_v30, 0.0  ;;  %v304_v36 = vsel %vm222_vm0, %v169_v32, 0.0 }
  0x1f   :  { %254 = vadd.xlane.f32.xlu1 %v253_v37  ;;  %257 = vadd.xlane.f32.xlu2 %v256_v38  ;;  %v63_v37 = vld [vmem:[%s6686_s1 + $0xf8] sm:$0xff]  ;;  %v64_v38 = vld [vmem:[%s6686_s1 + $0x100] sm:$0xff] }
  0x20   :  { %251 = vadd.xlane.f32.xlu0 %v250_v39  ;;  %v62_v39 = vld [vmem:[%s6686_s1 + $0xf0] sm:$0xff]  ;;  %v173_v40 = vmul.f32 %v125_v15, %v63_v37  ;;  %v174_v41 = vmul.f32 %v126_v35, %v64_v38 }
  0x21   :  { %v172_v42 = vmul.f32 %v125_v15, %v62_v39  ;;  %v185_v15 = vmul.f32 %v127_v1, %v75_v12 }
  0x22   :  { %v316_v43 = vsel %vm222_vm0, %v173_v40, 0.0  ;;  %v319_v44 = vsel %vm222_vm0, %v174_v41, 0.0 }
  0x23   :  { %v313_v45 = vsel %vm222_vm0, %v172_v42, 0.0  ;;  %v352_v18 = vsel %vm222_vm0, %v185_v15, 0.0  ;;  %v84_v42 = vld [vmem:[%s6686_s1 + $0x1a0] sm:$0xff]  ;;  %v93_v15 = vld [vmem:[%s6686_s1 + $0x1e8] sm:$0xff] }
  0x27   :  { %263 = vadd.xlane.f32.xlu1 %v262_v47  ;;  %266 = vadd.xlane.f32.xlu2 %v265_v48  ;;  %v67_v47 = vld [vmem:[%s6686_s1 + $0x118] sm:$0xff]  ;;  %v65_v48 = vld [vmem:[%s6686_s1 + $0x108] sm:$0xff] }
  0x28   :  { %260 = vadd.xlane.f32.xlu0 %v259_v50  ;;  %v177_v50 = vmul.f32 %v126_v35, %v67_v47  ;;  %v175_v51 = vmul.f32 %v126_v35, %v65_v48  ;;  %v194_v47 = vmul.f32 %v128_v31, %v84_v42 }
  0x2a   :  { %v328_v53 = vsel %vm222_vm0, %v177_v50, 0.0  ;;  %v322_v54 = vsel %vm222_vm0, %v175_v51, 0.0  ;;  %v193_v50 = vmul.f32 %v128_v31, %v83_v46  ;;  %v98_v46 = vld [vmem:[%s6686_s1 + $0x210] sm:$0xff] }
  0x2f   :  { %272 = vadd.xlane.f32.xlu1 %v271_v57  ;;  %275 = vadd.xlane.f32.xlu2 %v274_v58  ;;  %v68_v57 = vld [vmem:[%s6686_s1 + $0x120] sm:$0xff]  ;;  %v179_v58 = vmul.f32 %v126_v35, %v69_v55  ;;  %v376_v55 = vsel %vm222_vm0, %v193_v50, 0.0 }
  0x30   :  { %269 = vadd.xlane.f32.xlu0 %v268_v59  ;;  %v180_v59 = vmul.f32 %v126_v35, %v70_v56  ;;  %v178_v61 = vmul.f32 %v126_v35, %v68_v57  ;;  %v87_v56 = vld [vmem:[%s6686_s1 + $0x1b8] sm:$0xff]  ;;  %v88_v57 = vld [vmem:[%s6686_s1 + $0x1c0] sm:$0xff] }
  0x31   :  { %v334_v62 = vsel %vm222_vm0, %v179_v58, 0.0  ;;  %v197_v60 = vmul.f32 %v128_v31, %v87_v56  ;;  %v103_v56 = vld [vmem:[%s6686_s1 + $0x238] sm:$0xff] }
  0x32   :  { %v337_v63 = vsel %vm222_vm0, %v180_v59, 0.0  ;;  %v331_v2 = vsel %vm222_vm0, %v178_v61, 0.0 }
  0x37   :  { %281 = vadd.xlane.f32.xlu1 %v280_v3  ;;  %284 = vadd.xlane.f32.xlu2 %v283_v4  ;;  %v72_v3 = vld [vmem:[%s6686_s1 + $0x140] sm:$0xff]  ;;  %v73_v4 = vld [vmem:[%s6686_s1 + $0x148] sm:$0xff] }
  0x38   :  { %278 = vadd.xlane.f32.xlu0 %v277_v5  ;;  %v71_v5 = vld [vmem:[%s6686_s1 + $0x138] sm:$0xff]  ;;  %v182_v6 = vmul.f32 %v127_v1, %v72_v3  ;;  %v183_v7 = vmul.f32 %v127_v1, %v73_v4  ;;  %v90_v4 = vld [vmem:[%s6686_s1 + $0x1d0] sm:$0xff] }
  0x39   :  { %v181_v8 = vmul.f32 %v126_v35, %v71_v5  ;;  %v80_v35 = vld [vmem:[%s6686_s1 + $0x180] sm:$0xff]  ;;  %v91_v5 = vld [vmem:[%s6686_s1 + $0x1d8] sm:$0xff] }
  0x3a   :  { %v343_v9 = vsel %vm222_vm0, %v182_v6, 0.0  ;;  %v346_v10 = vsel %vm222_vm0, %v183_v7, 0.0  ;;  %v190_v38 = vmul.f32 %v128_v31, %v80_v35  ;;  %v89_v6 = vld [vmem:[%s6686_s1 + $0x1c8] sm:$0xff] }
  0x3b   :  { %v340_v11 = vsel %vm222_vm0, %v181_v8, 0.0 }
  0x3c   :  { %v367_v41 = vsel %vm222_vm0, %v190_v38, 0.0 }
  0x3f   :  { %290 = vadd.xlane.f32.xlu1 %v289_v13  ;;  %293 = vadd.xlane.f32.xlu2 %v292_v14  ;;  %v76_v13 = vld [vmem:[%s6686_s1 + $0x160] sm:$0xff]  ;;  %v74_v14 = vld [vmem:[%s6686_s1 + $0x150] sm:$0xff] }
  0x40   :  { %287 = vadd.xlane.f32.xlu0 %v286_v16  ;;  %v186_v16 = vmul.f32 %v127_v1, %v76_v13  ;;  %v184_v17 = vmul.f32 %v127_v1, %v74_v14 }
  0x42   :  { %v355_v19 = vsel %vm222_vm0, %v186_v16, 0.0  ;;  %v349_v20 = vsel %vm222_vm0, %v184_v17, 0.0  ;;  %v94_v16 = vld [vmem:[%s6686_s1 + $0x1f0] sm:$0xff] }
  0x47   :  { %299 = vadd.xlane.f32.xlu1 %v298_v23  ;;  %302 = vadd.xlane.f32.xlu2 %v301_v24  ;;  %v77_v23 = vld [vmem:[%s6686_s1 + $0x168] sm:$0xff]  ;;  %v188_v24 = vmul.f32 %v127_v1, %v78_v21 }
  0x48   :  { %296 = vadd.xlane.f32.xlu0 %v295_v25  ;;  %v189_v25 = vmul.f32 %v127_v1, %v79_v22  ;;  %v187_v27 = vmul.f32 %v127_v1, %v77_v23  ;;  %v388_v1 = vsel %vm222_vm0, %v197_v60, 0.0  ;;  %v31_v22 = vld [vmem:[%s6685_s0 + $0x8] sm:$0x3] }
  0x49   :  { %v361_v29 = vsel %vm222_vm0, %v188_v24, 0.0 }
  0x4a   :  { %v364_v30 = vsel %vm222_vm0, %v189_v25, 0.0  ;;  %v358_v32 = vsel %vm222_vm0, %v187_v27, 0.0  ;;  %v130_v27 = vperm.slane %v31_v22, 0 }
  0x4f   :  { %308 = vadd.xlane.f32.xlu1 %v307_v33  ;;  %311 = vadd.xlane.f32.xlu2 %v310_v34  ;;  %v81_v33 = vld [vmem:[%s6686_s1 + $0x188] sm:$0xff]  ;;  %v82_v34 = vld [vmem:[%s6686_s1 + $0x190] sm:$0xff] }
  0x50   :  { %305 = vadd.xlane.f32.xlu0 %v304_v36  ;;  %v191_v36 = vmul.f32 %v128_v31, %v81_v33  ;;  %v192_v37 = vmul.f32 %v128_v31, %v82_v34 }
  0x52   :  { %v370_v39 = vsel %vm222_vm0, %v191_v36, 0.0  ;;  %v373_v40 = vsel %vm222_vm0, %v192_v37, 0.0 }
  0x57   :  { %317 = vadd.xlane.f32.xlu1 %v316_v43  ;;  %320 = vadd.xlane.f32.xlu2 %v319_v44  ;;  %v85_v43 = vld [vmem:[%s6686_s1 + $0x1a8] sm:$0xff] }
  0x58   :  { %314 = vadd.xlane.f32.xlu0 %v313_v45  ;;  %v195_v48 = vmul.f32 %v128_v31, %v85_v43 }
  0x5f   :  { %326 = vadd.xlane.f32.xlu1 %v325_v52  ;;  %329 = vadd.xlane.f32.xlu2 %v328_v53  ;;  %v379_v52 = vsel %vm222_vm0, %v194_v47, 0.0  ;;  %v382_v53 = vsel %vm222_vm0, %v195_v48, 0.0 }
  0x60   :  { %323 = vadd.xlane.f32.xlu0 %v322_v54  ;;  %v129_v54 = vperm.slane %v120_v49, 0  ;;  %v208_v49 = vmul.f32 %v130_v27, %v98_v46  ;;  %v111_v46 = vld [vmem:[%s6686_s1 + $0x278] sm:$0xff] }
  0x62   :  { %v198_v61 = vmul.f32 %v129_v54, %v88_v57  ;;  %v200_v7 = vmul.f32 %v129_v54, %v90_v4  ;;  %v201_v8 = vmul.f32 %v129_v54, %v91_v5  ;;  %v101_v57 = vld [vmem:[%s6686_s1 + $0x228] sm:$0xff] }
  0x64   :  { %v397_v12 = vsel %vm222_vm0, %v200_v7, 0.0  ;;  %v400_v13 = vsel %vm222_vm0, %v201_v8, 0.0 }
  0x67   :  { %335 = vadd.xlane.f32.xlu1 %v334_v62  ;;  %338 = vadd.xlane.f32.xlu2 %v337_v63  ;;  %v196_v62 = vmul.f32 %v128_v31, %v86_v0  ;;  %v97_v31 = vld [vmem:[%s6686_s1 + $0x208] sm:$0xff] }
  0x68   :  { %332 = vadd.xlane.f32.xlu0 %v331_v2  ;;  %v391_v2 = vsel %vm222_vm0, %v198_v61, 0.0  ;;  %v207_v35 = vmul.f32 %v130_v27, %v97_v31  ;;  %v107_v31 = vld [vmem:[%s6686_s1 + $0x258] sm:$0xff] }
  0x69   :  { %v385_v3 = vsel %vm222_vm0, %v196_v62, 0.0  ;;  %v213_v62 = vmul.f32 %v130_v27, %v103_v56 }
  0x6a   :  { %v418_v38 = vsel %vm222_vm0, %v207_v35, 0.0 }
  0x6f   :  { %344 = vadd.xlane.f32.xlu1 %v343_v9  ;;  %347 = vadd.xlane.f32.xlu2 %v346_v10  ;;  %v199_v9 = vmul.f32 %v129_v54, %v89_v6  ;;  %v436_v6 = vsel %vm222_vm0, %v213_v62, 0.0 }
  0x70   :  { %341 = vadd.xlane.f32.xlu0 %v340_v11 }
  0x71   :  { %v394_v14 = vsel %vm222_vm0, %v199_v9, 0.0 }
  0x77   :  { %353 = vadd.xlane.f32.xlu1 %v352_v18  ;;  %356 = vadd.xlane.f32.xlu2 %v355_v19  ;;  %v92_v18 = vld [vmem:[%s6686_s1 + $0x1e0] sm:$0xff]  ;;  %v203_v19 = vmul.f32 %v129_v54, %v93_v15 }
  0x78   :  { %350 = vadd.xlane.f32.xlu0 %v349_v20  ;;  %v204_v20 = vmul.f32 %v129_v54, %v94_v16  ;;  %v202_v21 = vmul.f32 %v129_v54, %v92_v18 }
  0x79   :  { %v406_v25 = vsel %vm222_vm0, %v203_v19, 0.0 }
  0x7a   :  { %v4339_v28 = vpop.xlane.xlu2 %236  ;;  %v4362_v44 = vpop.xlane.xlu1 %230  ;;  %v409_v26 = vsel %vm222_vm0, %v204_v20, 0.0 }
  0x7b   :  { %v4370_v51 = vpop.xlane.xlu0 %224 }
  0x7f   :  { %362 = vadd.xlane.f32.xlu1 %v361_v29  ;;  %365 = vadd.xlane.f32.xlu2 %v364_v30  ;;  %v403_v29 = vsel %vm222_vm0, %v202_v21, 0.0  ;;  %v96_v30 = vld [vmem:[%s6686_s1 + $0x200] sm:$0xff] }
  0x80   :  { %359 = vadd.xlane.f32.xlu0 %v358_v32  ;;  %v95_v32 = vld [vmem:[%s6686_s1 + $0x1f8] sm:$0xff]  ;;  %v206_v34 = vmul.f32 %v130_v27, %v96_v30 }
  0x81   :  { %v205_v36 = vmul.f32 %v129_v54, %v95_v32  ;;  %v421_v54 = vsel %vm222_vm0, %v208_v49, 0.0 }
  0x82   :  { %v4364_v45 = vpop.xlane.xlu2 %239  ;;  %v4384_v58 = vpop.xlane.xlu1 %233  ;;  %v415_v37 = vsel %vm222_vm0, %v206_v34, 0.0 }
  0x83   :  { %v4388_v63 = vpop.xlane.xlu0 %227 }
  0x87   :  { %371 = vadd.xlane.f32.xlu1 %v370_v39  ;;  %374 = vadd.xlane.f32.xlu2 %v373_v40  ;;  %v412_v39 = vsel %vm222_vm0, %v205_v36, 0.0  ;;  %v99_v40 = vld [vmem:[%s6686_s1 + $0x218] sm:$0xff] }
  0x88   :  { %368 = vadd.xlane.f32.xlu0 %v367_v41  ;;  %v100_v41 = vld [vmem:[%s6686_s1 + $0x220] sm:$0xff]  ;;  %v209_v47 = vmul.f32 %v130_v27, %v99_v40 }
  0x89   :  { %v210_v48 = vmul.f32 %v130_v27, %v100_v41 }
  0x8a   :  { %v4386_v59 = vpop.xlane.xlu2 %248  ;;  %v4402_v10 = vpop.xlane.xlu1 %245 }
  0x8b   :  { %v4415_v17 = vpop.xlane.xlu0 %242 }
  0x8f   :  { %380 = vadd.xlane.f32.xlu1 %v379_v52  ;;  %383 = vadd.xlane.f32.xlu2 %v382_v53  ;;  %v424_v52 = vsel %vm222_vm0, %v209_v47, 0.0  ;;  %v427_v53 = vsel %vm222_vm0, %v210_v48, 0.0  ;;  %v110_v47 = vld [vmem:[%s6686_s1 + $0x270] sm:$0xff] }
  0x90   :  { %377 = vadd.xlane.f32.xlu0 %v376_v55  ;;  %v102_v55 = vld [vmem:[%s6686_s1 + $0x230] sm:$0xff] }
  0x91   :  { %v212_v61 = vmul.f32 %v130_v27, %v102_v55 }
  0x92   :  { %v4404_v11 = vpop.xlane.xlu2 %257  ;;  %v4423_v23 = vpop.xlane.xlu1 %254 }
  0x93   :  { %v4439_v33 = vpop.xlane.xlu0 %251  ;;  %v433_v5 = vsel %vm222_vm0, %v212_v61, 0.0 }
  0x97   :  { %389 = vadd.xlane.f32.xlu1 %v388_v1  ;;  %392 = vadd.xlane.f32.xlu2 %v391_v2  ;;  %v121_v1 = vrot.slane %v31_v22, 1  ;;  %v211_v2 = vmul.f32 %v130_v27, %v101_v57  ;;  %v108_v27 = vld [vmem:[%s6686_s1 + $0x260] sm:$0xff] }
  0x98   :  { %386 = vadd.xlane.f32.xlu0 %v385_v3  ;;  %v6691_v3 = vlaneseq }
  0x99   :  { %v131_v7 = vperm.slane %v121_v1, 0  ;;  %v430_v9 = vsel %vm222_vm0, %v211_v2, 0.0  ;;  %v20_v1 = vld [vmem:[%s6687_s4] sm:$0x7] }
  0x9a   :  { %v4425_v24 = vpop.xlane.xlu2 %266  ;;  %v4450_v42 = vpop.xlane.xlu1 %263  ;;  %v4480_v8 = vshrl.u32 %v6691_v3, 7  ;;  %v4549_v2 = vperm.slane %v20_v1, 0 }
  0x9b   :  { %v4457_v50 = vpop.xlane.xlu0 %260  ;;  %v218_v34 = vmul.f32 %v131_v7, %v108_v27  ;;  %v217_v36 = vmul.f32 %v131_v7, %v107_v31  ;;  %v221_v49 = vmul.f32 %v131_v7, %v111_v46  ;;  %v26_v27 = vld [vmem:[%s6687_s4 + $0x18] sm:$0x7] }
  0x9c   :  { %6712 = vst [vmem:[#allocation2_spill] sm:$0xff] %v4457_v50  ;;  %3891 = vset.pattern.permute.xlu2 %v4480_v8  ;;  %v4498_v21 = vadd.s32 24, %v4480_v8  ;;  %v4516_v32 = vadd.s32 16, %v4480_v8 }
  0x9d   :  { %v448_v41 = vsel %vm222_vm0, %v217_v36, 0.0  ;;  %v4601_v36 = vadd.s32 56, %v4480_v8 }
  0x9e   :  { %3926 = vset.pattern.permute.xlu0 %v4498_v21  ;;  %6716 = vst [vmem:[#allocation6_spill] sm:$0xff] %v4516_v32  ;;  %3892 = vset.pattern.permute.xlu1 %v4516_v32 }
  0x9f   :  { %398 = vadd.xlane.f32.xlu1 %v397_v12  ;;  %401 = vadd.xlane.f32.xlu2 %v400_v13  ;;  %v105_v12 = vld [vmem:[%s6686_s1 + $0x248] sm:$0xff]  ;;  %v106_v13 = vld [vmem:[%s6686_s1 + $0x250] sm:$0xff] }
  0xa0   :  { %395 = vadd.xlane.f32.xlu0 %v394_v14  ;;  %v104_v14 = vld [vmem:[%s6686_s1 + $0x240] sm:$0xff]  ;;  %v215_v15 = vmul.f32 %v131_v7, %v105_v12  ;;  %v216_v16 = vmul.f32 %v131_v7, %v106_v13 }
  0xa1   :  { %v214_v18 = vmul.f32 %v131_v7, %v104_v14 }
  0xa2   :  { %v4452_v43 = vpop.xlane.xlu2 %275  ;;  %v4471_v0 = vpop.xlane.xlu1 %272  ;;  %v442_v22 = vsel %vm222_vm0, %v215_v15, 0.0 }
  0xa3   :  { %v4475_v4 = vpop.xlane.xlu0 %269 }
  0xa4   :  { %6713 = vst [vmem:[#allocation3_spill] sm:$0xff] %v4475_v4 }
  0xa7   :  { %407 = vadd.xlane.f32.xlu1 %v406_v25  ;;  %410 = vadd.xlane.f32.xlu2 %v409_v26  ;;  %v445_v25 = vsel %vm222_vm0, %v216_v16, 0.0  ;;  %v439_v26 = vsel %vm222_vm0, %v214_v18, 0.0  ;;  %v4574_v16 = vadd.s32 40, %v4480_v8  ;;  %v21_v18 = vld [vmem:[%s6687_s4 + $0x4] sm:$0x7] }
  0xa8   :  { %404 = vadd.xlane.f32.xlu0 %v403_v29  ;;  %v109_v29 = vld [vmem:[%s6686_s1 + $0x268] sm:$0xff] }
  0xa9   :  { %v219_v35 = vmul.f32 %v131_v7, %v109_v29 }
  0xaa   :  { %v4473_v60 = vpop.xlane.xlu2 %284  ;;  %v4493_v19 = vpop.xlane.xlu1 %281 }
  0xab   :  { %6714 = vst [vmem:[#allocation4_spill] sm:$0xff] %v4493_v19  ;;  %v4510_v30 = vpop.xlane.xlu0 %278  ;;  %v454_v40 = vsel %vm222_vm0, %v219_v35, 0.0 }
  0xac   :  { %6715 = vst [vmem:[#allocation5_spill] sm:$0xff] %v4510_v30 }
  0xaf   :  { %416 = vadd.xlane.f32.xlu1 %v415_v37  ;;  %419 = vadd.xlane.f32.xlu2 %v418_v38 }
  0xb0   :  { %413 = vadd.xlane.f32.xlu0 %v412_v39  ;;  %v451_v39 = vsel %vm222_vm0, %v218_v34, 0.0  ;;  %v4595_v34 = vperm.slane %v26_v27, 0 }
  0xb2   :  { %v4495_v20 = vpop.xlane.xlu2 %293  ;;  %v4519_v37 = vpop.xlane.xlu1 %290 }
  0xb3   :  { %6717 = vst [vmem:[#allocation7_spill] sm:$0xff] %v4519_v37  ;;  %v4532_v48 = vpop.xlane.xlu0 %287  ;;  %v6692_v37 = vmov 0  }
  0xb4   :  { %6718 = vst [vmem:[#allocation8_spill] sm:$0xff] %v4532_v48 }
  0xb7   :  { %425 = vadd.xlane.f32.xlu1 %v424_v52  ;;  %428 = vadd.xlane.f32.xlu2 %v427_v53  ;;  %v220_v52 = vmul.f32 %v131_v7, %v110_v47  ;;  %v460_v53 = vsel %vm222_vm0, %v221_v49, 0.0 }
  0xb8   :  { %422 = vadd.xlane.f32.xlu0 %v421_v54 }
  0xb9   :  { %v457_v54 = vsel %vm222_vm0, %v220_v52, 0.0 }
  0xba   :  { %v4521_v38 = vpop.xlane.xlu2 %302  ;;  %v4536_v55 = vpop.xlane.xlu1 %299 }
  0xbb   :  { %6719 = vst [vmem:[#allocation9_spill] sm:$0xff] %v4536_v55  ;;  %v4540_v57 = vpop.xlane.xlu0 %296 }
  0xbc   :  { %6720 = vst [vmem:[#allocation10_spill] sm:$0xff] %v4540_v57 }
  0xbf   :  { %434 = vadd.xlane.f32.xlu1 %v433_v5  ;;  %437 = vadd.xlane.f32.xlu2 %v436_v6  ;;  %v25_v6 = vld [vmem:[%s6687_s4 + $0x14] sm:$0x7] }
  0xc0   :  { %431 = vadd.xlane.f32.xlu0 %v430_v9  ;;  %v4557_v7 = vperm.slane %v25_v6, 0 }
  0xc2   :  { %v4538_v56 = vpop.xlane.xlu2 %311  ;;  %v4542_v61 = vpop.xlane.xlu1 %308 }
  0xc3   :  { %6721 = vst [vmem:[#allocation11_spill] sm:$0xff] %v4542_v61  ;;  %v4551_v5 = vpop.xlane.xlu0 %305 }
  0xc4   :  { %6722 = vst [vmem:[#allocation12_spill] sm:$0xff] %v4551_v5 }
  0xc7   :  { %443 = vadd.xlane.f32.xlu1 %v442_v22  ;;  %446 = vadd.xlane.f32.xlu2 %v445_v25  ;;  %v522_v25 = vperm.slane %v21_v18, 0  ;;  %v22_v18 = vld [vmem:[%s6687_s4 + $0x8] sm:$0x7] }
  0xc8   :  { %440 = vadd.xlane.f32.xlu0 %v439_v26  ;;  %v4584_v26 = vadd.s32 32, %v4480_v8 }
  0xca   :  { %v4544_v62 = vpop.xlane.xlu2 %320  ;;  %v4559_v9 = vpop.xlane.xlu1 %317 }
  0xcb   :  { %6723 = vst [vmem:[#allocation13_spill] sm:$0xff] %v4559_v9  ;;  %v4564_v13 = vpop.xlane.xlu0 %314 }
  0xcc   :  { %6724 = vst [vmem:[#allocation14_spill] sm:$0xff] %v4564_v13 }
  0xcf   :  { %452 = vadd.xlane.f32.xlu1 %v451_v39  ;;  %455 = vadd.xlane.f32.xlu2 %v454_v40 }
  0xd0   :  { %449 = vadd.xlane.f32.xlu0 %v448_v41  ;;  %v4610_v41 = vadd.s32 48, %v4480_v8 }
  0xd2   :  { %v4561_v12 = vpop.xlane.xlu2 %329  ;;  %v4568_v14 = vpop.xlane.xlu1 %326 }
  0xd3   :  { %6725 = vst [vmem:[#allocation15_spill] sm:$0xff] %v4568_v14  ;;  %v4580_v22 = vpop.xlane.xlu0 %323 }
  0xd4   :  { %6726 = vst [vmem:[#allocation16_spill] sm:$0xff] %v4580_v22 }
  0xd7   :  { %461 = vadd.xlane.f32.xlu1 %v460_v53  ;;  %v4626_v53 = vadd.s32 8, %v4480_v8 }
  0xd8   :  { %458 = vadd.xlane.f32.xlu0 %v457_v54 }
  0xda   :  { %v4570_v15 = vpop.xlane.xlu2 %338  ;;  %v4589_v29 = vpop.xlane.xlu1 %335 }
  0xdb   :  { %6727 = vst [vmem:[#allocation17_spill] sm:$0xff] %v4589_v29  ;;  %v4597_v35 = vpop.xlane.xlu0 %332 }
  0xdc   :  { %6728 = vst [vmem:[#allocation18_spill] sm:$0xff] %v4597_v35 }
  0xe2   :  { %v4591_v31 = vpop.xlane.xlu2 %347  ;;  %v4604_v39 = vpop.xlane.xlu1 %344 }
  0xe3   :  { %6729 = vst [vmem:[#allocation19_spill] sm:$0xff] %v4604_v39  ;;  %v4612_v46 = vpop.xlane.xlu0 %341 }
  0xe4   :  { %6730 = vst [vmem:[#allocation20_spill] sm:$0xff] %v4612_v46 }
  0xe7   :  { %478 = vperm.xlu2 %3891, %v4549_v2  }
  0xea   :  { %v4606_v40 = vpop.xlane.xlu2 %356  ;;  %v4617_v47 = vpop.xlane.xlu1 %353 }
  0xeb   :  { %6731 = vst [vmem:[#allocation21_spill] sm:$0xff] %v4617_v47  ;;  %v4621_v52 = vpop.xlane.xlu0 %350 }
  0xec   :  { %741 = vperm.xlu0 %3926, %v4557_v7   ;;  %6732 = vst [vmem:[#allocation22_spill] sm:$0xff] %v4621_v52  ;;  %v571_v52 = vperm.slane %v22_v18, 0 }
  0xef   :  { %3893 = vset.pattern.permute.xlu2 %v4498_v21 }
  0xf0   :  { %490 = vperm.xlu1 %3892, %v4549_v2  }
  0xf2   :  { %v4619_v49 = vpop.xlane.xlu2 %365  ;;  %v4628_v54 = vpop.xlane.xlu1 %362 }
  0xf3   :  { %6733 = vst [vmem:[#allocation23_spill] sm:$0xff] %v4628_v54  ;;  %v4634_v6 = vpop.xlane.xlu0 %359 }
  0xf4   :  { %3927 = vset.pattern.permute.xlu0 %v4480_v8  ;;  %6734 = vst [vmem:[#allocation24_spill] sm:$0xff] %v4634_v6  ;;  %v27_v6 = vld [vmem:[%s6687_s4 + $0x1c] sm:$0x7] }
  0xf7   :  { %496 = vperm.xlu2 %3893, %v4549_v2  }
  0xf8   :  { %3895 = vset.pattern.permute.xlu1 %v4574_v16 }
  0xfa   :  { %v4630_v1 = vpop.xlane.xlu2 %374  ;;  %v4640_v27 = vpop.xlane.xlu1 %371 }
  0xfb   :  { %6735 = vst [vmem:[#allocation25_spill] sm:$0xff] %v4640_v27  ;;  %v4645_v54 = vpop.xlane.xlu0 %368  ;;  %v4655_v27 = vperm.slane %v27_v6, 0 }
  0xfc   :  { %527 = vperm.xlu0 %3927, %v522_v25   ;;  %6736 = vst [vmem:[#allocation26_spill] sm:$0xff] %v4645_v54 }
  0xff   :  { %3894 = vset.pattern.permute.xlu2 %v4584_v26 }
 0x100   :  { %508 = vperm.xlu1 %3895, %v4549_v2  }
 0x102   :  { %v4642_v3 = vpop.xlane.xlu2 %383  ;;  %v4651_v46 = vpop.xlane.xlu1 %380 }
 0x103   :  { %6737 = vst [vmem:[#allocation27_spill] sm:$0xff] %v4651_v46  ;;  %v4657_v35 = vpop.xlane.xlu0 %377 }
 0x104   :  { %772 = vperm.xlu0 %3927, %v4595_v34   ;;  %6738 = vst [vmem:[#allocation28_spill] sm:$0xff] %v4657_v35 }
 0x107   :  { %502 = vperm.xlu2 %3894, %v4549_v2  }
 0x108   :  { %3897 = vset.pattern.permute.xlu1 %v4601_v36 }
 0x10a   :  { %v4653_v47 = vpop.xlane.xlu2 %392  ;;  %v4661_v18 = vpop.xlane.xlu1 %389 }
 0x10b   :  { %6739 = vst [vmem:[#allocation29_spill] sm:$0xff] %v4661_v18  ;;  %v4666_v39 = vpop.xlane.xlu0 %386 }
 0x10c   :  { %3932 = vset.pattern.permute.xlu0 %v4574_v16  ;;  %6740 = vst [vmem:[#allocation30_spill] sm:$0xff] %v4666_v39 }
 0x10f   :  { %3896 = vset.pattern.permute.xlu2 %v4610_v41 }
 0x110   :  { %520 = vperm.xlu1 %3897, %v4549_v2  }
 0x112   :  { %v4663_v54 = vpop.xlane.xlu2 %401  ;;  %v4669_v6 = vpop.xlane.xlu1 %398 }
 0x113   :  { %6741 = vst [vmem:[#allocation31_spill] sm:$0xff] %v4669_v6  ;;  %v4673_v35 = vpop.xlane.xlu0 %395 }
 0x114   :  { %557 = vperm.xlu0 %3932, %v522_v25   ;;  %6742 = vst [vmem:[#allocation32_spill] sm:$0xff] %v4673_v35 }
 0x117   :  { %514 = vperm.xlu2 %3896, %v4549_v2  }
 0x118   :  { %3899 = vset.pattern.permute.xlu1 %v4516_v32 }
 0x11a   :  { %v4671_v46 = vpop.xlane.xlu2 %410  ;;  %v4677_v18 = vpop.xlane.xlu1 %407 }
 0x11b   :  { %6743 = vst [vmem:[#allocation33_spill] sm:$0xff] %v4677_v18  ;;  %v4682_v39 = vpop.xlane.xlu0 %404 }
 0x11c   :  { %802 = vperm.xlu0 %3932, %v4595_v34   ;;  %6744 = vst [vmem:[#allocation34_spill] sm:$0xff] %v4682_v39  ;;  %v28_v39 = vld [vmem:[%s6687_s4 + $0x20] sm:$0x7] }
 0x11d   :  { %v4702_v13 = vperm.slane %v28_v39, 0 }
 0x11f   :  { %3898 = vset.pattern.permute.xlu2 %v4626_v53 }
 0x120   :  { %539 = vperm.xlu1 %3899, %v522_v25  }
 0x122   :  { %v4679_v22 = vpop.xlane.xlu2 %419  ;;  %v4688_v35 = vpop.xlane.xlu1 %416 }
 0x123   :  { %6745 = vst [vmem:[#allocation35_spill] sm:$0xff] %v4688_v35  ;;  %v4695_v29 = vpop.xlane.xlu0 %413 }
 0x124   :  { %3937 = vset.pattern.permute.xlu0 %v4516_v32  ;;  %6746 = vst [vmem:[#allocation36_spill] sm:$0xff] %v4695_v29 }
 0x127   :  { %533 = vperm.xlu2 %3898, %v522_v25  }
 0x128   :  { %3901 = vset.pattern.permute.xlu1 %v4584_v26 }
 0x12a   :  { %v4690_v6 = vpop.xlane.xlu2 %428  ;;  %v4704_v35 = vpop.xlane.xlu1 %425 }
 0x12b   :  { %6747 = vst [vmem:[#allocation37_spill] sm:$0xff] %v4704_v35 }
 0x12c   :  { %588 = vperm.xlu0 %3937, %v571_v52  }
 0x12f   :  { %3900 = vset.pattern.permute.xlu2 %v4498_v21 }
 0x130   :  { %551 = vperm.xlu1 %3901, %v522_v25  }
 0x132   :  { %v4706_v14 = vpop.xlane.xlu2 %437  ;;  %v4712_v29 = vpop.xlane.xlu1 %434 }
 0x133   :  { %6748 = vst [vmem:[#allocation38_spill] sm:$0xff] %v4706_v14 }
 0x134   :  { %833 = vperm.xlu0 %3937, %v4655_v27   ;;  %6750 = vst [vmem:[#allocation40_spill] sm:$0xff] %v4712_v29 }
 0x137   :  { %545 = vperm.xlu2 %3900, %v522_v25  }
 0x138   :  { %3903 = vset.pattern.permute.xlu1 %v4601_v36 }
 0x13a   :  { %v4714_v5 = vpop.xlane.xlu2 %446  ;;  %v4724_v35 = vpop.xlane.xlu1 %443 }
 0x13b   :  { %6751 = vst [vmem:[#allocation41_spill] sm:$0xff] %v4714_v5 }
 0x13c   :  { %3942 = vset.pattern.permute.xlu0 %v4601_v36  ;;  %6753 = vst [vmem:[#allocation43_spill] sm:$0xff] %v4724_v35 }
 0x13f   :  { %3902 = vset.pattern.permute.xlu2 %v4610_v41 }
 0x140   :  { %569 = vperm.xlu1 %3903, %v522_v25  }
 0x142   :  { %v4726_v9 = vpop.xlane.xlu2 %455 }
 0x143   :  { %6754 = vst [vmem:[#allocation44_spill] sm:$0xff] %v4726_v9 }
 0x144   :  { %618 = vperm.xlu0 %3942, %v571_v52  }
 0x147   :  { %563 = vperm.xlu2 %3902, %v522_v25   ;;  %v23_v25 = vld [vmem:[%s6687_s4 + $0xc] sm:$0x7] }
 0x148   :  { %3905 = vset.pattern.permute.xlu1 %v4626_v53  ;;  %v4693_v18 = vperm.slane %v23_v25, 0  ;;  %v4709_v25 = vpop.xlane.xlu0 %422 }
 0x149   :  { %6749 = vst [vmem:[#allocation39_spill] sm:$0xff] %v4709_v25  ;;  %v24_v25 = vld [vmem:[%s6687_s4 + $0x10] sm:$0x7] }
 0x14a   :  { %v4729_v29 = vperm.slane %v24_v25, 0  ;;  %v4740_v35 = vpop.permute.xlu2 %478 }
 0x14c   :  { %863 = vperm.xlu0 %3942, %v4655_v27  }
 0x14f   :  { %3904 = vset.pattern.permute.xlu2 %v4480_v8 }
 0x150   :  { %582 = vperm.xlu1 %3905, %v571_v52   ;;  %v4718_v39 = vpop.xlane.xlu0 %431 }
 0x151   :  { %6752 = vst [vmem:[#allocation42_spill] sm:$0xff] %v4718_v39  ;;  %v4738_v39 = vpop.xlane.xlu1 %452 }
 0x152   :  { %6756 = vst [vmem:[#allocation46_spill] sm:$0xff] %v4738_v39  ;;  %v497_v9 = vpop.permute.xlu2 %496 }
 0x154   :  { %3947 = vset.pattern.permute.xlu0 %v4584_v26 }
 0x157   :  { %576 = vperm.xlu2 %3904, %v571_v52  }
 0x158   :  { %3907 = vset.pattern.permute.xlu1 %v4584_v26  ;;  %v4731_v57 = vpop.xlane.xlu0 %440 }
 0x159   :  { %6755 = vst [vmem:[#allocation45_spill] sm:$0xff] %v4731_v57  ;;  %v4750_v57 = vpop.xlane.xlu1 %461 }
 0x15a   :  { %6758 = vst [vmem:[#allocation48_spill] sm:$0xff] %v4750_v57 }
 0x15c   :  { %649 = vperm.xlu0 %3947, %v4693_v18  }
 0x15f   :  { %3906 = vset.pattern.permute.xlu2 %v4498_v21 }
 0x160   :  { %600 = vperm.xlu1 %3907, %v571_v52   ;;  %v4745_v25 = vpop.xlane.xlu0 %449 }
 0x161   :  { %6757 = vst [vmem:[#allocation47_spill] sm:$0xff] %v4745_v25 }
 0x162   :  { %v4759_v25 = vpop.permute.xlu1 %490 }
 0x164   :  { %894 = vperm.xlu0 %3947, %v4702_v13  }
 0x167   :  { %594 = vperm.xlu2 %3906, %v571_v52  }
 0x168   :  { %3909 = vset.pattern.permute.xlu1 %v4610_v41  ;;  %v4753_v39 = vpop.xlane.xlu0 %458 }
 0x169   :  { %6759 = vst [vmem:[#allocation49_spill] sm:$0xff] %v4753_v39  ;;  %v1046_v39 = vadd.f32 %v497_v9, %v4384_v58 }
 0x16c   :  { %3952 = vset.pattern.permute.xlu0 %v4626_v53 }
 0x16f   :  { %3908 = vset.pattern.permute.xlu2 %v4574_v16 }
 0x170   :  { %612 = vperm.xlu1 %3909, %v571_v52   ;;  %v4763_v61 = vpop.permute.xlu0 %741 }
 0x171   :  { %6760 = vst [vmem:[#allocation50_spill] sm:$0xff] %v4763_v61  ;;  %v1126_v61 = vmax.f32 %v1046_v39, 0.0 }
 0x172   :  { %v4766_v57 = vpop.permute.xlu1 %508 }
 0x174   :  { %484 = vperm.xlu0 %3952, %v4549_v2   ;;  %v29_v2 = vld [vmem:[%s6687_s4 + $0x24] sm:$0x7] }
 0x177   :  { %606 = vperm.xlu2 %3908, %v571_v52   ;;  %v4743_v52 = vperm.slane %v29_v2, 0  ;;  %v4757_v2 = vpop.permute.xlu2 %502 }
 0x178   :  { %3911 = vset.pattern.permute.xlu1 %v4626_v53  ;;  %v528_v48 = vpop.permute.xlu0 %527 }
 0x179   :  { %v1051_v14 = vadd.f32 %v528_v48, %v4386_v59 }
 0x17b   :  { %v1131_v9 = vmax.f32 %v1051_v14, 0.0 }
 0x17c   :  { %680 = vperm.xlu0 %3952, %v4729_v29  }
 0x17f   :  { %3910 = vset.pattern.permute.xlu2 %v4480_v8  ;;  %v4768_v5 = vpop.permute.xlu2 %514 }
 0x180   :  { %631 = vperm.xlu1 %3911, %v4693_v18   ;;  %v4781_v4 = vpop.permute.xlu0 %772 }
 0x181   :  { %6761 = vst [vmem:[#allocation51_spill] sm:$0xff] %v4781_v4 }
 0x182   :  { %v4774_v55 = vpop.permute.xlu1 %520 }
 0x184   :  { %925 = vperm.xlu0 %3952, %v4743_v52  }
 0x187   :  { %625 = vperm.xlu2 %3910, %v4693_v18   ;;  %v4776_v30 = vpop.permute.xlu2 %533 }
 0x188   :  { %3913 = vset.pattern.permute.xlu1 %v4498_v21 }
 0x18c   :  { %3957 = vset.pattern.permute.xlu0 %v4610_v41 }
 0x18f   :  { %3912 = vset.pattern.permute.xlu2 %v4516_v32 }
 0x190   :  { %643 = vperm.xlu1 %3913, %v4693_v18  }
 0x191   :  { %v546_v19 = vpop.permute.xlu2 %545 }
 0x192   :  { %v4784_v58 = vpop.permute.xlu1 %539  ;;  %v1054_v50 = vadd.f32 %v546_v19, %v4404_v11 }
 0x194   :  { %710 = vperm.xlu0 %3957, %v4729_v29   ;;  %v1134_v48 = vmax.f32 %v1054_v50, 0.0 }
 0x197   :  { %637 = vperm.xlu2 %3912, %v4693_v18  }
 0x198   :  { %3915 = vset.pattern.permute.xlu1 %v4610_v41 }
 0x19c   :  { %955 = vperm.xlu0 %3957, %v4743_v52  }
 0x19f   :  { %3914 = vset.pattern.permute.xlu2 %v4574_v16 }
 0x1a0   :  { %661 = vperm.xlu1 %3915, %v4693_v18  }
 0x1a1   :  { %v564_v39 = vpop.permute.xlu2 %563 }
 0x1a2   :  { %v4791_v59 = vpop.permute.xlu1 %551 }
 0x1a4   :  { %3965 = vset.pattern.permute.xlu0 %v6692_v37  ;;  %v1057_v37 = vadd.f32 %v564_v39, %v4425_v24 }
 0x1a5   :  { %1373 = vperm.xlu0 %3965, %v1126_v61   ;;  %v4789_v61 = vpop.permute.xlu0 %557 }
 0x1a6   :  { %v1137_v11 = vmax.f32 %v1057_v37, 0.0 }
 0x1a7   :  { %655 = vperm.xlu2 %3914, %v4693_v18  }
 0x1a8   :  { %3917 = vset.pattern.permute.xlu1 %v4480_v8 }
 0x1ad   :  { %1388 = vperm.xlu0 %3965, %v1131_v9   ;;  %v4798_v19 = vpop.permute.xlu0 %802 }
 0x1af   :  { %3916 = vset.pattern.permute.xlu2 %v4601_v36 }
 0x1b0   :  { %674 = vperm.xlu1 %3917, %v4729_v29  }
 0x1b1   :  { %v4811_v37 = vpop.permute.xlu2 %576 }
 0x1b2   :  { %v4796_v14 = vpop.permute.xlu1 %569 }
 0x1b5   :  { %1397 = vperm.xlu0 %3965, %v1134_v48   ;;  %v4803_v48 = vpop.permute.xlu0 %588 }
 0x1b7   :  { %667 = vperm.xlu2 %3916, %v4693_v18  }
 0x1b8   :  { %3919 = vset.pattern.permute.xlu1 %v4498_v21 }
 0x1bd   :  { %1406 = vperm.xlu0 %3965, %v1137_v11   ;;  %v4807_v18 = vpop.permute.xlu0 %833 }
 0x1be   :  { %6762 = vst [vmem:[#allocation52_spill] sm:$0xff] %v4807_v18 }
 0x1bf   :  { %3918 = vset.pattern.permute.xlu2 %v4516_v32 }
 0x1c0   :  { %692 = vperm.xlu1 %3919, %v4729_v29  }
 0x1c2   :  { %v583_v9 = vpop.permute.xlu1 %582 }
 0x1c3   :  { %v1060_v50 = vadd.f32 %v583_v9, %v4452_v43 }
 0x1c5   :  { %v1140_v24 = vmax.f32 %v1060_v50, 0.0  ;;  %v619_v9 = vpop.permute.xlu0 %618 }
 0x1c6   :  { %v1066_v50 = vadd.f32 %v619_v9, %v4495_v20 }
 0x1c7   :  { %686 = vperm.xlu2 %3918, %v4729_v29   ;;  %1415 = vperm.xlu0 %3965, %v1140_v24   ;;  %v4817_v24 = vpop.permute.xlu2 %594 }
 0x1c8   :  { %3921 = vset.pattern.permute.xlu1 %v4574_v16  ;;  %v1146_v18 = vmax.f32 %v1066_v50, 0.0 }
 0x1cf   :  { %3920 = vset.pattern.permute.xlu2 %v4584_v26 }
 0x1d0   :  { %704 = vperm.xlu1 %3921, %v4729_v29  }
 0x1d1   :  { %v4821_v4 = vpop.permute.xlu2 %606 }
 0x1d2   :  { %v601_v39 = vpop.permute.xlu1 %600 }
 0x1d3   :  { %v1063_v11 = vadd.f32 %v601_v39, %v4473_v60 }
 0x1d5   :  { %v1143_v43 = vmax.f32 %v1063_v11, 0.0 }
 0x1d7   :  { %698 = vperm.xlu2 %3920, %v4729_v29   ;;  %1424 = vperm.xlu0 %3965, %v1143_v43  }
 0x1d8   :  { %3923 = vset.pattern.permute.xlu1 %v4480_v8 }
 0x1df   :  { %3922 = vset.pattern.permute.xlu2 %v4601_v36  ;;  %1433 = vperm.xlu0 %3965, %v1146_v18   ;;  %v4832_v18 = vpop.permute.xlu0 %863 }
 0x1e0   :  { %723 = vperm.xlu1 %3923, %v4557_v7   ;;  %6764 = vst [vmem:[#allocation54_spill] sm:$0xff] %v4832_v18 }
 0x1e1   :  { %v4825_v60 = vpop.permute.xlu2 %625 }
 0x1e2   :  { %6763 = vst [vmem:[#allocation53_spill] sm:$0xff] %v4825_v60  ;;  %v4836_v43 = vpop.permute.xlu1 %612 }
 0x1e7   :  { %716 = vperm.xlu2 %3922, %v4729_v29  }
 0x1e8   :  { %3925 = vset.pattern.permute.xlu1 %v4516_v32 }
 0x1ef   :  { %3924 = vset.pattern.permute.xlu2 %v4626_v53 }
 0x1f0   :  { %735 = vperm.xlu1 %3925, %v4557_v7  }
 0x1f1   :  { %v638_v20 = vpop.permute.xlu2 %637 }
 0x1f2   :  { %v1069_v39 = vadd.f32 %v638_v20, %v4521_v38  ;;  %v4840_v38 = vpop.permute.xlu0 %649  ;;  %v4843_v20 = vpop.permute.xlu1 %631 }
 0x1f3   :  { %6765 = vst [vmem:[#allocation55_spill] sm:$0xff] %v4840_v38 }
 0x1f4   :  { %v1149_v11 = vmax.f32 %v1069_v39, 0.0 }
 0x1f6   :  { %1442 = vperm.xlu0 %3965, %v1149_v11  }
 0x1f7   :  { %729 = vperm.xlu2 %3924, %v4557_v7  }
 0x1f8   :  { %3929 = vset.pattern.permute.xlu1 %v4574_v16 }
 0x1fa   :  { %v4847_v39 = vpop.permute.xlu0 %894 }
 0x1ff   :  { %3928 = vset.pattern.permute.xlu2 %v4584_v26 }
 0x200   :  { %753 = vperm.xlu1 %3929, %v4557_v7  }
 0x201   :  { %v656_v29 = vpop.permute.xlu2 %655 }
 0x202   :  { %v1072_v9 = vadd.f32 %v656_v29, %v4538_v56  ;;  %v4849_v11 = vpop.permute.xlu1 %643  ;;  %v4853_v56 = vpop.permute.xlu0 %484 }
 0x203   :  { %6766 = vst [vmem:[#allocation56_spill] sm:$0xff] %v4849_v11 }
 0x204   :  { %v1152_v50 = vmax.f32 %v1072_v9, 0.0 }
 0x206   :  { %1451 = vperm.xlu0 %3965, %v1152_v50  }
 0x207   :  { %747 = vperm.xlu2 %3928, %v4557_v7  }
 0x208   :  { %3931 = vset.pattern.permute.xlu1 %v4601_v36 }
 0x20a   :  { %v4860_v18 = vpop.permute.xlu0 %680 }
 0x20b   :  { %6768 = vst [vmem:[#allocation58_spill] sm:$0xff] %v4860_v18 }
 0x20f   :  { %3930 = vset.pattern.permute.xlu2 %v4610_v41 }
 0x210   :  { %765 = vperm.xlu1 %3931, %v4557_v7  }
 0x212   :  { %v4855_v29 = vpop.permute.xlu1 %661 }
 0x213   :  { %6767 = vst [vmem:[#allocation57_spill] sm:$0xff] %v4855_v29  ;;  %v4868_v29 = vpop.permute.xlu2 %667 }
 0x217   :  { %759 = vperm.xlu2 %3930, %v4557_v7   ;;  %v4864_v7 = vpop.permute.xlu0 %925 }
 0x218   :  { %3934 = vset.pattern.permute.xlu1 %v4516_v32  ;;  %6769 = vst [vmem:[#allocation59_spill] sm:$0xff] %v4864_v7 }
 0x21f   :  { %3933 = vset.pattern.permute.xlu2 %v4626_v53 }
 0x220   :  { %784 = vperm.xlu1 %3934, %v4595_v34  }
 0x222   :  { %v675_v9 = vpop.permute.xlu1 %674 }
 0x223   :  { %v1075_v50 = vadd.f32 %v675_v9, %v4544_v62  ;;  %v711_v9 = vpop.permute.xlu0 %710 }
 0x225   :  { %v1155_v60 = vmax.f32 %v1075_v50, 0.0  ;;  %v4874_v50 = vpop.permute.xlu2 %686 }
 0x227   :  { %778 = vperm.xlu2 %3933, %v4595_v34   ;;  %1460 = vperm.xlu0 %3965, %v1155_v60   ;;  %v1081_v60 = vadd.f32 %v711_v9, %v4570_v15 }
 0x228   :  { %3936 = vset.pattern.permute.xlu1 %v4584_v26 }
 0x229   :  { %v1161_v7 = vmax.f32 %v1081_v60, 0.0 }
 0x22f   :  { %3935 = vset.pattern.permute.xlu2 %v4498_v21 }
 0x230   :  { %796 = vperm.xlu1 %3936, %v4595_v34  }
 0x231   :  { %v4878_v18 = vpop.permute.xlu2 %698 }
 0x232   :  { %v693_v11 = vpop.permute.xlu1 %692 }
 0x233   :  { %v1078_v38 = vadd.f32 %v693_v11, %v4561_v12 }
 0x235   :  { %v1158_v62 = vmax.f32 %v1078_v38, 0.0 }
 0x237   :  { %790 = vperm.xlu2 %3935, %v4595_v34   ;;  %1469 = vperm.xlu0 %3965, %v1158_v62  }
 0x238   :  { %3939 = vset.pattern.permute.xlu1 %v4601_v36 }
 0x23f   :  { %3938 = vset.pattern.permute.xlu2 %v4610_v41  ;;  %1478 = vperm.xlu0 %3965, %v1161_v7  }
 0x240   :  { %814 = vperm.xlu1 %3939, %v4595_v34  }
 0x241   :  { %v4882_v12 = vpop.permute.xlu2 %716 }
 0x242   :  { %v4891_v7 = vpop.permute.xlu1 %704 }
 0x247   :  { %808 = vperm.xlu2 %3938, %v4595_v34  }
 0x248   :  { %3941 = vset.pattern.permute.xlu1 %v4626_v53 }
 0x24f   :  { %3940 = vset.pattern.permute.xlu2 %v4480_v8 }
 0x250   :  { %827 = vperm.xlu1 %3941, %v4655_v27  }
 0x251   :  { %v730_v15 = vpop.permute.xlu2 %729 }
 0x252   :  { %v1084_v38 = vadd.f32 %v730_v15, %v4591_v31  ;;  %v4896_v31 = vpop.permute.xlu1 %723 }
 0x254   :  { %v1164_v11 = vmax.f32 %v1084_v38, 0.0 }
 0x256   :  { %1487 = vperm.xlu0 %3965, %v1164_v11  }
 0x257   :  { %821 = vperm.xlu2 %3940, %v4655_v27  }
 0x258   :  { %3944 = vset.pattern.permute.xlu1 %v4584_v26 }
 0x25f   :  { %3943 = vset.pattern.permute.xlu2 %v4498_v21 }
 0x260   :  { %845 = vperm.xlu1 %3944, %v4655_v27  }
 0x261   :  { %v748_v34 = vpop.permute.xlu2 %747 }
 0x262   :  { %v1087_v62 = vadd.f32 %v748_v34, %v4606_v40  ;;  %v4900_v60 = vpop.permute.xlu1 %735 }
 0x264   :  { %v1167_v9 = vmax.f32 %v1087_v62, 0.0 }
 0x266   :  { %1496 = vperm.xlu0 %3965, %v1167_v9  }
 0x267   :  { %839 = vperm.xlu2 %3943, %v4655_v27  }
 0x268   :  { %3946 = vset.pattern.permute.xlu1 %v4610_v41 }
 0x26f   :  { %3945 = vset.pattern.permute.xlu2 %v4574_v16 }
 0x270   :  { %857 = vperm.xlu1 %3946, %v4655_v27  }
 0x272   :  { %v4904_v15 = vpop.permute.xlu1 %753 }
 0x277   :  { %851 = vperm.xlu2 %3945, %v4655_v27   ;;  %v4913_v27 = vpop.permute.xlu2 %759 }
 0x278   :  { %3949 = vset.pattern.permute.xlu1 %v4626_v53 }
 0x27f   :  { %3948 = vset.pattern.permute.xlu2 %v4480_v8 }
 0x280   :  { %876 = vperm.xlu1 %3949, %v4702_v13  }
 0x282   :  { %v766_v40 = vpop.permute.xlu1 %765 }
 0x283   :  { %v1090_v38 = vadd.f32 %v766_v40, %v4619_v49  ;;  %v1096_v49 = vadd.f32 %v4798_v19, %v4642_v3  ;;  %v4920_v40 = vpop.permute.xlu2 %778 }
 0x285   :  { %v1170_v11 = vmax.f32 %v1090_v38, 0.0  ;;  %v1176_v38 = vmax.f32 %v1096_v49, 0.0 }
 0x287   :  { %870 = vperm.xlu2 %3948, %v4702_v13   ;;  %1505 = vperm.xlu0 %3965, %v1170_v11  }
 0x288   :  { %3951 = vset.pattern.permute.xlu1 %v4498_v21 }
 0x28f   :  { %3950 = vset.pattern.permute.xlu2 %v4516_v32 }
 0x290   :  { %888 = vperm.xlu1 %3951, %v4702_v13  }
 0x291   :  { %v4924_v11 = vpop.permute.xlu2 %790 }
 0x292   :  { %v785_v34 = vpop.permute.xlu1 %784 }
 0x293   :  { %v1093_v62 = vadd.f32 %v785_v34, %v4630_v1 }
 0x295   :  { %v1173_v9 = vmax.f32 %v1093_v62, 0.0 }
 0x297   :  { %882 = vperm.xlu2 %3950, %v4702_v13   ;;  %1514 = vperm.xlu0 %3965, %v1173_v9  }
 0x298   :  { %3954 = vset.pattern.permute.xlu1 %v4610_v41 }
 0x29f   :  { %3953 = vset.pattern.permute.xlu2 %v4574_v16  ;;  %1523 = vperm.xlu0 %3965, %v1176_v38  }
 0x2a0   :  { %906 = vperm.xlu1 %3954, %v4702_v13  }
 0x2a1   :  { %v4928_v1 = vpop.permute.xlu2 %808 }
 0x2a2   :  { %v4937_v9 = vpop.permute.xlu1 %796 }
 0x2a7   :  { %900 = vperm.xlu2 %3953, %v4702_v13  }
 0x2a8   :  { %3956 = vset.pattern.permute.xlu1 %v4480_v8 }
 0x2af   :  { %3955 = vset.pattern.permute.xlu2 %v4601_v36 }
 0x2b0   :  { %919 = vperm.xlu1 %3956, %v4743_v52  }
 0x2b1   :  { %v822_v3 = vpop.permute.xlu2 %821 }
 0x2b2   :  { %v1099_v19 = vadd.f32 %v822_v3, %v4653_v47  ;;  %v4942_v47 = vpop.permute.xlu1 %814  ;;  %v1043_v3 = vadd.f32 %v4740_v35, %v4370_v51 }
 0x2b4   :  { %v1179_v34 = vmax.f32 %v1099_v19, 0.0  ;;  %v1123_v19 = vmax.f32 %v1043_v3, 0.0 }
 0x2b6   :  { %1532 = vperm.xlu0 %3965, %v1179_v34  }
 0x2b7   :  { %912 = vperm.xlu2 %3955, %v4702_v13  }
 0x2b8   :  { %3959 = vset.pattern.permute.xlu1 %v4498_v21 }
 0x2bf   :  { %3958 = vset.pattern.permute.xlu2 %v4516_v32  ;;  %v1048_v32 = vadd.f32 %v4766_v57, %v4364_v45 }
 0x2c0   :  { %937 = vperm.xlu1 %3959, %v4743_v52  }
 0x2c1   :  { %v840_v62 = vpop.permute.xlu2 %839  ;;  %v1128_v3 = vmax.f32 %v1048_v32, 0.0  ;;  %v1047_v32 = vadd.f32 %v4757_v2, %v4339_v28  ;;  %v1049_v28 = vadd.f32 %v4768_v5, %v4415_v17  ;;  %v1056_v2 = vadd.f32 %v4789_v61, %v4450_v42  ;;  %v6771_v42 = vld [vmem:[#allocation2_spill] sm:$0xff]  ;;  %v6772_v61 = vld [vmem:[#allocation4_spill] sm:$0xff] }
 0x2c2   :  { %v1102_v49 = vadd.f32 %v840_v62, %v4663_v54  ;;  %v4946_v13 = vpop.permute.xlu1 %827  ;;  %v6770_v54 = vmov 0   ;;  %v1045_v62 = vadd.f32 %v4759_v25, %v4362_v44  ;;  %v1050_v44 = vadd.f32 %v4774_v55, %v4402_v10 }
 0x2c3   :  { %v1111_v55 = vadd.f32 %v4847_v39, %v4690_v6  ;;  %v1052_v6 = vadd.f32 %v4776_v30, %v4439_v33  ;;  %v1059_v39 = vadd.f32 %v4811_v37, %v4471_v0  ;;  %v1055_v5 = vadd.f32 %v4791_v59, %v6771_v42  ;;  %v6773_v30 = vld [vmem:[#allocation3_spill] sm:$0xff]  ;;  %v6774_v37 = vld [vmem:[#allocation38_spill] sm:$0xff]  ;;  %v6783_v42 = vld [vmem:[#allocation53_spill] sm:$0xff] }
 0x2c4   :  { %v1182_v38 = vmax.f32 %v1102_v49, 0.0  ;;  %v1125_v49 = vmax.f32 %v1045_v62, 0.0  ;;  %v1130_v62 = vmax.f32 %v1050_v44, 0.0  ;;  %v1058_v0 = vadd.f32 %v4796_v14, %v6773_v30  ;;  %v6786_v30 = vld [vmem:[#allocation56_spill] sm:$0xff] }
 0x2c6   :  { %1541 = vperm.xlu0 %3965, %v1182_v38  }
 0x2c7   :  { %931 = vperm.xlu2 %3958, %v4743_v52  }
 0x2c8   :  { %3961 = vset.pattern.permute.xlu1 %v4574_v16 }
 0x2cf   :  { %3960 = vset.pattern.permute.xlu2 %v4584_v26 }
 0x2d0   :  { %949 = vperm.xlu1 %3961, %v4743_v52  }
 0x2d1   :  { %v4966_v45 = vpop.permute.xlu2 %851 }
 0x2d2   :  { %v4952_v34 = vpop.permute.xlu1 %845 }
 0x2d7   :  { %943 = vperm.xlu2 %3960, %v4743_v52  }
 0x2d8   :  { %3963 = vset.pattern.permute.xlu1 %v6770_v54 }
 0x2d9   :  { %1364 = vperm.xlu1 %3963, %v1123_v19   ;;  %v1044_v19 = vadd.f32 %v4853_v56, %v4388_v63  ;;  %v1127_v56 = vmax.f32 %v1047_v32, 0.0 }
 0x2db   :  { %v1124_v25 = vmax.f32 %v1044_v19, 0.0  ;;  %v1135_v19 = vmax.f32 %v1055_v5, 0.0 }
 0x2df   :  { %3962 = vset.pattern.permute.xlu2 %v4601_v36 }
 0x2e1   :  { %1370 = vperm.xlu1 %3963, %v1125_v49   ;;  %v4975_v49 = vpop.permute.xlu2 %870 }
 0x2e2   :  { %v858_v38 = vpop.permute.xlu1 %857 }
 0x2e3   :  { %v1105_v51 = vadd.f32 %v858_v38, %v4671_v46  ;;  %v1053_v46 = vadd.f32 %v4784_v58, %v4423_v23  ;;  %v1191_v23 = vmax.f32 %v1111_v55, 0.0  ;;  %v1129_v58 = vmax.f32 %v1049_v28, 0.0  ;;  %v6778_v28 = vld [vmem:[#allocation8_spill] sm:$0xff] }
 0x2e5   :  { %v1185_v35 = vmax.f32 %v1105_v51, 0.0  ;;  %v1133_v10 = vmax.f32 %v1053_v46, 0.0  ;;  %v1132_v51 = vmax.f32 %v1052_v6, 0.0  ;;  %v1138_v46 = vmax.f32 %v1058_v0, 0.0  ;;  %v6781_v6 = vld [vmem:[#allocation55_spill] sm:$0xff] }
 0x2e7   :  { %961 = vperm.xlu2 %3962, %v4743_v52   ;;  %1550 = vperm.xlu0 %3965, %v1185_v35   ;;  %v1139_v35 = vmax.f32 %v1059_v39, 0.0 }
 0x2e9   :  { %1379 = vperm.xlu1 %3963, %v1128_v3   ;;  %v1062_v3 = vadd.f32 %v4817_v24, %v6772_v61  ;;  %v6776_v24 = vld [vmem:[#allocation5_spill] sm:$0xff] }
 0x2eb   :  { %v1142_v44 = vmax.f32 %v1062_v3, 0.0  ;;  %v6784_v3 = vld [vmem:[#allocation13_spill] sm:$0xff] }
 0x2ef   :  { %3964 = vset.pattern.permute.xlu2 %v6770_v54 }
 0x2f0   :  { %1367 = vperm.xlu2 %3964, %v1124_v25  }
 0x2f1   :  { %1385 = vperm.xlu1 %3963, %v1130_v62   ;;  %v4981_v38 = vpop.permute.xlu2 %882  ;;  %v6775_v62 = vld [vmem:[#allocation7_spill] sm:$0xff] }
 0x2f2   :  { %v877_v57 = vpop.permute.xlu1 %876  ;;  %v1065_v32 = vadd.f32 %v4836_v43, %v6775_v62  ;;  %v1064_v43 = vadd.f32 %v4821_v4, %v6778_v28  ;;  %v1074_v4 = vadd.f32 %v4868_v29, %v6784_v3  ;;  %v6789_v29 = vld [vmem:[#allocation57_spill] sm:$0xff]  ;;  %v6792_v28 = vld [vmem:[#allocation58_spill] sm:$0xff] }
 0x2f3   :  { %v1108_v63 = vadd.f32 %v877_v57, %v4679_v22  ;;  %v1136_v22 = vmax.f32 %v1056_v2, 0.0  ;;  %v6796_v3 = vld [vmem:[#allocation21_spill] sm:$0xff] }
 0x2f4   :  { %v1145_v59 = vmax.f32 %v1065_v32, 0.0 }
 0x2f5   :  { %v1188_v52 = vmax.f32 %v1108_v63, 0.0  ;;  %v1061_v63 = vadd.f32 %v4803_v48, %v6776_v24  ;;  %v1144_v48 = vmax.f32 %v1064_v43, 0.0 }
 0x2f7   :  { %1559 = vperm.xlu0 %3965, %v1188_v52   ;;  %v6777_v52 = vld [vmem:[#allocation9_spill] sm:$0xff] }
 0x2f8   :  { %1376 = vperm.xlu2 %3964, %v1127_v56   ;;  %v1068_v56 = vadd.f32 %v4843_v20, %v6777_v52  ;;  %v6782_v20 = vld [vmem:[#allocation10_spill] sm:$0xff]  ;;  %v6790_v52 = vld [vmem:[#allocation17_spill] sm:$0xff] }
 0x2f9   :  { %1394 = vperm.xlu1 %3963, %v1133_v10   ;;  %v1141_v10 = vmax.f32 %v1061_v63, 0.0  ;;  %v1067_v5 = vadd.f32 %v6783_v42, %v6782_v20  ;;  %v6795_v20 = vld [vmem:[#allocation18_spill] sm:$0xff] }
 0x2fa   :  { %v1148_v55 = vmax.f32 %v1068_v56, 0.0  ;;  %v1080_v56 = vadd.f32 %v4891_v7, %v6790_v52  ;;  %v1079_v42 = vadd.f32 %v4878_v18, %v6795_v20 }
 0x2ff   :  { %1568 = vperm.xlu0 %3965, %v1191_v23   ;;  %v6779_v23 = vld [vmem:[#allocation41_spill] sm:$0xff] }
 0x300   :  { %1382 = vperm.xlu2 %3964, %v1129_v58  }
 0x301   :  { %1403 = vperm.xlu1 %3963, %v1136_v22   ;;  %v4987_v17 = vpop.permute.xlu2 %900  ;;  %v6780_v22 = vld [vmem:[#allocation11_spill] sm:$0xff] }
 0x302   :  { %v5004_v2 = vpop.permute.xlu1 %888  ;;  %v1071_v39 = vadd.f32 %v6781_v6, %v6780_v22  ;;  %v6794_v6 = vld [vmem:[#allocation44_spill] sm:$0xff] }
 0x308   :  { %1391 = vperm.xlu2 %3964, %v1132_v51  }
 0x309   :  { %1412 = vperm.xlu1 %3963, %v1139_v35   ;;  %v1151_v35 = vmax.f32 %v1071_v39, 0.0 }
 0x310   :  { %1400 = vperm.xlu2 %3964, %v1135_v19   ;;  %v1147_v19 = vmax.f32 %v1067_v5, 0.0 }
 0x311   :  { %1421 = vperm.xlu1 %3963, %v1142_v44   ;;  %v913_v33 = vpop.permute.xlu2 %912  ;;  %v1154_v44 = vmax.f32 %v1074_v4, 0.0  ;;  %v6797_v4 = vld [vmem:[#allocation50_spill] sm:$0xff] }
 0x312   :  { %v1114_v25 = vadd.f32 %v913_v33, %v6774_v37  ;;  %v5011_v61 = vpop.permute.xlu1 %906  ;;  %v6785_v33 = vld [vmem:[#allocation12_spill] sm:$0xff] }
 0x313   :  { %v1070_v0 = vadd.f32 %v6786_v30, %v6785_v33 }
 0x314   :  { %v1194_v57 = vmax.f32 %v1114_v25, 0.0  ;;  %v6787_v25 = vld [vmem:[#allocation15_spill] sm:$0xff] }
 0x315   :  { %v1077_v62 = vadd.f32 %v4874_v50, %v6787_v25  ;;  %v1150_v32 = vmax.f32 %v1070_v0, 0.0  ;;  %v6791_v50 = vld [vmem:[#allocation16_spill] sm:$0xff] }
 0x316   :  { %1577 = vperm.xlu0 %3965, %v1194_v57   ;;  %v1076_v43 = vadd.f32 %v6792_v28, %v6791_v50  ;;  %v6798_v0 = vld [vmem:[#allocation20_spill] sm:$0xff] }
 0x317   :  { %v1157_v57 = vmax.f32 %v1077_v62, 0.0  ;;  %v1082_v25 = vadd.f32 %v4882_v12, %v6798_v0  ;;  %v6811_v0 = vld [vmem:[#allocation27_spill] sm:$0xff] }
 0x318   :  { %1409 = vperm.xlu2 %3964, %v1138_v46  }
 0x319   :  { %1430 = vperm.xlu1 %3963, %v1145_v59   ;;  %v6788_v59 = vld [vmem:[#allocation14_spill] sm:$0xff] }
 0x31a   :  { %v1073_v24 = vadd.f32 %v6789_v29, %v6788_v59  ;;  %v6800_v59 = vlaneseq }
 0x31c   :  { %v5048_v29 = vand.u32 127, %v6800_v59 }
 0x31e   :  { %6801 = vst [vmem:[#allocation2_spill] sm:$0xff] %v5048_v29  ;;  %v5051_v52 = vadd.s32 4294967288, %v5048_v29  ;;  %v5072_v20 = vadd.s32 4294967256, %v5048_v29 }
 0x320   :  { %1418 = vperm.xlu2 %3964, %v1141_v10   ;;  %v1153_v10 = vmax.f32 %v1073_v24, 0.0  ;;  %v1162_v24 = vmax.f32 %v1082_v25, 0.0  ;;  %6802 = vst [vmem:[#allocation4_spill] sm:$0xff] %v5051_v52  ;;  %v1095_v25 = vadd.f32 %v4937_v9, %v6811_v0 }
 0x321   :  { %1439 = vperm.xlu1 %3963, %v1148_v55   ;;  %v932_v14 = vpop.permute.xlu2 %931  ;;  %v1160_v55 = vmax.f32 %v1080_v56, 0.0  ;;  %6807 = vst [vmem:[#allocation7_spill] sm:$0xff] %v5072_v20 }
 0x322   :  { %v1117_v58 = vadd.f32 %v932_v14, %v6779_v23  ;;  %v5017_v37 = vpop.permute.xlu1 %919 }
 0x324   :  { %v1197_v51 = vmax.f32 %v1117_v58, 0.0  ;;  %v6793_v58 = vld [vmem:[#allocation19_spill] sm:$0xff] }
 0x325   :  { %v1083_v22 = vadd.f32 %v4896_v31, %v6793_v58  ;;  %v1159_v31 = vmax.f32 %v1079_v42, 0.0  ;;  %v5064_v58 = vadd.s32 4294967272, %v5048_v29 }
 0x326   :  { %1586 = vperm.xlu0 %3965, %v1197_v51   ;;  %v5036_v51 = vpop.permute.xlu0 %955 }
 0x327   :  { %v1163_v7 = vmax.f32 %v1083_v22, 0.0  ;;  %6805 = vst [vmem:[#allocation38_spill] sm:$0xff] %v5064_v58  ;;  %v6806_v22 = vld [vmem:[#allocation25_spill] sm:$0xff] }
 0x328   :  { %1427 = vperm.xlu2 %3964, %v1144_v48  }
 0x329   :  { %1448 = vperm.xlu1 %3963, %v1151_v35   ;;  %v1156_v35 = vmax.f32 %v1076_v43, 0.0 }
 0x32e   :  { %v1374_v33 = vpop.permute.xlu0 %1373 }
 0x330   :  { %1436 = vperm.xlu2 %3964, %v1147_v19   ;;  %v1086_v19 = vadd.f32 %v6797_v4, %v6796_v3 }
 0x331   :  { %1457 = vperm.xlu1 %3963, %v1154_v44   ;;  %v5021_v46 = vpop.permute.xlu2 %943 }
 0x332   :  { %v5025_v63 = vpop.permute.xlu1 %937  ;;  %v1166_v30 = vmax.f32 %v1086_v19, 0.0  ;;  %v6809_v19 = vld [vmem:[#allocation24_spill] sm:$0xff] }
 0x338   :  { %1445 = vperm.xlu2 %3964, %v1150_v32   ;;  %v6799_v32 = vld [vmem:[#allocation23_spill] sm:$0xff] }
 0x339   :  { %1466 = vperm.xlu1 %3963, %v1157_v57   ;;  %v1089_v57 = vadd.f32 %v4913_v27, %v6799_v32  ;;  %v6804_v27 = vld [vmem:[#allocation22_spill] sm:$0xff] }
 0x33a   :  { %v1085_v28 = vadd.f32 %v4900_v60, %v6804_v27  ;;  %v1615_v60 = vperm.slane %v1374_v33, %v5064_v58  ;;  %v6813_v27 = vld [vmem:[#allocation26_spill] sm:$0xff] }
 0x33b   :  { %v1169_v56 = vmax.f32 %v1089_v57, 0.0  ;;  %v5088_v57 = vadd.s32 4294967248, %v5048_v29 }
 0x33d   :  { %6812 = vst [vmem:[#allocation8_spill] sm:$0xff] %v5088_v57 }
 0x340   :  { %1454 = vperm.xlu2 %3964, %v1153_v10   ;;  %v5053_v10 = vpop.permute.xlu0 %1388 }
 0x341   :  { %1475 = vperm.xlu1 %3963, %v1160_v55   ;;  %v5029_v14 = vpop.permute.xlu2 %961  ;;  %v5056_v55 = vadd.s32 4294967280, %v5048_v29 }
 0x342   :  { %v950_v23 = vpop.permute.xlu1 %949 }
 0x343   :  { %v1120_v39 = vadd.f32 %v950_v23, %v6794_v6  ;;  %6803 = vst [vmem:[#allocation3_spill] sm:$0xff] %v5056_v55  ;;  %v1092_v6 = vadd.f32 %v4920_v40, %v6806_v22 }
 0x345   :  { %v1200_v48 = vmax.f32 %v1120_v39, 0.0  ;;  %v1172_v42 = vmax.f32 %v1092_v6, 0.0  ;;  %v6815_v6 = vld [vmem:[#allocation29_spill] sm:$0xff] }
 0x347   :  { %1595 = vperm.xlu0 %3965, %v1200_v48  }
 0x348   :  { %1463 = vperm.xlu2 %3964, %v1156_v35   ;;  %v1165_v35 = vmax.f32 %v1085_v28, 0.0  ;;  %v1398_v4 = vpop.permute.xlu0 %1397  ;;  %v6814_v28 = vld [vmem:[#allocation51_spill] sm:$0xff] }
 0x349   :  { %1484 = vperm.xlu1 %3963, %v1163_v7  }
 0x34a   :  { %v1368_v5 = vpop.permute.xlu2 %1367 }
 0x34b   :  { %v1365_v44 = vpop.permute.xlu1 %1364  ;;  %v1607_v12 = vperm.slane %v1368_v5, %v5051_v52  ;;  %v5075_v5 = vadd.s32 4294967264, %v5048_v29 }
 0x34c   :  { %v1605_v50 = vperm.slane %v1365_v44, %v5048_v29  ;;  %v1088_v44 = vadd.f32 %v4904_v15, %v6809_v19  ;;  %v1634_v19 = vperm.slane %v5053_v10, %v5048_v29 }
 0x34d   :  { %6808 = vst [vmem:[#allocation5_spill] sm:$0xff] %v5075_v5 }
 0x34e   :  { %v1609_v48 = vsel %vm1608_vm1, %v1607_v12, %v1605_v50  ;;  %v1203_v50 = vld [vmem:[%s6688_s2] sm:$0xff] }
 0x34f   :  { %4002 = vset.pattern.permute.xlu0 %v4584_v26 }
 0x350   :  { %1472 = vperm.xlu2 %3964, %v1159_v31  }
 0x351   :  { %1493 = vperm.xlu1 %3963, %v1166_v30   ;;  %v5083_v30 = vadd.s32 4294967240, %v5048_v29 }
 0x352   :  { %v1377_v62 = vpop.permute.xlu2 %1376 }
 0x353   :  { %v1371_v18 = vpop.permute.xlu1 %1370  ;;  %v1619_v33 = vperm.slane %v1377_v62, %v5075_v5  ;;  %6810 = vst [vmem:[#allocation9_spill] sm:$0xff] %v5083_v30  ;;  %v1168_v62 = vmax.f32 %v1088_v44, 0.0  ;;  %v6816_v44 = vld [vmem:[#allocation28_spill] sm:$0xff] }
 0x354   :  { %v1611_v43 = vperm.slane %v1371_v18, %v5056_v55 }
 0x356   :  { %v1613_v7 = vsel %vm1612_vm2, %v1611_v43, %v1609_v48  ;;  %v1091_v43 = vadd.f32 %v6814_v28, %v6813_v27  ;;  %v1407_v48 = vpop.permute.xlu0 %1406 }
 0x357   :  { %v1617_v40 = vsel %vm1616_vm3, %v1615_v60, %v1613_v7 }
 0x358   :  { %1481 = vperm.xlu2 %3964, %v1162_v24   ;;  %v1621_v18 = vsel %vm1620_vm4, %v1619_v33, %v1617_v40  ;;  %v1171_v7 = vmax.f32 %v1091_v43, 0.0  ;;  %v1094_v33 = vadd.f32 %v4924_v11, %v6816_v44  ;;  %v1210_v43 = vld [vmem:[%s6688_s2 + $0x38] sm:$0xff] }
 0x359   :  { %1502 = vperm.xlu1 %3963, %v1169_v56   ;;  %v1175_v56 = vmax.f32 %v1095_v25, 0.0  ;;  %v6817_v25 = vld [vmem:[#allocation31_spill] sm:$0xff] }
 0x35a   :  { %v1383_v23 = vpop.permute.xlu2 %1382 }
 0x35b   :  { %v1380_v39 = vpop.permute.xlu1 %1379  ;;  %v1627_v24 = vperm.slane %v1383_v23, %v5088_v57  ;;  %v1098_v23 = vadd.f32 %v4942_v47, %v6815_v6  ;;  %v1207_v47 = vld [vmem:[%s6688_s2 + $0x20] sm:$0xff] }
 0x35c   :  { %v1623_v3 = vperm.slane %v1380_v39, %v5072_v20  ;;  %v6819_v6 = vld [vmem:[#allocation30_spill] sm:$0xff] }
 0x35d   :  { %v1178_v60 = vmax.f32 %v1098_v23, 0.0 }
 0x35e   :  { %v1625_v59 = vsel %vm1624_vm5, %v1623_v3, %v1621_v18 }
 0x35f   :  { %v1629_v12 = vsel %vm1628_vm6, %v1627_v24, %v1625_v59  ;;  %v1639_v24 = vperm.slane %v1398_v4, %v5064_v58  ;;  %v1097_v4 = vadd.f32 %v4928_v1, %v6819_v6  ;;  %v1216_v6 = vld [vmem:[%s6688_s2 + $0x68] sm:$0xff] }
 0x360   :  { %1490 = vperm.xlu2 %3964, %v1165_v35  }
 0x361   :  { %1511 = vperm.xlu1 %3963, %v1172_v42  }
 0x362   :  { %v1392_v31 = vpop.permute.xlu2 %1391 }
 0x363   :  { %v1386_v32 = vpop.permute.xlu1 %1385  ;;  %v1635_v42 = vperm.slane %v1392_v31, %v5051_v52  ;;  %v6818_v31 = vld [vmem:[#allocation52_spill] sm:$0xff] }
 0x364   :  { %v1631_v15 = vperm.slane %v1386_v32, %v5083_v30  ;;  %v1101_v32 = vadd.f32 %v6818_v31, %v6817_v25 }
 0x365   :  { %v1636_v18 = vsel %vm1608_vm1, %v1635_v42, %v1634_v19  ;;  %v1645_v42 = vperm.slane %v1407_v48, %v5088_v57  ;;  %v1177_v19 = vmax.f32 %v1097_v4, 0.0  ;;  %v1213_v48 = vld [vmem:[%s6688_s2 + $0x50] sm:$0xff]  ;;  %v6823_v4 = vld [vmem:[#allocation34_spill] sm:$0xff] }
 0x366   :  { %v5096_v9 = vsel %vm1632_vm7, %v1631_v15, %v1629_v12  ;;  %v1416_v15 = vpop.permute.xlu0 %1415  ;;  %v1181_v12 = vmax.f32 %v1101_v32, 0.0  ;;  %v6821_v32 = vld [vmem:[#allocation32_spill] sm:$0xff] }
 0x367   :  { %v1846_v35 = vmul.f32 %v5096_v9, %v1203_v50  ;;  %v1850_v10 = vmul.f32 %v5096_v9, %v1207_v47 }
 0x368   :  { %1499 = vperm.xlu2 %3964, %v1168_v62  }
 0x369   :  { %1520 = vperm.xlu1 %3963, %v1175_v56   ;;  %v1927_v3 = vsel %vm1926_vm8, %v1846_v35, 0.0  ;;  %v1174_v56 = vmax.f32 %v1094_v33, 0.0  ;;  %v1939_v28 = vsel %vm1926_vm8, %v1850_v10, 0.0  ;;  %v6820_v35 = vld [vmem:[#allocation33_spill] sm:$0xff] }
 0x36a   :  { %v1401_v22 = vpop.permute.xlu2 %1400 }
 0x36b   :  { %v1395_v39 = vpop.permute.xlu1 %1394  ;;  %v1641_v27 = vperm.slane %v1401_v22, %v5075_v5 }
 0x36c   :  { %v1637_v40 = vperm.slane %v1395_v39, %v5056_v55 }
 0x36e   :  { %v1638_v62 = vsel %vm1612_vm2, %v1637_v40, %v1636_v18  ;;  %v1425_v40 = vpop.permute.xlu0 %1424  ;;  %v1100_v18 = vadd.f32 %v4946_v13, %v6821_v32  ;;  %v6826_v32 = vld [vmem:[#allocation54_spill] sm:$0xff] }
 0x36f   :  { %v1640_v50 = vsel %vm1616_vm3, %v1639_v24, %v1638_v62 }
 0x370   :  { %1508 = vperm.xlu2 %3964, %v1171_v7   ;;  %v1642_v23 = vsel %vm1620_vm4, %v1641_v27, %v1640_v50  ;;  %v1104_v7 = vadd.f32 %v4966_v45, %v6820_v35  ;;  %v1650_v45 = vperm.slane %v1416_v15, %v5051_v52 }
 0x371   :  { %1529 = vperm.xlu1 %3963, %v1178_v60   ;;  %1928 = vadd.xlane.f32.xlu0 %v1927_v3  ;;  %v1853_v3 = vmul.f32 %v5096_v9, %v1210_v43  ;;  %v1656_v43 = vperm.slane %v1425_v40, %v5075_v5 }
 0x372   :  { %v1410_v0 = vpop.permute.xlu2 %1409  ;;  %v1184_v44 = vmax.f32 %v1104_v7, 0.0  ;;  %v6824_v7 = vld [vmem:[#allocation37_spill] sm:$0xff] }
 0x373   :  { %v1404_v59 = vpop.permute.xlu1 %1403  ;;  %v1647_v1 = vperm.slane %v1410_v0, %v5083_v30  ;;  %v1948_v25 = vsel %vm1926_vm8, %v1853_v3, 0.0 }
 0x374   :  { %v1643_v11 = vperm.slane %v1404_v59, %v5072_v20  ;;  %v6822_v59 = vld [vmem:[#allocation35_spill] sm:$0xff] }
 0x375   :  { %v1107_v62 = vadd.f32 %v4975_v49, %v6822_v59  ;;  %v6827_v59 = vld [vmem:[#allocation40_spill] sm:$0xff] }
 0x376   :  { %v1644_v22 = vsel %vm1624_vm5, %v1643_v11, %v1642_v23  ;;  %v1434_v50 = vpop.permute.xlu0 %1433  ;;  %v1180_v11 = vmax.f32 %v1100_v18, 0.0  ;;  %v1103_v23 = vadd.f32 %v4952_v34, %v6823_v4 }
 0x377   :  { %v1646_v47 = vsel %vm1628_vm6, %v1645_v42, %v1644_v22  ;;  %v1110_v22 = vadd.f32 %v5004_v2, %v6824_v7  ;;  %v1662_v34 = vperm.slane %v1434_v50, %v5083_v30 }
 0x378   :  { %1517 = vperm.xlu2 %3964, %v1174_v56   ;;  %v5143_v31 = vsel %vm1632_vm7, %v1647_v1, %v1646_v47 }
 0x379   :  { %1538 = vperm.xlu1 %3963, %v1181_v12   ;;  %1940 = vadd.xlane.f32.xlu0 %v1939_v28  ;;  %v1856_v12 = vmul.f32 %v5143_v31, %v1213_v48  ;;  %v1187_v28 = vmax.f32 %v1107_v62, 0.0  ;;  %v1859_v3 = vmul.f32 %v5143_v31, %v1216_v6  ;;  %v6825_v48 = vld [vmem:[#allocation36_spill] sm:$0xff]  ;;  %v1113_v62 = vadd.f32 %v5011_v61, %v6827_v59  ;;  %v6828_v61 = vld [vmem:[#allocation39_spill] sm:$0xff] }
 0x37a   :  { %v1419_v39 = vpop.permute.xlu2 %1418  ;;  %v1106_v18 = vadd.f32 %v6826_v32, %v6825_v48  ;;  %v6830_v6 = vld [vmem:[#allocation59_spill] sm:$0xff]  ;;  %v6832_v48 = vld [vmem:[#allocation46_spill] sm:$0xff] }
 0x37b   :  { %v1413_v60 = vpop.permute.xlu1 %1412  ;;  %v1652_v15 = vperm.slane %v1419_v39, %v5056_v55  ;;  %v1957_v49 = vsel %vm1926_vm8, %v1856_v12, 0.0  ;;  %v1193_v12 = vmax.f32 %v1113_v62, 0.0  ;;  %v1119_v32 = vadd.f32 %v5021_v46, %v6832_v48  ;;  %v1228_v46 = vld [vmem:[%s6688_s2 + $0xc8] sm:$0xff]  ;;  %v6836_v48 = vld [vmem:[#allocation49_spill] sm:$0xff] }
 0x37c   :  { %v1649_v33 = vperm.slane %v1413_v60, %v5048_v29 }
 0x37e   :  { %v1651_v10 = vsel %vm1608_vm1, %v1650_v45, %v1649_v33  ;;  %v1443_v47 = vpop.permute.xlu0 %1442  ;;  %v1190_v33 = vmax.f32 %v1110_v22, 0.0  ;;  %v1219_v45 = vld [vmem:[%s6688_s2 + $0x80] sm:$0xff] }
 0x37f   :  { %v1653_v27 = vsel %vm1612_vm2, %v1652_v15, %v1651_v10  ;;  %v1186_v15 = vmax.f32 %v1106_v18, 0.0  ;;  %v1667_v7 = vperm.slane %v1443_v47, %v5056_v55  ;;  %v1225_v47 = vld [vmem:[%s6688_s2 + $0xb0] sm:$0xff] }
 0x380   :  { %1526 = vperm.xlu2 %3964, %v1177_v19  }
 0x381   :  { %1547 = vperm.xlu1 %3963, %v1184_v44   ;;  %1949 = vadd.xlane.f32.xlu0 %v1948_v25  ;;  %v1183_v44 = vmax.f32 %v1103_v23, 0.0  ;;  %v1966_v25 = vsel %vm1926_vm8, %v1859_v3, 0.0 }
 0x382   :  { %v1428_v0 = vpop.permute.xlu2 %1427 }
 0x383   :  { %v1422_v24 = vpop.permute.xlu1 %1421  ;;  %v1658_v60 = vperm.slane %v1428_v0, %v5072_v20 }
 0x384   :  { %v1654_v56 = vperm.slane %v1422_v24, %v5064_v58 }
 0x386   :  { %v1655_v13 = vsel %vm1616_vm3, %v1654_v56, %v1653_v27  ;;  %v1452_v56 = vpop.permute.xlu0 %1451 }
 0x387   :  { %v1657_v39 = vsel %vm1620_vm4, %v1656_v43, %v1655_v13  ;;  %v1109_v13 = vadd.f32 %v4981_v38, %v6828_v61  ;;  %v6834_v61 = vld [vmem:[#allocation48_spill] sm:$0xff] }
 0x388   :  { %1535 = vperm.xlu2 %3964, %v1180_v11   ;;  %v1659_v19 = vsel %vm1624_vm5, %v1658_v60, %v1657_v39 }
 0x389   :  { %1556 = vperm.xlu1 %3963, %v1187_v28   ;;  %1958 = vadd.xlane.f32.xlu0 %v1957_v49  ;;  %v1222_v28 = vld [vmem:[%s6688_s2 + $0x98] sm:$0xff]  ;;  %v6829_v49 = vld [vmem:[#allocation43_spill] sm:$0xff]  ;;  %v1189_v60 = vmax.f32 %v1109_v13, 0.0  ;;  %v1122_v13 = vadd.f32 %v5029_v14, %v6834_v61 }
 0x38a   :  { %v1437_v35 = vpop.permute.xlu2 %1436  ;;  %v1116_v4 = vadd.f32 %v6830_v6, %v6829_v49  ;;  %v6835_v14 = vld [vmem:[#allocation47_spill] sm:$0xff] }
 0x38b   :  { %v1431_v42 = vpop.permute.xlu1 %1430  ;;  %v1664_v27 = vperm.slane %v1437_v35, %v5048_v29 }
 0x38c   :  { %v1660_v40 = vperm.slane %v1431_v42, %v5088_v57  ;;  %v1196_v3 = vmax.f32 %v1116_v4, 0.0  ;;  %v1202_v4 = vmax.f32 %v1122_v13, 0.0 }
 0x38e   :  { %v1661_v1 = vsel %vm1628_vm6, %v1660_v40, %v1659_v19  ;;  %v1461_v22 = vpop.permute.xlu0 %1460 }
 0x38f   :  { %v5176_v2 = vsel %vm1632_vm7, %v1662_v34, %v1661_v1  ;;  %v6831_v1 = vld [vmem:[#allocation42_spill] sm:$0xff] }
 0x390   :  { %1544 = vperm.xlu2 %3964, %v1183_v44   ;;  %v1862_v24 = vmul.f32 %v5176_v2, %v1219_v45  ;;  %v1865_v35 = vmul.f32 %v5176_v2, %v1222_v28  ;;  %v1112_v34 = vadd.f32 %v4987_v17, %v6831_v1  ;;  %v1673_v45 = vperm.slane %v1452_v56, %v5072_v20 }
 0x391   :  { %1565 = vperm.xlu1 %3963, %v1190_v33   ;;  %1967 = vadd.xlane.f32.xlu0 %v1966_v25  ;;  %v1199_v17 = vmax.f32 %v1119_v32, 0.0  ;;  %v1121_v32 = vadd.f32 %v5036_v51, %v6836_v48  ;;  %v1205_v48 = vld [vmem:[%s6688_s2 + $0x10] sm:$0xff] }
 0x392   :  { %v1446_v0 = vpop.permute.xlu2 %1445  ;;  %v1975_v11 = vsel %vm1926_vm8, %v1862_v24, 0.0  ;;  %v1984_v19 = vsel %vm1926_vm8, %v1865_v35, 0.0  ;;  %v1192_v24 = vmax.f32 %v1112_v34, 0.0 }
 0x393   :  { %v1440_v10 = vpop.permute.xlu1 %1439  ;;  %v1669_v38 = vperm.slane %v1446_v0, %v5064_v58  ;;  %v1868_v0 = vmul.f32 %v5176_v2, %v1225_v47 }
 0x394   :  { %v1665_v50 = vperm.slane %v1440_v10, %v5051_v52 }
 0x395   :  { %v1993_v56 = vsel %vm1926_vm8, %v1868_v0, 0.0 }
 0x396   :  { %v1666_v23 = vsel %vm1608_vm1, %v1665_v50, %v1664_v27  ;;  %v1470_v10 = vpop.permute.xlu0 %1469 }
 0x397   :  { %v1668_v42 = vsel %vm1612_vm2, %v1667_v7, %v1666_v23  ;;  %v1684_v47 = vperm.slane %v1470_v10, %v5064_v58 }
 0x398   :  { %1553 = vperm.xlu2 %3964, %v1186_v15   ;;  %v1670_v44 = vsel %vm1616_vm3, %v1669_v38, %v1668_v42  ;;  %v1118_v42 = vadd.f32 %v5025_v63, %v6835_v14 }
 0x399   :  { %1574 = vperm.xlu1 %3963, %v1193_v12   ;;  %1976 = vadd.xlane.f32.xlu0 %v1975_v11  ;;  %v6833_v11 = vld [vmem:[#allocation45_spill] sm:$0xff] }
 0x39a   :  { %v1455_v43 = vpop.permute.xlu2 %1454  ;;  %v1115_v27 = vadd.f32 %v5017_v37, %v6833_v11  ;;  %v1231_v37 = vld [vmem:[%s6688_s2 + $0xe0] sm:$0xff] }
 0x39b   :  { %v1449_v39 = vpop.permute.xlu1 %1448  ;;  %v1675_v15 = vperm.slane %v1455_v43, %v5088_v57 }
 0x39c   :  { %v1671_v40 = vperm.slane %v1449_v39, %v5075_v5  ;;  %v1195_v6 = vmax.f32 %v1115_v27, 0.0 }
 0x39e   :  { %v1672_v33 = vsel %vm1620_vm4, %v1671_v40, %v1670_v44  ;;  %v1479_v39 = vpop.permute.xlu0 %1478 }
 0x39f   :  { %v1674_v59 = vsel %vm1624_vm5, %v1673_v45, %v1672_v33  ;;  %v1234_v45 = vld [vmem:[%s6688_s2 + $0xf8] sm:$0xff]  ;;  %v1690_v10 = vperm.slane %v1479_v39, %v5088_v57 }
 0x3a0   :  { %1562 = vperm.xlu2 %3964, %v1189_v60   ;;  %v1676_v12 = vsel %vm1628_vm6, %v1675_v15, %v1674_v59  ;;  %v1679_v60 = vperm.slane %v1461_v22, %v5048_v29  ;;  %v1198_v22 = vmax.f32 %v1118_v42, 0.0  ;;  %v1201_v15 = vmax.f32 %v1121_v32, 0.0 }
 0x3a1   :  { %1583 = vperm.xlu1 %3963, %v1196_v3   ;;  %1985 = vadd.xlane.f32.xlu0 %v1984_v19 }
 0x3a2   :  { %v1464_v25 = vpop.permute.xlu2 %1463 }
 0x3a3   :  { %v1458_v18 = vpop.permute.xlu1 %1457  ;;  %v1680_v23 = vperm.slane %v1464_v25, %v5051_v52 }
 0x3a4   :  { %v1677_v62 = vperm.slane %v1458_v18, %v5083_v30 }
 0x3a5   :  { %v1681_v3 = vsel %vm1608_vm1, %v1680_v23, %v1679_v60 }
 0x3a6   :  { %v5220_v50 = vsel %vm1632_vm7, %v1677_v62, %v1676_v12  ;;  %v1488_v33 = vpop.permute.xlu0 %1487 }
 0x3a7   :  { %v1871_v49 = vmul.f32 %v5220_v50, %v1228_v46  ;;  %v1874_v44 = vmul.f32 %v5220_v50, %v1231_v37  ;;  %v1695_v11 = vperm.slane %v1488_v33, %v5051_v52  ;;  %v1240_v37 = vld [vmem:[%s6688_s2 + $0x128] sm:$0xff] }
 0x3a8   :  { %1571 = vperm.xlu2 %3964, %v1192_v24   ;;  %v1877_v24 = vmul.f32 %v5220_v50, %v1234_v45 }
 0x3a9   :  { %1592 = vperm.xlu1 %3963, %v1199_v17   ;;  %1994 = vadd.xlane.f32.xlu0 %v1993_v56  ;;  %v2002_v35 = vsel %vm1926_vm8, %v1871_v49, 0.0  ;;  %v2011_v63 = vsel %vm1926_vm8, %v1874_v44, 0.0 }
 0x3aa   :  { %v1473_v28 = vpop.permute.xlu2 %1472  ;;  %v2020_v46 = vsel %vm1926_vm8, %v1877_v24, 0.0 }
 0x3ab   :  { %v1467_v43 = vpop.permute.xlu1 %1466  ;;  %v1686_v25 = vperm.slane %v1473_v28, %v5075_v5  ;;  %v1237_v28 = vld [vmem:[%s6688_s2 + $0x110] sm:$0xff] }
 0x3ac   :  { %v1682_v7 = vperm.slane %v1467_v43, %v5056_v55 }
 0x3ae   :  { %v1683_v19 = vsel %vm1612_vm2, %v1682_v7, %v1681_v3  ;;  %v1497_v51 = vpop.permute.xlu0 %1496 }
 0x3af   :  { %v1685_v1 = vsel %vm1616_vm3, %v1684_v47, %v1683_v19  ;;  %v1701_v7 = vperm.slane %v1497_v51, %v5075_v5  ;;  %v1208_v51 = vld [vmem:[%s6688_s2 + $0x28] sm:$0xff] }
 0x3b0   :  { %1580 = vperm.xlu2 %3964, %v1195_v6   ;;  %v1687_v18 = vsel %vm1620_vm4, %v1686_v25, %v1685_v1  ;;  %v1243_v25 = vld [vmem:[%s6688_s2 + $0x140] sm:$0xff] }
 0x3b1   :  { %1601 = vperm.xlu1 %3963, %v1202_v4   ;;  %2003 = vadd.xlane.f32.xlu0 %v2002_v35 }
 0x3b2   :  { %v1482_v40 = vpop.permute.xlu2 %1481 }
 0x3b3   :  { %v1476_v38 = vpop.permute.xlu1 %1475  ;;  %v1692_v12 = vperm.slane %v1482_v40, %v5083_v30 }
 0x3b4   :  { %v1688_v34 = vperm.slane %v1476_v38, %v5072_v20 }
 0x3b6   :  { %v1689_v59 = vsel %vm1624_vm5, %v1688_v34, %v1687_v18  ;;  %v1506_v35 = vpop.permute.xlu0 %1505  ;;  %v1848_v18 = vmul.f32 %v5096_v9, %v1205_v48 }
 0x3b7   :  { %v1691_v17 = vsel %vm1628_vm6, %v1690_v10, %v1689_v59  ;;  %v1246_v10 = vld [vmem:[%s6688_s2 + $0x158] sm:$0xff] }
 0x3b8   :  { %1589 = vperm.xlu2 %3964, %v1198_v22   ;;  %v5263_v27 = vsel %vm1632_vm7, %v1692_v12, %v1691_v17  ;;  %v1707_v22 = vperm.slane %v1506_v35, %v5083_v30  ;;  %v1933_v17 = vsel %vm1926_vm8, %v1848_v18, 0.0 }
 0x3b9   :  { %2012 = vadd.xlane.f32.xlu0 %v2011_v63  ;;  %3966 = vset.pattern.permute.xlu1 %v4480_v8  ;;  %v1880_v4 = vmul.f32 %v5263_v27, %v1237_v28  ;;  %v1883_v19 = vmul.f32 %v5263_v27, %v1240_v37 }
 0x3ba   :  { %v1491_v0 = vpop.permute.xlu2 %1490 }
 0x3bb   :  { %v1485_v62 = vpop.permute.xlu1 %1484  ;;  %v1697_v49 = vperm.slane %v1491_v0, %v5056_v55  ;;  %v2029_v60 = vsel %vm1926_vm8, %v1880_v4, 0.0  ;;  %v2038_v34 = vsel %vm1926_vm8, %v1883_v19, 0.0  ;;  %v1204_v4 = vld [vmem:[%s6688_s2 + $0x8] sm:$0xff] }
 0x3bc   :  { %v1694_v56 = vperm.slane %v1485_v62, %v5048_v29 }
 0x3be   :  { %v1696_v13 = vsel %vm1608_vm1, %v1695_v11, %v1694_v56  ;;  %v1515_v1 = vpop.permute.xlu0 %1514 }
 0x3bf   :  { %v1698_v23 = vsel %vm1612_vm2, %v1697_v49, %v1696_v13  ;;  %v1851_v13 = vmul.f32 %v5096_v9, %v1208_v51 }
 0x3c0   :  { %1598 = vperm.xlu2 %3964, %v1201_v15  }
 0x3c1   :  { %2021 = vadd.xlane.f32.xlu0 %v2020_v46  ;;  %v1712_v46 = vperm.slane %v1515_v1, %v5056_v55 }
 0x3c2   :  { %v1500_v61 = vpop.permute.xlu2 %1499 }
 0x3c3   :  { %v1494_v43 = vpop.permute.xlu1 %1493  ;;  %v1703_v40 = vperm.slane %v1500_v61, %v5072_v20 }
 0x3c4   :  { %v1699_v6 = vperm.slane %v1494_v43, %v5064_v58 }
 0x3c6   :  { %v1700_v39 = vsel %vm1616_vm3, %v1699_v6, %v1698_v23  ;;  %v1524_v24 = vpop.permute.xlu0 %1523  ;;  %v1249_v23 = vld [vmem:[%s6688_s2 + $0x170] sm:$0xff] }
 0x3c7   :  { %v1702_v14 = vsel %vm1620_vm4, %v1701_v7, %v1700_v39  ;;  %v1718_v37 = vperm.slane %v1524_v24, %v5072_v20 }
 0x3c8   :  { %3967 = vset.pattern.permute.xlu2 %v4626_v53  ;;  %v1704_v44 = vsel %vm1624_vm5, %v1703_v40, %v1702_v14  ;;  %v1847_v40 = vmul.f32 %v5096_v9, %v1204_v4 }
 0x3c9   :  { %2030 = vadd.xlane.f32.xlu0 %v2029_v60  ;;  %v1942_v60 = vsel %vm1926_vm8, %v1851_v13, 0.0 }
 0x3ca   :  { %v1509_v42 = vpop.permute.xlu2 %1508  ;;  %v1930_v1 = vsel %vm1926_vm8, %v1847_v40, 0.0 }
 0x3cb   :  { %v1503_v3 = vpop.permute.xlu1 %1502  ;;  %v1709_v62 = vperm.slane %v1509_v42, %v5048_v29  ;;  %v1211_v42 = vld [vmem:[%s6688_s2 + $0x40] sm:$0xff] }
 0x3cc   :  { %v1705_v38 = vperm.slane %v1503_v3, %v5088_v57 }
 0x3ce   :  { %v1706_v47 = vsel %vm1628_vm6, %v1705_v38, %v1704_v44  ;;  %v1533_v39 = vpop.permute.xlu0 %1532 }
 0x3cf   :  { %v5289_v33 = vsel %vm1632_vm7, %v1707_v22, %v1706_v47  ;;  %v1854_v47 = vmul.f32 %v5143_v31, %v1211_v42  ;;  %v1724_v51 = vperm.slane %v1533_v39, %v5048_v29 }
 0x3d0   :  { %v1886_v32 = vmul.f32 %v5289_v33, %v1243_v25  ;;  %v1889_v11 = vmul.f32 %v5289_v33, %v1246_v10  ;;  %v1892_v3 = vmul.f32 %v5289_v33, %v1249_v23 }
 0x3d1   :  { %2039 = vadd.xlane.f32.xlu0 %v2038_v34  ;;  %v1951_v18 = vsel %vm1926_vm8, %v1854_v47, 0.0 }
 0x3d2   :  { %v1518_v63 = vpop.permute.xlu2 %1517  ;;  %v2047_v59 = vsel %vm1926_vm8, %v1886_v32, 0.0  ;;  %v2056_v49 = vsel %vm1926_vm8, %v1889_v11, 0.0  ;;  %v2065_v34 = vsel %vm1926_vm8, %v1892_v3, 0.0  ;;  %v1255_v11 = vld [vmem:[%s6688_s2 + $0x1a0] sm:$0xff]  ;;  %v1258_v3 = vld [vmem:[%s6688_s2 + $0x1b8] sm:$0xff] }
 0x3d3   :  { %v1512_v45 = vpop.permute.xlu1 %1511  ;;  %v1714_v43 = vperm.slane %v1518_v63, %v5064_v58  ;;  %v1206_v63 = vld [vmem:[%s6688_s2 + $0x18] sm:$0xff] }
 0x3d4   :  { %v1710_v0 = vperm.slane %v1512_v45, %v5051_v52  ;;  %v1252_v45 = vld [vmem:[%s6688_s2 + $0x188] sm:$0xff] }
 0x3d6   :  { %v1711_v12 = vsel %vm1608_vm1, %v1710_v0, %v1709_v62  ;;  %v1542_v48 = vpop.permute.xlu0 %1541  ;;  %v1849_v62 = vmul.f32 %v5096_v9, %v1206_v63 }
 0x3d7   :  { %v1713_v28 = vsel %vm1612_vm2, %v1712_v46, %v1711_v12  ;;  %v1209_v46 = vld [vmem:[%s6688_s2 + $0x30] sm:$0xff] }
 0x3d8   :  { %v1715_v6 = vsel %vm1616_vm3, %v1714_v43, %v1713_v28  ;;  %v1936_v12 = vsel %vm1926_vm8, %v1849_v62, 0.0  ;;  %v1852_v23 = vmul.f32 %v5096_v9, %v1209_v46  ;;  %v1212_v9 = vld [vmem:[%s6688_s2 + $0x48] sm:$0xff] }
 0x3d9   :  { %2048 = vadd.xlane.f32.xlu0 %v2047_v59  ;;  %v1214_v59 = vld [vmem:[%s6688_s2 + $0x58] sm:$0xff] }
 0x3da   :  { %v1527_v15 = vpop.permute.xlu2 %1526  ;;  %v1857_v24 = vmul.f32 %v5143_v31, %v1214_v59  ;;  %v1945_v42 = vsel %vm1926_vm8, %v1852_v23, 0.0 }
 0x3db   :  { %v1521_v56 = vpop.permute.xlu1 %1520  ;;  %1934 = vadd.xlane.f32.xlu1 %v1933_v17  ;;  %v1720_v44 = vperm.slane %v1527_v15, %v5088_v57 }
 0x3dc   :  { %v1716_v61 = vperm.slane %v1521_v56, %v5075_v5  ;;  %v1960_v13 = vsel %vm1926_vm8, %v1857_v24, 0.0 }
 0x3de   :  { %v1717_v7 = vsel %vm1620_vm4, %v1716_v61, %v1715_v6  ;;  %v1551_v28 = vpop.permute.xlu0 %1550  ;;  %v1217_v6 = vld [vmem:[%s6688_s2 + $0x70] sm:$0xff] }
 0x3df   :  { %v1719_v38 = vsel %vm1624_vm5, %v1718_v37, %v1717_v7  ;;  %v1729_v7 = vperm.slane %v1542_v48, %v5064_v58  ;;  %v1735_v63 = vperm.slane %v1551_v28, %v5088_v57 }
 0x3e0   :  { %v1721_v22 = vsel %vm1628_vm6, %v1720_v44, %v1719_v38 }
 0x3e1   :  { %2057 = vadd.xlane.f32.xlu0 %v2056_v49 }
 0x3e2   :  { %v1536_v35 = vpop.permute.xlu2 %1535 }
 0x3e3   :  { %v1530_v14 = vpop.permute.xlu1 %1529  ;;  %1943 = vadd.xlane.f32.xlu1 %v1942_v60  ;;  %v1725_v15 = vperm.slane %v1536_v35, %v5051_v52  ;;  %v1860_v35 = vmul.f32 %v5143_v31, %v1217_v6 }
 0x3e4   :  { %v1722_v19 = vperm.slane %v1530_v14, %v5083_v30 }
 0x3e5   :  { %v1726_v43 = vsel %vm1608_vm1, %v1725_v15, %v1724_v51  ;;  %v1969_v44 = vsel %vm1926_vm8, %v1860_v35, 0.0 }
 0x3e6   :  { %v5340_v25 = vsel %vm1632_vm7, %v1722_v19, %v1721_v22  ;;  %v1560_v38 = vpop.permute.xlu0 %1559 }
 0x3e7   :  { %v1895_v10 = vmul.f32 %v5340_v25, %v1252_v45  ;;  %v1898_v39 = vmul.f32 %v5340_v25, %v1255_v11  ;;  %v1855_v45 = vmul.f32 %v5143_v31, %v1212_v9  ;;  %v1901_v48 = vmul.f32 %v5340_v25, %v1258_v3  ;;  %v1223_v11 = vld [vmem:[%s6688_s2 + $0xa0] sm:$0xff] }
 0x3e8   :  { %v1740_v24 = vperm.slane %v1560_v38, %v5051_v52  ;;  %v1866_v23 = vmul.f32 %v5176_v2, %v1223_v11  ;;  %v1226_v38 = vld [vmem:[%s6688_s2 + $0xb8] sm:$0xff] }
 0x3e9   :  { %1931 = vadd.xlane.f32.xlu2 %v1930_v1  ;;  %2066 = vadd.xlane.f32.xlu0 %v2065_v34  ;;  %v2074_v56 = vsel %vm1926_vm8, %v1895_v10, 0.0  ;;  %v2083_v40 = vsel %vm1926_vm8, %v1898_v39, 0.0  ;;  %v1220_v34 = vld [vmem:[%s6688_s2 + $0x88] sm:$0xff]  ;;  %v1954_v62 = vsel %vm1926_vm8, %v1855_v45, 0.0  ;;  %v2092_v10 = vsel %vm1926_vm8, %v1901_v48, 0.0 }
 0x3ea   :  { %v1545_v32 = vpop.permute.xlu2 %1544 }
 0x3eb   :  { %v1539_v0 = vpop.permute.xlu1 %1538  ;;  %1952 = vadd.xlane.f32.xlu1 %v1951_v18  ;;  %v1731_v14 = vperm.slane %v1545_v32, %v5075_v5  ;;  %v1863_v18 = vmul.f32 %v5176_v2, %v1220_v34 }
 0x3ec   :  { %v1727_v17 = vperm.slane %v1539_v0, %v5056_v55 }
 0x3ee   :  { %v1728_v4 = vsel %vm1612_vm2, %v1727_v17, %v1726_v43  ;;  %v1215_v17 = vld [vmem:[%s6688_s2 + $0x60] sm:$0xff]  ;;  %v1569_v28 = vpop.permute.xlu0 %1568 }
 0x3ef   :  { %v1730_v60 = vsel %vm1616_vm3, %v1729_v7, %v1728_v4  ;;  %v1858_v43 = vmul.f32 %v5143_v31, %v1215_v17  ;;  %v1746_v7 = vperm.slane %v1569_v28, %v5075_v5 }
 0x3f0   :  { %v1732_v19 = vsel %vm1620_vm4, %v1731_v14, %v1730_v60  ;;  %v1264_v14 = vld [vmem:[%s6688_s2 + $0x1e8] sm:$0xff] }
 0x3f1   :  { %1937 = vadd.xlane.f32.xlu2 %v1936_v12  ;;  %2075 = vadd.xlane.f32.xlu0 %v2074_v56  ;;  %v1261_v12 = vld [vmem:[%s6688_s2 + $0x1d0] sm:$0xff]  ;;  %v1978_v56 = vsel %vm1926_vm8, %v1863_v18, 0.0  ;;  %v1963_v35 = vsel %vm1926_vm8, %v1858_v43, 0.0  ;;  %v1224_v43 = vld [vmem:[%s6688_s2 + $0xa8] sm:$0xff] }
 0x3f2   :  { %v1554_v61 = vpop.permute.xlu2 %1553 }
 0x3f3   :  { %v1548_v49 = vpop.permute.xlu1 %1547  ;;  %1961 = vadd.xlane.f32.xlu1 %v1960_v13  ;;  %v1737_v0 = vperm.slane %v1554_v61, %v5083_v30 }
 0x3f4   :  { %v1733_v37 = vperm.slane %v1548_v49, %v5072_v20 }
 0x3f6   :  { %v1734_v47 = vsel %vm1624_vm5, %v1733_v37, %v1732_v19  ;;  %v1218_v37 = vld [vmem:[%s6688_s2 + $0x78] sm:$0xff]  ;;  %v1578_v19 = vpop.permute.xlu0 %1577 }
 0x3f7   :  { %v1736_v32 = vsel %vm1628_vm6, %v1735_v63, %v1734_v47  ;;  %v1861_v47 = vmul.f32 %v5143_v31, %v1218_v37  ;;  %v1869_v63 = vmul.f32 %v5176_v2, %v1226_v38  ;;  %v1752_v45 = vperm.slane %v1578_v19, %v5083_v30  ;;  %v1221_v31 = vld [vmem:[%s6688_s2 + $0x90] sm:$0xff] }
 0x3f8   :  { %v5404_v15 = vsel %vm1632_vm7, %v1737_v0, %v1736_v32  ;;  %v1864_v17 = vmul.f32 %v5176_v2, %v1221_v31 }
 0x3f9   :  { %1946 = vadd.xlane.f32.xlu2 %v1945_v42  ;;  %2084 = vadd.xlane.f32.xlu0 %v2083_v40  ;;  %v1904_v49 = vmul.f32 %v5404_v15, %v1261_v12  ;;  %v1987_v40 = vsel %vm1926_vm8, %v1866_v23, 0.0  ;;  %v1972_v32 = vsel %vm1926_vm8, %v1861_v47, 0.0 }
 0x3fa   :  { %v1563_v22 = vpop.permute.xlu2 %1562  ;;  %v1981_v11 = vsel %vm1926_vm8, %v1864_v17, 0.0 }
 0x3fb   :  { %v1557_v1 = vpop.permute.xlu1 %1556  ;;  %1970 = vadd.xlane.f32.xlu1 %v1969_v44  ;;  %v1742_v61 = vperm.slane %v1563_v22, %v5056_v55  ;;  %v2101_v60 = vsel %vm1926_vm8, %v1904_v49, 0.0  ;;  %v1907_v22 = vmul.f32 %v5404_v15, %v1264_v14  ;;  %v1270_v49 = vld [vmem:[%s6688_s2 + $0x218] sm:$0xff] }
 0x3fc   :  { %v1739_v59 = vperm.slane %v1557_v1, %v5048_v29 }
 0x3fd   :  { %v2110_v18 = vsel %vm1926_vm8, %v1907_v22, 0.0 }
 0x3fe   :  { %v1741_v51 = vsel %vm1608_vm1, %v1740_v24, %v1739_v59  ;;  %v1267_v59 = vld [vmem:[%s6688_s2 + $0x200] sm:$0xff]  ;;  %v1229_v24 = vld [vmem:[%s6688_s2 + $0xd0] sm:$0xff] }
 0x3ff   :  { %v1743_v4 = vsel %vm1612_vm2, %v1742_v61, %v1741_v51 }
 0x401   :  { %1955 = vadd.xlane.f32.xlu2 %v1954_v62  ;;  %2093 = vadd.xlane.f32.xlu0 %v2092_v10  ;;  %v1996_v62 = vsel %vm1926_vm8, %v1869_v63, 0.0 }
 0x402   :  { %v1572_v6 = vpop.permute.xlu2 %1571 }
 0x403   :  { %v1566_v46 = vpop.permute.xlu1 %1565  ;;  %1979 = vadd.xlane.f32.xlu1 %v1978_v56  ;;  %v1748_v9 = vperm.slane %v1572_v6, %v5072_v20  ;;  %v1872_v56 = vmul.f32 %v5220_v50, %v1229_v24 }
 0x404   :  { %v1744_v13 = vperm.slane %v1566_v46, %v5064_v58  ;;  %v1587_v46 = vpop.permute.xlu0 %1586 }
 0x405   :  { %v2005_v6 = vsel %vm1926_vm8, %v1872_v56, 0.0  ;;  %v1230_v56 = vld [vmem:[%s6688_s2 + $0xd8] sm:$0xff] }
 0x406   :  { %v1745_v39 = vsel %vm1616_vm3, %v1744_v13, %v1743_v4 }
 0x407   :  { %v1747_v42 = vsel %vm1620_vm4, %v1746_v7, %v1745_v39  ;;  %v1232_v39 = vld [vmem:[%s6688_s2 + $0xe8] sm:$0xff]  ;;  %v1757_v7 = vperm.slane %v1587_v46, %v5056_v55 }
 0x408   :  { %v1749_v1 = vsel %vm1624_vm5, %v1748_v9, %v1747_v42  ;;  %v1875_v42 = vmul.f32 %v5220_v50, %v1232_v39 }
 0x409   :  { %1964 = vadd.xlane.f32.xlu2 %v1963_v35  ;;  %2102 = vadd.xlane.f32.xlu0 %v2101_v60  ;;  %v1867_v35 = vmul.f32 %v5176_v2, %v1224_v43  ;;  %v1227_v2 = vld [vmem:[%s6688_s2 + $0xc0] sm:$0xff] }
 0x40a   :  { %v1581_v48 = vpop.permute.xlu2 %1580  ;;  %v2014_v22 = vsel %vm1926_vm8, %v1875_v42, 0.0 }
 0x40b   :  { %v1575_v3 = vpop.permute.xlu1 %1574  ;;  %1988 = vadd.xlane.f32.xlu1 %v1987_v40  ;;  %v1754_v61 = vperm.slane %v1581_v48, %v5048_v29  ;;  %v1870_v48 = vmul.f32 %v5220_v50, %v1227_v2  ;;  %v6858_v29 = vld [vmem:[#allocation6_spill] sm:$0xff] }
 0x40c   :  { %v1750_v44 = vperm.slane %v1575_v3, %v5088_v57  ;;  %v1596_v9 = vpop.permute.xlu0 %1595  ;;  %v1990_v3 = vsel %vm1926_vm8, %v1867_v35, 0.0 }
 0x40d   :  { %v1999_v24 = vsel %vm1926_vm8, %v1870_v48, 0.0 }
 0x40e   :  { %v1751_v34 = vsel %vm1628_vm6, %v1750_v44, %v1749_v1  ;;  %v1273_v44 = vld [vmem:[%s6688_s2 + $0x230] sm:$0xff]  ;;  %v1763_v1 = vperm.slane %v1596_v9, %v5072_v20  ;;  %v1236_v9 = vld [vmem:[%s6688_s2 + $0x108] sm:$0xff] }
 0x40f   :  { %v5449_v0 = vsel %vm1632_vm7, %v1752_v45, %v1751_v34  ;;  %v1235_v45 = vld [vmem:[%s6688_s2 + $0x100] sm:$0xff] }
 0x410   :  { %v1910_v12 = vmul.f32 %v5449_v0, %v1267_v59  ;;  %v1913_v60 = vmul.f32 %v5449_v0, %v1270_v49 }
 0x411   :  { %1973 = vadd.xlane.f32.xlu2 %v1972_v32  ;;  %2111 = vadd.xlane.f32.xlu0 %v2110_v18  ;;  %v1916_v32 = vmul.f32 %v5449_v0, %v1273_v44 }
 0x412   :  { %v2119_v28 = vsel %vm1926_vm8, %v1910_v12, 0.0  ;;  %v1590_v13 = vpop.permute.xlu2 %1589  ;;  %v2128_v38 = vsel %vm1926_vm8, %v1913_v60, 0.0 }
 0x413   :  { %v1584_v10 = vpop.permute.xlu1 %1583  ;;  %1997 = vadd.xlane.f32.xlu1 %v1996_v62  ;;  %v1759_v40 = vperm.slane %v1590_v13, %v5064_v58  ;;  %v1878_v62 = vmul.f32 %v5263_v27, %v1235_v45  ;;  %v2137_v17 = vsel %vm1926_vm8, %v1916_v32, 0.0  ;;  %v1247_v45 = vld [vmem:[%s6688_s2 + $0x160] sm:$0xff] }
 0x414   :  { %v1755_v51 = vperm.slane %v1584_v10, %v5051_v52  ;;  %v1890_v32 = vmul.f32 %v5289_v33, %v1247_v45  ;;  %v4089_v45 = vld [vmem:[%s6687_s4 + $0x18] sm:$0x7] }
 0x415   :  { %v2023_v46 = vsel %vm1926_vm8, %v1878_v62, 0.0 }
 0x416   :  { %v1756_v4 = vsel %vm1608_vm1, %v1755_v51, %v1754_v61  ;;  %v1276_v51 = vld [vmem:[%s6688_s2 + $0x248] sm:$0xff]  ;;  %v1873_v61 = vmul.f32 %v5220_v50, %v1230_v56  ;;  %v2059_v62 = vsel %vm1926_vm8, %v1890_v32, 0.0  ;;  %v1254_v32 = vld [vmem:[%s6688_s2 + $0x198] sm:$0xff] }
 0x417   :  { %v1758_v37 = vsel %vm1612_vm2, %v1757_v7, %v1756_v4  ;;  %v1233_v4 = vld [vmem:[%s6688_s2 + $0xf0] sm:$0xff] }
 0x418   :  { %v1760_v19 = vsel %vm1616_vm3, %v1759_v40, %v1758_v37  ;;  %v2008_v49 = vsel %vm1926_vm8, %v1873_v61, 0.0  ;;  %v1241_v7 = vld [vmem:[%s6688_s2 + $0x130] sm:$0xff]  ;;  %v1876_v35 = vmul.f32 %v5220_v50, %v1233_v4  ;;  %v1282_v50 = vld [vmem:[%s6688_s2 + $0x278] sm:$0xff] }
 0x419   :  { %1982 = vadd.xlane.f32.xlu2 %v1981_v11  ;;  %2120 = vadd.xlane.f32.xlu0 %v2119_v28  ;;  %v5520_v11 = vpop.xlane.xlu0 %1928  ;;  %v1238_v28 = vld [vmem:[%s6688_s2 + $0x118] sm:$0xff] }
 0x41a   :  { %v1599_v34 = vpop.permute.xlu2 %1598  ;;  %v1881_v43 = vmul.f32 %v5263_v27, %v1238_v28  ;;  %v2017_v42 = vsel %vm1926_vm8, %v1876_v35, 0.0  ;;  %v1245_v28 = vld [vmem:[%s6688_s2 + $0x150] sm:$0xff] }
 0x41b   :  { %v1593_v23 = vpop.permute.xlu1 %1592  ;;  %2006 = vadd.xlane.f32.xlu1 %v2005_v6  ;;  %v1765_v59 = vperm.slane %v1599_v34, %v5088_v57  ;;  %v1239_v34 = vld [vmem:[%s6688_s2 + $0x120] sm:$0xff] }
 0x41c   :  { %v1761_v14 = vperm.slane %v1593_v23, %v5075_v5  ;;  %v1279_v23 = vld [vmem:[%s6688_s2 + $0x260] sm:$0xff]  ;;  %v2032_v39 = vsel %vm1926_vm8, %v1881_v43, 0.0  ;;  %v1882_v48 = vmul.f32 %v5263_v27, %v1239_v34 }
 0x41e   :  { %v1762_v47 = vsel %vm1620_vm4, %v1761_v14, %v1760_v19  ;;  %v1884_v14 = vmul.f32 %v5263_v27, %v1241_v7  ;;  %v1879_v19 = vmul.f32 %v5263_v27, %v1236_v9  ;;  %v1256_v7 = vld [vmem:[%s6688_s2 + $0x1a8] sm:$0xff] }
 0x41f   :  { %v1764_v18 = vsel %vm1624_vm5, %v1763_v1, %v1762_v47 }
 0x420   :  { %v1766_v10 = vsel %vm1628_vm6, %v1765_v59, %v1764_v18  ;;  %v2035_v18 = vsel %vm1926_vm8, %v1882_v48, 0.0  ;;  %v1242_v59 = vld [vmem:[%s6688_s2 + $0x138] sm:$0xff]  ;;  %v5648_v48 = vperm.slane %v4089_v45, 1 }
 0x421   :  { %1991 = vadd.xlane.f32.xlu2 %v1990_v3  ;;  %2129 = vadd.xlane.f32.xlu0 %v2128_v38  ;;  %v5542_v37 = vpop.xlane.xlu0 %1940  ;;  %v2041_v3 = vsel %vm1926_vm8, %v1884_v14, 0.0  ;;  %v1244_v38 = vld [vmem:[%s6688_s2 + $0x148] sm:$0xff] }
 0x422   :  { %v1887_v44 = vmul.f32 %v5289_v33, %v1244_v38 }
 0x423   :  { %v1602_v63 = vpop.permute.xlu1 %1601  ;;  %2015 = vadd.xlane.f32.xlu1 %v2014_v22  ;;  %v2026_v22 = vsel %vm1926_vm8, %v1879_v19, 0.0  ;;  %v1259_v19 = vld [vmem:[%s6688_s2 + $0x1c0] sm:$0xff] }
 0x424   :  { %v1767_v31 = vperm.slane %v1602_v63, %v5083_v30  ;;  %v2050_v63 = vsel %vm1926_vm8, %v1887_v44, 0.0 }
 0x426   :  { %v5511_v12 = vsel %vm1632_vm7, %v1767_v31, %v1766_v10  ;;  %v1250_v10 = vld [vmem:[%s6688_s2 + $0x178] sm:$0xff] }
 0x427   :  { %v1919_v13 = vmul.f32 %v5511_v12, %v1276_v51  ;;  %v1922_v60 = vmul.f32 %v5511_v12, %v1279_v23  ;;  %v1925_v2 = vmul.f32 %v5511_v12, %v1282_v50  ;;  %v4087_v51 = vld [vmem:[%s6687_s4 + $0x14] sm:$0x7]  ;;  %v1248_v23 = vld [vmem:[%s6688_s2 + $0x168] sm:$0xff]  ;;  %v4088_v50 = vld [vmem:[%s6687_s4 + $0x4] sm:$0x7] }
 0x429   :  { %2000 = vadd.xlane.f32.xlu2 %v1999_v24  ;;  %2138 = vadd.xlane.f32.xlu0 %v2137_v17  ;;  %v2146_v6 = vsel %vm1926_vm8, %v1919_v13, 0.0  ;;  %v2155_v40 = vsel %vm1926_vm8, %v1922_v60, 0.0  ;;  %v5560_v47 = vpop.xlane.xlu0 %1949  ;;  %v2164_v1 = vsel %vm1926_vm8, %v1925_v2, 0.0  ;;  %v1885_v24 = vmul.f32 %v5263_v27, %v1242_v59  ;;  %v1253_v27 = vld [vmem:[%s6688_s2 + $0x190] sm:$0xff]  ;;  %v1262_v59 = vld [vmem:[%s6688_s2 + $0x1d8] sm:$0xff] }
 0x42a   :  { %v1893_v17 = vmul.f32 %v5289_v33, %v1250_v10  ;;  %v1891_v60 = vmul.f32 %v5289_v33, %v1248_v23  ;;  %v1897_v10 = vmul.f32 %v5340_v25, %v1254_v32 }
 0x42b   :  { %2024 = vadd.xlane.f32.xlu1 %v2023_v46  ;;  %v2044_v56 = vsel %vm1926_vm8, %v1885_v24, 0.0  ;;  %v5589_v46 = vperm.slane %v4087_v51, 1  ;;  %v1905_v24 = vmul.f32 %v5404_v15, %v1262_v59  ;;  %v1257_v51 = vld [vmem:[%s6688_s2 + $0x1b0] sm:$0xff] }
 0x42c   :  { %v2068_v61 = vsel %vm1926_vm8, %v1893_v17, 0.0  ;;  %v2062_v9 = vsel %vm1926_vm8, %v1891_v60, 0.0  ;;  %v2080_v17 = vsel %vm1926_vm8, %v1897_v10, 0.0 }
 0x431   :  { %2009 = vadd.xlane.f32.xlu2 %v2008_v49  ;;  %2147 = vadd.xlane.f32.xlu0 %v2146_v6  ;;  %v5574_v31 = vpop.xlane.xlu0 %1958  ;;  %v1888_v49 = vmul.f32 %v5289_v33, %v1245_v28  ;;  %v1896_v6 = vmul.f32 %v5340_v25, %v1253_v27  ;;  %v1251_v33 = vld [vmem:[%s6688_s2 + $0x180] sm:$0xff]  ;;  %v1265_v27 = vld [vmem:[%s6688_s2 + $0x1f0] sm:$0xff] }
 0x432   :  { %v1894_v44 = vmul.f32 %v5340_v25, %v1251_v33 }
 0x433   :  { %2033 = vadd.xlane.f32.xlu1 %v2032_v39  ;;  %v2053_v4 = vsel %vm1926_vm8, %v1888_v49, 0.0  ;;  %v2077_v39 = vsel %vm1926_vm8, %v1896_v6, 0.0  ;;  %v1900_v6 = vmul.f32 %v5340_v25, %v1257_v51  ;;  %v1274_v51 = vld [vmem:[%s6688_s2 + $0x238] sm:$0xff] }
 0x435   :  { %v2089_v23 = vsel %vm1926_vm8, %v1900_v6, 0.0  ;;  %v1917_v6 = vmul.f32 %v5449_v0, %v1274_v51 }
 0x439   :  { %2018 = vadd.xlane.f32.xlu2 %v2017_v42  ;;  %2156 = vadd.xlane.f32.xlu0 %v2155_v40  ;;  %v5595_v13 = vpop.xlane.xlu0 %1967  ;;  %v1899_v40 = vmul.f32 %v5340_v25, %v1256_v7  ;;  %v1268_v25 = vld [vmem:[%s6688_s2 + $0x208] sm:$0xff] }
 0x43a   :  { %v1911_v33 = vmul.f32 %v5449_v0, %v1268_v25 }
 0x43b   :  { %2042 = vadd.xlane.f32.xlu1 %v2041_v3  ;;  %v5626_v3 = vperm.slane %v4088_v50, 1  ;;  %v2086_v38 = vsel %vm1926_vm8, %v1899_v40, 0.0 }
 0x441   :  { %2027 = vadd.xlane.f32.xlu2 %v2026_v22  ;;  %2165 = vadd.xlane.f32.xlu0 %v2164_v1  ;;  %v5616_v14 = vpop.xlane.xlu0 %1976  ;;  %v1902_v22 = vmul.f32 %v5404_v15, %v1259_v19  ;;  %v1263_v19 = vld [vmem:[%s6688_s2 + $0x1e0] sm:$0xff] }
 0x442   :  { %v1906_v45 = vmul.f32 %v5404_v15, %v1263_v19 }
 0x443   :  { %2051 = vadd.xlane.f32.xlu1 %v2050_v63  ;;  %v2071_v63 = vsel %vm1926_vm8, %v1894_v44, 0.0  ;;  %v2122_v44 = vsel %vm1926_vm8, %v1911_v33, 0.0  ;;  %v1277_v33 = vld [vmem:[%s6688_s2 + $0x250] sm:$0xff] }
 0x444   :  { %v2107_v10 = vsel %vm1926_vm8, %v1906_v45, 0.0 }
 0x449   :  { %2036 = vadd.xlane.f32.xlu2 %v2035_v18  ;;  %v5640_v1 = vpop.xlane.xlu0 %1985  ;;  %v2095_v18 = vsel %vm1926_vm8, %v1902_v22, 0.0  ;;  %v1271_v22 = vld [vmem:[%s6688_s2 + $0x220] sm:$0xff] }
 0x44a   :  { %6837 = vst [vmem:[#allocation41_spill] sm:$0xff] %v5640_v1  ;;  %v1914_v59 = vmul.f32 %v5449_v0, %v1271_v22 }
 0x44b   :  { %2060 = vadd.xlane.f32.xlu1 %v2059_v62 }
 0x44e   :  { %v5600_v43 = vpop.xlane.xlu1 %1934 }
 0x451   :  { %2045 = vadd.xlane.f32.xlu2 %v2044_v56  ;;  %v5663_v56 = vpop.xlane.xlu0 %1994 }
 0x452   :  { %6838 = vst [vmem:[#allocation11_spill] sm:$0xff] %v5663_v56 }
 0x453   :  { %2069 = vadd.xlane.f32.xlu1 %v2068_v61  ;;  %v2104_v61 = vsel %vm1926_vm8, %v1905_v24, 0.0  ;;  %v1266_v24 = vld [vmem:[%s6688_s2 + $0x1f8] sm:$0xff] }
 0x455   :  { %2441 = vperm.xlu0 %4002, %v5589_v46  }
 0x456   :  { %v5619_v42 = vpop.xlane.xlu1 %1943 }
 0x459   :  { %2054 = vadd.xlane.f32.xlu2 %v2053_v4  ;;  %v1908_v4 = vmul.f32 %v5404_v15, %v1265_v27  ;;  %v5684_v60 = vpop.xlane.xlu0 %2003  ;;  %v1909_v27 = vmul.f32 %v5404_v15, %v1266_v24  ;;  %v1272_v24 = vld [vmem:[%s6688_s2 + $0x228] sm:$0xff] }
 0x45a   :  { %6839 = vst [vmem:[#allocation55_spill] sm:$0xff] %v5684_v60 }
 0x45b   :  { %2078 = vadd.xlane.f32.xlu1 %v2077_v39  ;;  %v1260_v39 = vld [vmem:[%s6688_s2 + $0x1c8] sm:$0xff]  ;;  %v2113_v7 = vsel %vm1926_vm8, %v1908_v4, 0.0 }
 0x45c   :  { %v5613_v35 = vpop.xlane.xlu2 %1931  ;;  %v1903_v50 = vmul.f32 %v5404_v15, %v1260_v39  ;;  %v2116_v39 = vsel %vm1926_vm8, %v1909_v27, 0.0  ;;  %v1269_v15 = vld [vmem:[%s6688_s2 + $0x210] sm:$0xff]  ;;  %v1280_v27 = vld [vmem:[%s6688_s2 + $0x268] sm:$0xff] }
 0x45d   :  { %4003 = vset.pattern.permute.xlu0 %v4626_v53  ;;  %v1912_v19 = vmul.f32 %v5449_v0, %v1269_v15 }
 0x45e   :  { %v5642_v34 = vpop.xlane.xlu1 %1952 }
 0x45f   :  { %v2125_v22 = vsel %vm1926_vm8, %v1912_v19, 0.0 }
 0x461   :  { %2063 = vadd.xlane.f32.xlu2 %v2062_v9  ;;  %v5707_v32 = vpop.xlane.xlu0 %2012 }
 0x462   :  { %6841 = vst [vmem:[#allocation53_spill] sm:$0xff] %v5707_v32 }
 0x463   :  { %2087 = vadd.xlane.f32.xlu1 %v2086_v38  ;;  %v2098_v38 = vsel %vm1926_vm8, %v1903_v50, 0.0  ;;  %v2140_v50 = vsel %vm1926_vm8, %v1917_v6, 0.0 }
 0x464   :  { %v5635_v2 = vpop.xlane.xlu2 %1937 }
 0x465   :  { %2227 = vperm.xlu0 %4003, %v5626_v3  }
 0x466   :  { %v5668_v28 = vpop.xlane.xlu1 %1961 }
 0x469   :  { %2072 = vadd.xlane.f32.xlu2 %v2071_v63  ;;  %v5726_v4 = vpop.xlane.xlu0 %2021 }
 0x46a   :  { %6843 = vst [vmem:[#allocation12_spill] sm:$0xff] %v5726_v4 }
 0x46b   :  { %2096 = vadd.xlane.f32.xlu1 %v2095_v18 }
 0x46c   :  { %v5657_v62 = vpop.xlane.xlu2 %1946 }
 0x46d   :  { %2472 = vperm.xlu0 %4003, %v5648_v48  }
 0x46e   :  { %v5689_v40 = vpop.xlane.xlu1 %1970 }
 0x46f   :  { %6840 = vst [vmem:[#allocation10_spill] sm:$0xff] %v5689_v40 }
 0x471   :  { %2081 = vadd.xlane.f32.xlu2 %v2080_v17  ;;  %v2131_v17 = vsel %vm1926_vm8, %v1914_v59, 0.0  ;;  %v5749_v45 = vpop.xlane.xlu0 %2030  ;;  %v4091_v59 = vld [vmem:[%s6687_s4 + $0x1c] sm:$0x7] }
 0x472   :  { %6845 = vst [vmem:[#allocation15_spill] sm:$0xff] %v5749_v45 }
 0x473   :  { %2105 = vadd.xlane.f32.xlu1 %v2104_v61 }
 0x474   :  { %v5674_v49 = vpop.xlane.xlu2 %1955 }
 0x475   :  { %4008 = vset.pattern.permute.xlu0 %v4610_v41 }
 0x476   :  { %v5710_v18 = vpop.xlane.xlu1 %1979 }
 0x477   :  { %6842 = vst [vmem:[#allocation13_spill] sm:$0xff] %v5710_v18 }
 0x479   :  { %2090 = vadd.xlane.f32.xlu2 %v2089_v23  ;;  %v5775_v19 = vpop.xlane.xlu0 %2039 }
 0x47a   :  { %6847 = vst [vmem:[#allocation57_spill] sm:$0xff] %v5775_v19 }
 0x47b   :  { %2114 = vadd.xlane.f32.xlu1 %v2113_v7  ;;  %v4090_v7 = vld [vmem:[%s6687_s4 + $0x8] sm:$0x7] }
 0x47c   :  { %v5691_v9 = vpop.xlane.xlu2 %1964  ;;  %v5734_v25 = vperm.slane %v4090_v7, 1  ;;  %v1923_v7 = vmul.f32 %v5511_v12, %v1280_v27  ;;  %v1278_v27 = vld [vmem:[%s6688_s2 + $0x258] sm:$0xff] }
 0x47d   :  { %2257 = vperm.xlu0 %4008, %v5626_v3  }
 0x47e   :  { %v5728_v23 = vpop.xlane.xlu1 %1988 }
 0x47f   :  { %6844 = vst [vmem:[#allocation56_spill] sm:$0xff] %v5728_v23 }
 0x481   :  { %2099 = vadd.xlane.f32.xlu2 %v2098_v38 }
 0x483   :  { %2123 = vadd.xlane.f32.xlu1 %v2122_v44  ;;  %v1920_v44 = vmul.f32 %v5511_v12, %v1277_v33  ;;  %v2158_v33 = vsel %vm1926_vm8, %v1923_v7, 0.0  ;;  %v1921_v7 = vmul.f32 %v5511_v12, %v1278_v27 }
 0x484   :  { %v5704_v63 = vpop.xlane.xlu2 %1973 }
 0x485   :  { %2502 = vperm.xlu0 %4008, %v5648_v48   ;;  %v2149_v51 = vsel %vm1926_vm8, %v1920_v44, 0.0 }
 0x489   :  { %2108 = vadd.xlane.f32.xlu2 %v2107_v10  ;;  %v5754_v10 = vperm.slane %v4091_v59, 1 }
 0x48b   :  { %2132 = vadd.xlane.f32.xlu1 %v2131_v17  ;;  %v5759_v17 = vpop.xlane.xlu1 %1997 }
 0x48c   :  { %v5721_v61 = vpop.xlane.xlu2 %1982  ;;  %6846 = vst [vmem:[#allocation14_spill] sm:$0xff] %v5759_v17 }
 0x48d   :  { %4013 = vset.pattern.permute.xlu0 %v4498_v21 }
 0x491   :  { %2117 = vadd.xlane.f32.xlu2 %v2116_v39  ;;  %v1915_v39 = vmul.f32 %v5449_v0, %v1272_v24  ;;  %v4092_v24 = vld [vmem:[%s6687_s4 + $0xc] sm:$0x7] }
 0x493   :  { %2141 = vadd.xlane.f32.xlu1 %v2140_v50  ;;  %v2134_v15 = vsel %vm1926_vm8, %v1915_v39, 0.0  ;;  %v1275_v50 = vld [vmem:[%s6688_s2 + $0x240] sm:$0xff]  ;;  %v5777_v44 = vpop.xlane.xlu1 %2006 }
 0x494   :  { %v5743_v38 = vpop.xlane.xlu2 %1991  ;;  %6848 = vst [vmem:[#allocation17_spill] sm:$0xff] %v5777_v44  ;;  %v1918_v0 = vmul.f32 %v5511_v12, %v1275_v50 }
 0x495   :  { %2288 = vperm.xlu0 %4013, %v5734_v25  }
 0x496   :  { %v2143_v59 = vsel %vm1926_vm8, %v1918_v0, 0.0  ;;  %v4093_v0 = vld [vmem:[%s6687_s4 + $0x20] sm:$0x7] }
 0x499   :  { %2126 = vadd.xlane.f32.xlu2 %v2125_v22 }
 0x49b   :  { %2150 = vadd.xlane.f32.xlu1 %v2149_v51  ;;  %v5787_v51 = vperm.slane %v4092_v24, 1  ;;  %v5798_v50 = vpop.xlane.xlu1 %2015  ;;  %v1281_v24 = vld [vmem:[%s6688_s2 + $0x270] sm:$0xff] }
 0x49c   :  { %v5765_v6 = vpop.xlane.xlu2 %2000  ;;  %6850 = vst [vmem:[#allocation58_spill] sm:$0xff] %v5798_v50  ;;  %v1924_v30 = vmul.f32 %v5511_v12, %v1281_v24 }
 0x49d   :  { %2533 = vperm.xlu0 %4013, %v5754_v10  }
 0x4a1   :  { %2135 = vadd.xlane.f32.xlu2 %v2134_v15  ;;  %v5795_v15 = vpop.xlane.xlu0 %2048 }
 0x4a2   :  { %6849 = vst [vmem:[#allocation16_spill] sm:$0xff] %v5795_v15 }
 0x4a3   :  { %2159 = vadd.xlane.f32.xlu1 %v2158_v33  ;;  %v2152_v33 = vsel %vm1926_vm8, %v1921_v7, 0.0  ;;  %v5815_v7 = vpop.xlane.xlu1 %2024 }
 0x4a4   :  { %v5779_v22 = vpop.xlane.xlu2 %2009  ;;  %6852 = vst [vmem:[#allocation44_spill] sm:$0xff] %v5815_v7 }
 0x4a5   :  { %4018 = vset.pattern.permute.xlu0 %v4480_v8 }
 0x4a9   :  { %2144 = vadd.xlane.f32.xlu2 %v2143_v59  ;;  %v5804_v59 = vperm.slane %v4093_v0, 1  ;;  %v5813_v57 = vpop.xlane.xlu0 %2057  ;;  %v4094_v0 = vld [vmem:[%s6687_s4] sm:$0x7] }
 0x4aa   :  { %6851 = vst [vmem:[#allocation19_spill] sm:$0xff] %v5813_v57  ;;  %v2167_v20 = vperm.slane %v4094_v0, 1 }
 0x4ab   :  { %v5826_v24 = vpop.xlane.xlu1 %2033 }
 0x4ac   :  { %v5792_v39 = vpop.xlane.xlu2 %2018  ;;  %6854 = vst [vmem:[#allocation21_spill] sm:$0xff] %v5826_v24  ;;  %v4095_v24 = vld [vmem:[%s6687_s4 + $0x10] sm:$0x7] }
 0x4ad   :  { %2319 = vperm.xlu0 %4018, %v5787_v51  }
 0x4b1   :  { %2153 = vadd.xlane.f32.xlu2 %v2152_v33  ;;  %v2161_v33 = vsel %vm1926_vm8, %v1924_v30, 0.0  ;;  %v5824_v12 = vpop.xlane.xlu0 %2066 }
 0x4b2   :  { %6853 = vst [vmem:[#allocation18_spill] sm:$0xff] %v5824_v12 }
 0x4b3   :  { %v5834_v55 = vpop.xlane.xlu1 %2042 }
 0x4b4   :  { %v5809_v27 = vpop.xlane.xlu2 %2027  ;;  %6856 = vst [vmem:[#allocation20_spill] sm:$0xff] %v5834_v55 }
 0x4b5   :  { %2564 = vperm.xlu0 %4018, %v5804_v59  }
 0x4b9   :  { %2162 = vadd.xlane.f32.xlu2 %v2161_v33  ;;  %v5832_v30 = vpop.xlane.xlu0 %2075 }
 0x4ba   :  { %6855 = vst [vmem:[#allocation50_spill] sm:$0xff] %v5832_v30 }
 0x4bb   :  { %v5845_v52 = vpop.xlane.xlu1 %2051 }
 0x4bc   :  { %2172 = vperm.xlu1 %3966, %v2167_v20   ;;  %v5821_v5 = vpop.xlane.xlu2 %2036  ;;  %6859 = vst [vmem:[#allocation22_spill] sm:$0xff] %v5845_v52 }
 0x4bd   :  { %4023 = vset.pattern.permute.xlu0 %v4574_v16 }
 0x4c1   :  { %v5842_v12 = vpop.xlane.xlu0 %2084 }
 0x4c2   :  { %6857 = vst [vmem:[#allocation23_spill] sm:$0xff] %v5842_v12  ;;  %v5857_v12 = vperm.slane %v4095_v24, 1 }
 0x4c3   :  { %v5852_v57 = vpop.xlane.xlu1 %2060 }
 0x4c4   :  { %3968 = vset.pattern.permute.xlu1 %v4498_v21  ;;  %v5829_v58 = vpop.xlane.xlu2 %2045  ;;  %6861 = vst [vmem:[#allocation24_spill] sm:$0xff] %v5852_v57 }
 0x4c5   :  { %2349 = vperm.xlu0 %4023, %v5787_v51  }
 0x4c9   :  { %v5850_v55 = vpop.xlane.xlu0 %2093 }
 0x4ca   :  { %6860 = vst [vmem:[#allocation25_spill] sm:$0xff] %v5850_v55  ;;  %v4096_v55 = vld [vmem:[%s6687_s4 + $0x24] sm:$0x7] }
 0x4cb   :  { %v5869_v57 = vperm.slane %v4096_v55, 1  ;;  %v5871_v7 = vpop.xlane.xlu1 %2069 }
 0x4cc   :  { %2190 = vperm.xlu1 %3968, %v2167_v20   ;;  %v5836_v33 = vpop.xlane.xlu2 %2054  ;;  %6863 = vst [vmem:[#allocation26_spill] sm:$0xff] %v5871_v7 }
 0x4cd   :  { %2594 = vperm.xlu0 %4023, %v5804_v59  }
 0x4d1   :  { %2178 = vperm.xlu2 %3967, %v2167_v20   ;;  %v5863_v15 = vpop.xlane.xlu0 %2102 }
 0x4d2   :  { %6862 = vst [vmem:[#allocation27_spill] sm:$0xff] %v5863_v15 }
 0x4d3   :  { %v5878_v50 = vpop.xlane.xlu1 %2078 }
 0x4d4   :  { %3970 = vset.pattern.permute.xlu1 %v4574_v16  ;;  %v5840_v0 = vpop.xlane.xlu2 %2063  ;;  %6865 = vst [vmem:[#allocation29_spill] sm:$0xff] %v5878_v50 }
 0x4d5   :  { %4028 = vset.pattern.permute.xlu0 %v6858_v29 }
 0x4d9   :  { %3969 = vset.pattern.permute.xlu2 %v4584_v26  ;;  %v5876_v19 = vpop.xlane.xlu0 %2111 }
 0x4da   :  { %6864 = vst [vmem:[#allocation51_spill] sm:$0xff] %v5876_v19 }
 0x4dc   :  { %2202 = vperm.xlu1 %3970, %v2167_v20   ;;  %v5848_v30 = vpop.xlane.xlu2 %2072 }
 0x4dd   :  { %2184 = vperm.xlu0 %4028, %v2167_v20  }
 0x4e1   :  { %2196 = vperm.xlu2 %3969, %v2167_v20   ;;  %v5888_v7 = vpop.xlane.xlu0 %2120 }
 0x4e2   :  { %6866 = vst [vmem:[#allocation28_spill] sm:$0xff] %v5888_v7 }
 0x4e4   :  { %3972 = vset.pattern.permute.xlu1 %v4601_v36  ;;  %v5860_v52 = vpop.xlane.xlu2 %2081 }
 0x4e5   :  { %2380 = vperm.xlu0 %4028, %v5857_v12  }
 0x4e9   :  { %3971 = vset.pattern.permute.xlu2 %v4610_v41  ;;  %v5898_v50 = vpop.xlane.xlu0 %2129 }
 0x4ea   :  { %6868 = vst [vmem:[#allocation52_spill] sm:$0xff] %v5898_v50 }
 0x4ec   :  { %2214 = vperm.xlu1 %3972, %v2167_v20   ;;  %v5873_v24 = vpop.xlane.xlu2 %2090 }
 0x4ed   :  { %2625 = vperm.xlu0 %4028, %v5869_v57  }
 0x4f1   :  { %2208 = vperm.xlu2 %3971, %v2167_v20   ;;  %v5891_v20 = vpop.xlane.xlu1 %2087 }
 0x4f2   :  { %6867 = vst [vmem:[#allocation31_spill] sm:$0xff] %v5891_v20  ;;  %v5907_v20 = vpop.xlane.xlu0 %2138 }
 0x4f3   :  { %6870 = vst [vmem:[#allocation33_spill] sm:$0xff] %v5907_v20 }
 0x4f4   :  { %3974 = vset.pattern.permute.xlu1 %v6858_v29  ;;  %v5881_v15 = vpop.xlane.xlu2 %2099 }
 0x4f5   :  { %4033 = vset.pattern.permute.xlu0 %v4601_v36 }
 0x4f9   :  { %3973 = vset.pattern.permute.xlu2 %v4480_v8  ;;  %v5900_v45 = vpop.xlane.xlu1 %2096 }
 0x4fa   :  { %6869 = vst [vmem:[#allocation30_spill] sm:$0xff] %v5900_v45  ;;  %v5916_v50 = vpop.xlane.xlu0 %2147 }
 0x4fb   :  { %6872 = vst [vmem:[#allocation35_spill] sm:$0xff] %v5916_v50 }
 0x4fc   :  { %2233 = vperm.xlu1 %3974, %v5626_v3   ;;  %v5886_v55 = vpop.xlane.xlu2 %2108 }
 0x4fd   :  { %2410 = vperm.xlu0 %4033, %v5857_v12  }
 0x501   :  { %2221 = vperm.xlu2 %3973, %v5626_v3   ;;  %v5910_v44 = vpop.xlane.xlu1 %2105 }
 0x502   :  { %6871 = vst [vmem:[#allocation32_spill] sm:$0xff] %v5910_v44  ;;  %v5927_v44 = vpop.xlane.xlu0 %2156 }
 0x503   :  { %6876 = vst [vmem:[#allocation54_spill] sm:$0xff] %v5927_v44 }
 0x504   :  { %3976 = vset.pattern.permute.xlu1 %v4584_v26  ;;  %v5895_v19 = vpop.xlane.xlu2 %2117 }
 0x505   :  { %2655 = vperm.xlu0 %4033, %v5869_v57  }
 0x509   :  { %3975 = vset.pattern.permute.xlu2 %v4498_v21  ;;  %v5918_v45 = vpop.xlane.xlu1 %2114 }
 0x50a   :  { %6873 = vst [vmem:[#allocation34_spill] sm:$0xff] %v5918_v45  ;;  %v5935_v45 = vpop.xlane.xlu0 %2165 }
 0x50b   :  { %6879 = vst [vmem:[#allocation43_spill] sm:$0xff] %v5935_v45 }
 0x50c   :  { %2245 = vperm.xlu1 %3976, %v5626_v3   ;;  %v5904_v7 = vpop.xlane.xlu2 %2126 }
 0x50d   :  { %4040 = vset.pattern.permute.xlu0 %v6770_v54 }
 0x511   :  { %2239 = vperm.xlu2 %3975, %v5626_v3   ;;  %v5929_v32 = vpop.xlane.xlu1 %2123 }
 0x512   :  { %6877 = vst [vmem:[#allocation40_spill] sm:$0xff] %v5929_v32 }
 0x514   :  { %3978 = vset.pattern.permute.xlu1 %v4601_v36  ;;  %v5913_v4 = vpop.xlane.xlu2 %2135 }
 0x519   :  { %3977 = vset.pattern.permute.xlu2 %v4574_v16  ;;  %v5937_v23 = vpop.xlane.xlu1 %2132 }
 0x51a   :  { %6880 = vst [vmem:[#allocation59_spill] sm:$0xff] %v5937_v23 }
 0x51c   :  { %2263 = vperm.xlu1 %3978, %v5626_v3   ;;  %v5921_v17 = vpop.xlane.xlu2 %2144 }
 0x51d   :  { %6874 = vst [vmem:[#allocation37_spill] sm:$0xff] %v5921_v17 }
 0x521   :  { %2251 = vperm.xlu2 %3977, %v5626_v3   ;;  %v5946_v44 = vpop.xlane.xlu1 %2141 }
 0x522   :  { %6882 = vst [vmem:[#allocation46_spill] sm:$0xff] %v5946_v44 }
 0x524   :  { %3980 = vset.pattern.permute.xlu1 %v4626_v53  ;;  %v5925_v20 = vpop.xlane.xlu2 %2153 }
 0x525   :  { %6875 = vst [vmem:[#allocation36_spill] sm:$0xff] %v5925_v20  ;;  %v5943_v20 = vpop.permute.xlu0 %2441 }
 0x526   :  { %6881 = vst [vmem:[#allocation42_spill] sm:$0xff] %v5943_v20 }
 0x529   :  { %3979 = vset.pattern.permute.xlu2 %v4480_v8  ;;  %v5952_v60 = vpop.xlane.xlu1 %2150 }
 0x52a   :  { %6883 = vst [vmem:[#allocation45_spill] sm:$0xff] %v5952_v60 }
 0x52c   :  { %2276 = vperm.xlu1 %3980, %v5734_v25   ;;  %v5933_v50 = vpop.xlane.xlu2 %2162 }
 0x52d   :  { %6878 = vst [vmem:[#allocation39_spill] sm:$0xff] %v5933_v50  ;;  %v2228_v17 = vpop.permute.xlu0 %2227 }
 0x52e   :  { %v2746_v23 = vadd.f32 %v2228_v17, %v5674_v49 }
 0x530   :  { %v2826_v20 = vmax.f32 %v2746_v23, 0.0 }
 0x531   :  { %2270 = vperm.xlu2 %3979, %v5734_v25   ;;  %v5957_v44 = vpop.xlane.xlu1 %2159 }
 0x532   :  { %6884 = vst [vmem:[#allocation48_spill] sm:$0xff] %v5957_v44 }
 0x534   :  { %3982 = vset.pattern.permute.xlu1 %v4584_v26  ;;  %v5941_v3 = vpop.permute.xlu2 %2178 }
 0x535   :  { %v5987_v60 = vpop.permute.xlu0 %2472 }
 0x536   :  { %6885 = vst [vmem:[#allocation47_spill] sm:$0xff] %v5987_v60 }
 0x539   :  { %3981 = vset.pattern.permute.xlu2 %v6858_v29 }
 0x53c   :  { %2294 = vperm.xlu1 %3982, %v5734_v25   ;;  %v2197_v32 = vpop.permute.xlu2 %2196 }
 0x53d   :  { %v2741_v50 = vadd.f32 %v2197_v32, %v5542_v37  ;;  %v5961_v37 = vpop.permute.xlu1 %2172  ;;  %v5993_v56 = vpop.permute.xlu0 %2257 }
 0x53e   :  { %6887 = vst [vmem:[#allocation6_spill] sm:$0xff] %v5993_v56 }
 0x53f   :  { %v2821_v45 = vmax.f32 %v2741_v50, 0.0 }
 0x541   :  { %2282 = vperm.xlu2 %3981, %v5734_v25   ;;  %3000 = vperm.xlu0 %4040, %v2821_v45  }
 0x544   :  { %3984 = vset.pattern.permute.xlu1 %v4610_v41 }
 0x545   :  { %v5965_v49 = vpop.permute.xlu1 %2190 }
 0x549   :  { %3983 = vset.pattern.permute.xlu2 %v4574_v16  ;;  %3015 = vperm.xlu0 %4040, %v2826_v20  }
 0x54b   :  { %v5976_v45 = vpop.permute.xlu2 %2208 }
 0x54c   :  { %2306 = vperm.xlu1 %3984, %v5734_v25  }
 0x54e   :  { %v5969_v32 = vpop.permute.xlu1 %2202 }
 0x551   :  { %2300 = vperm.xlu2 %3983, %v5734_v25  }
 0x554   :  { %3986 = vset.pattern.permute.xlu1 %v4626_v53 }
 0x559   :  { %3985 = vset.pattern.permute.xlu2 %v4601_v36 }
 0x55c   :  { %2325 = vperm.xlu1 %3986, %v5787_v51  }
 0x55e   :  { %v5973_v23 = vpop.permute.xlu1 %2214 }
 0x561   :  { %2312 = vperm.xlu2 %3985, %v5734_v25   ;;  %v5982_v25 = vpop.permute.xlu2 %2221 }
 0x564   :  { %3988 = vset.pattern.permute.xlu1 %v4498_v21 }
 0x569   :  { %3987 = vset.pattern.permute.xlu2 %v6858_v29 }
 0x56b   :  { %v5989_v18 = vpop.permute.xlu2 %2239 }
 0x56c   :  { %2337 = vperm.xlu1 %3988, %v5787_v51   ;;  %6886 = vst [vmem:[#allocation49_spill] sm:$0xff] %v5989_v18 }
 0x56e   :  { %v5979_v17 = vpop.permute.xlu1 %2233 }
 0x571   :  { %2331 = vperm.xlu2 %3987, %v5787_v51  }
 0x574   :  { %3990 = vset.pattern.permute.xlu1 %v4610_v41 }
 0x579   :  { %3989 = vset.pattern.permute.xlu2 %v4584_v26 }
 0x57b   :  { %v5995_v40 = vpop.permute.xlu2 %2251 }
 0x57c   :  { %2355 = vperm.xlu1 %3990, %v5787_v51  }
 0x57e   :  { %v2246_v50 = vpop.permute.xlu1 %2245 }
 0x57f   :  { %v2749_v20 = vadd.f32 %v2246_v50, %v5691_v9 }
 0x581   :  { %v2829_v44 = vmax.f32 %v2749_v20, 0.0  ;;  %2343 = vperm.xlu2 %3989, %v5787_v51  }
 0x583   :  { %3024 = vperm.xlu0 %4040, %v2829_v44   ;;  %v6003_v44 = vpop.permute.xlu0 %2502 }
 0x584   :  { %3992 = vset.pattern.permute.xlu1 %v4480_v8 }
 0x589   :  { %3991 = vset.pattern.permute.xlu2 %v4601_v36 }
 0x58b   :  { %v6000_v20 = vpop.permute.xlu2 %2270  ;;  %v6008_v18 = vpop.permute.xlu0 %2288 }
 0x58c   :  { %2368 = vperm.xlu1 %3992, %v5857_v12  }
 0x58e   :  { %v2264_v1 = vpop.permute.xlu1 %2263 }
 0x58f   :  { %v2752_v9 = vadd.f32 %v2264_v1, %v5704_v63 }
 0x591   :  { %v2832_v50 = vmax.f32 %v2752_v9, 0.0  ;;  %2361 = vperm.xlu2 %3991, %v5787_v51  }
 0x593   :  { %3033 = vperm.xlu0 %4040, %v2832_v50   ;;  %v6012_v63 = vpop.permute.xlu0 %2533 }
 0x594   :  { %3994 = vset.pattern.permute.xlu1 %v4498_v21  ;;  %6888 = vst [vmem:[#allocation60_spill] sm:$0xff] %v6012_v63 }
 0x599   :  { %3993 = vset.pattern.permute.xlu2 %v4626_v53 }
 0x59b   :  { %v2283_v60 = vpop.permute.xlu2 %2282 }
 0x59c   :  { %v2755_v56 = vadd.f32 %v2283_v60, %v5721_v61  ;;  %2386 = vperm.xlu1 %3994, %v5857_v12   ;;  %v2320_v61 = vpop.permute.xlu0 %2319 }
 0x59e   :  { %v2835_v1 = vmax.f32 %v2755_v56, 0.0  ;;  %v2761_v56 = vadd.f32 %v2320_v61, %v5765_v6 }
 0x5a0   :  { %3042 = vperm.xlu0 %4040, %v2835_v1   ;;  %v2841_v50 = vmax.f32 %v2761_v56, 0.0  ;;  %v6022_v1 = vpop.permute.xlu1 %2276 }
 0x5a1   :  { %2374 = vperm.xlu2 %3993, %v5857_v12  }
 0x5a4   :  { %3996 = vset.pattern.permute.xlu1 %v4574_v16 }
 0x5a9   :  { %3995 = vset.pattern.permute.xlu2 %v4584_v26 }
 0x5ab   :  { %v2301_v51 = vpop.permute.xlu2 %2300 }
 0x5ac   :  { %v2758_v9 = vadd.f32 %v2301_v51, %v5743_v38  ;;  %2398 = vperm.xlu1 %3996, %v5857_v12  }
 0x5ae   :  { %v2838_v60 = vmax.f32 %v2758_v9, 0.0  ;;  %v6026_v38 = vpop.permute.xlu1 %2294  ;;  %v6036_v9 = vpop.permute.xlu0 %2564 }
 0x5af   :  { %6889 = vst [vmem:[#allocation61_spill] sm:$0xff] %v6026_v38 }
 0x5b0   :  { %3051 = vperm.xlu0 %4040, %v2838_v60   ;;  %6890 = vst [vmem:[#allocation62_spill] sm:$0xff] %v6036_v9 }
 0x5b1   :  { %2392 = vperm.xlu2 %3995, %v5857_v12  }
 0x5b4   :  { %3998 = vset.pattern.permute.xlu1 %v4480_v8 }
 0x5b6   :  { %v6043_v56 = vpop.permute.xlu0 %2349 }
 0x5b7   :  { %6892 = vst [vmem:[#allocation64_spill] sm:$0xff] %v6043_v56 }
 0x5b8   :  { %3060 = vperm.xlu0 %4040, %v2841_v50  }
 0x5b9   :  { %3997 = vset.pattern.permute.xlu2 %v4610_v41 }
 0x5bc   :  { %2417 = vperm.xlu1 %3998, %v5589_v46  }
 0x5be   :  { %v6030_v6 = vpop.permute.xlu1 %2306  ;;  %v6050_v9 = vpop.permute.xlu0 %2594 }
 0x5c1   :  { %2404 = vperm.xlu2 %3997, %v5857_v12   ;;  %v6039_v12 = vpop.permute.xlu2 %2312 }
 0x5c2   :  { %6891 = vst [vmem:[#allocation63_spill] sm:$0xff] %v6039_v12 }
 0x5c4   :  { %4000 = vset.pattern.permute.xlu1 %v6858_v29 }
 0x5c9   :  { %3999 = vset.pattern.permute.xlu2 %v4626_v53 }
 0x5cb   :  { %v6046_v63 = vpop.permute.xlu2 %2331 }
 0x5cc   :  { %2429 = vperm.xlu1 %4000, %v5589_v46   ;;  %6893 = vst [vmem:[#allocation65_spill] sm:$0xff] %v6046_v63 }
 0x5ce   :  { %v6034_v51 = vpop.permute.xlu1 %2325 }
 0x5d1   :  { %2423 = vperm.xlu2 %3999, %v5589_v46  }
 0x5d4   :  { %4004 = vset.pattern.permute.xlu1 %v4574_v16 }
 0x5d9   :  { %4001 = vset.pattern.permute.xlu2 %v4498_v21 }
 0x5db   :  { %v6052_v12 = vpop.permute.xlu2 %2343 }
 0x5dc   :  { %2447 = vperm.xlu1 %4004, %v5589_v46   ;;  %6894 = vst [vmem:[#allocation66_spill] sm:$0xff] %v6052_v12 }
 0x5de   :  { %v2338_v60 = vpop.permute.xlu1 %2337 }
 0x5df   :  { %v2764_v61 = vadd.f32 %v2338_v60, %v5779_v22 }
 0x5e1   :  { %v2844_v50 = vmax.f32 %v2764_v61, 0.0  ;;  %2435 = vperm.xlu2 %4001, %v5589_v46   ;;  %v6057_v61 = vpop.permute.xlu0 %2184 }
 0x5e3   :  { %3069 = vperm.xlu0 %4040, %v2844_v50  }
 0x5e4   :  { %4006 = vset.pattern.permute.xlu1 %v4601_v36 }
 0x5e9   :  { %4005 = vset.pattern.permute.xlu2 %v4610_v41  ;;  %v6065_v12 = vpop.permute.xlu0 %2380 }
 0x5eb   :  { %v6059_v56 = vpop.permute.xlu2 %2361 }
 0x5ec   :  { %2459 = vperm.xlu1 %4006, %v5589_v46  }
 0x5ee   :  { %v2356_v38 = vpop.permute.xlu1 %2355 }
 0x5ef   :  { %v2767_v22 = vadd.f32 %v2356_v38, %v5792_v39 }
 0x5f1   :  { %v2847_v60 = vmax.f32 %v2767_v22, 0.0  ;;  %2453 = vperm.xlu2 %4005, %v5589_v46   ;;  %v6069_v46 = vpop.permute.xlu0 %2625 }
 0x5f2   :  { %6895 = vst [vmem:[#allocation67_spill] sm:$0xff] %v6069_v46 }
 0x5f3   :  { %3078 = vperm.xlu0 %4040, %v2847_v60  }
 0x5f4   :  { %4009 = vset.pattern.permute.xlu1 %v6858_v29 }
 0x5f9   :  { %4007 = vset.pattern.permute.xlu2 %v4480_v8  ;;  %v2411_v60 = vpop.permute.xlu0 %2410 }
 0x5fb   :  { %v2375_v50 = vpop.permute.xlu2 %2374 }
 0x5fc   :  { %v2770_v63 = vadd.f32 %v2375_v50, %v5809_v27  ;;  %2478 = vperm.xlu1 %4009, %v5648_v48  }
 0x5fe   :  { %v2850_v39 = vmax.f32 %v2770_v63, 0.0  ;;  %v2776_v63 = vadd.f32 %v2411_v60, %v5829_v58 }
 0x600   :  { %3087 = vperm.xlu0 %4040, %v2850_v39   ;;  %v2856_v50 = vmax.f32 %v2776_v63, 0.0  ;;  %v6079_v39 = vpop.permute.xlu1 %2368 }
 0x601   :  { %2466 = vperm.xlu2 %4007, %v5648_v48  }
 0x604   :  { %4011 = vset.pattern.permute.xlu1 %v4584_v26 }
 0x609   :  { %4010 = vset.pattern.permute.xlu2 %v4498_v21 }
 0x60b   :  { %v2393_v38 = vpop.permute.xlu2 %2392 }
 0x60c   :  { %v2773_v22 = vadd.f32 %v2393_v38, %v5821_v5  ;;  %2490 = vperm.xlu1 %4011, %v5648_v48  }
 0x60e   :  { %v2853_v27 = vmax.f32 %v2773_v22, 0.0  ;;  %v6083_v5 = vpop.permute.xlu1 %2386 }
 0x60f   :  { %6896 = vst [vmem:[#allocation68_spill] sm:$0xff] %v6083_v5 }
 0x610   :  { %3096 = vperm.xlu0 %4040, %v2853_v27  }
 0x611   :  { %2484 = vperm.xlu2 %4010, %v5648_v48  }
 0x614   :  { %4014 = vset.pattern.permute.xlu1 %v4601_v36 }
 0x618   :  { %3105 = vperm.xlu0 %4040, %v2856_v50  }
 0x619   :  { %4012 = vset.pattern.permute.xlu2 %v4574_v16 }
 0x61b   :  { %v6094_v22 = vpop.permute.xlu2 %2404 }
 0x61c   :  { %2508 = vperm.xlu1 %4014, %v5648_v48   ;;  %6897 = vst [vmem:[#allocation69_spill] sm:$0xff] %v6094_v22 }
 0x61e   :  { %v6087_v58 = vpop.permute.xlu1 %2398 }
 0x621   :  { %2496 = vperm.xlu2 %4012, %v5648_v48  }
 0x624   :  { %4016 = vset.pattern.permute.xlu1 %v4626_v53 }
 0x629   :  { %4015 = vset.pattern.permute.xlu2 %v4480_v8 }
 0x62b   :  { %v6099_v63 = vpop.permute.xlu2 %2423 }
 0x62c   :  { %2521 = vperm.xlu1 %4016, %v5754_v10  }
 0x62e   :  { %v6091_v38 = vpop.permute.xlu1 %2417 }
 0x631   :  { %2515 = vperm.xlu2 %4015, %v5754_v10  }
 0x634   :  { %4019 = vset.pattern.permute.xlu1 %v4584_v26 }
 0x639   :  { %4017 = vset.pattern.permute.xlu2 %v6858_v29 }
 0x63b   :  { %v6103_v50 = vpop.permute.xlu2 %2435 }
 0x63c   :  { %2539 = vperm.xlu1 %4019, %v5754_v10  }
 0x63e   :  { %v2430_v48 = vpop.permute.xlu1 %2429 }
 0x63f   :  { %v2779_v27 = vadd.f32 %v2430_v48, %v5836_v33 }
 0x641   :  { %v2859_v60 = vmax.f32 %v2779_v27, 0.0  ;;  %2527 = vperm.xlu2 %4017, %v5754_v10  }
 0x643   :  { %3114 = vperm.xlu0 %4040, %v2859_v60  }
 0x644   :  { %4021 = vset.pattern.permute.xlu1 %v4610_v41 }
 0x649   :  { %4020 = vset.pattern.permute.xlu2 %v4574_v16 }
 0x64b   :  { %v6108_v33 = vpop.permute.xlu2 %2453 }
 0x64c   :  { %2551 = vperm.xlu1 %4021, %v5754_v10  }
 0x64e   :  { %v2448_v46 = vpop.permute.xlu1 %2447 }
 0x64f   :  { %v2782_v22 = vadd.f32 %v2448_v46, %v5840_v0 }
 0x651   :  { %v2862_v5 = vmax.f32 %v2782_v22, 0.0  ;;  %2545 = vperm.xlu2 %4020, %v5754_v10  }
 0x653   :  { %3123 = vperm.xlu0 %4040, %v2862_v5  }
 0x654   :  { %4024 = vset.pattern.permute.xlu1 %v4626_v53 }
 0x659   :  { %4022 = vset.pattern.permute.xlu2 %v4601_v36 }
 0x65b   :  { %v2467_v48 = vpop.permute.xlu2 %2466 }
 0x65c   :  { %v2785_v27 = vadd.f32 %v2467_v48, %v5848_v30  ;;  %2570 = vperm.xlu1 %4024, %v5804_v59   ;;  %v2791_v30 = vadd.f32 %v6003_v44, %v5873_v24 }
 0x65e   :  { %v2865_v60 = vmax.f32 %v2785_v27, 0.0  ;;  %v2871_v22 = vmax.f32 %v2791_v30, 0.0 }
 0x660   :  { %3132 = vperm.xlu0 %4040, %v2865_v60  }
 0x661   :  { %2557 = vperm.xlu2 %4022, %v5754_v10  }
 0x664   :  { %4026 = vset.pattern.permute.xlu1 %v4498_v21 }
 0x669   :  { %4025 = vset.pattern.permute.xlu2 %v6858_v29  ;;  %v6125_v29 = vpop.permute.xlu1 %2459 }
 0x66b   :  { %v2485_v0 = vpop.permute.xlu2 %2484 }
 0x66c   :  { %v2788_v46 = vadd.f32 %v2485_v0, %v5860_v52  ;;  %2582 = vperm.xlu1 %4026, %v5804_v59  }
 0x66e   :  { %v2868_v5 = vmax.f32 %v2788_v46, 0.0 }
 0x670   :  { %3141 = vperm.xlu0 %4040, %v2868_v5  }
 0x671   :  { %2576 = vperm.xlu2 %4025, %v5804_v59   ;;  %v6129_v52 = vpop.permute.xlu1 %2478 }
 0x674   :  { %4029 = vset.pattern.permute.xlu1 %v4610_v41 }
 0x678   :  { %3150 = vperm.xlu0 %4040, %v2871_v22  }
 0x679   :  { %4027 = vset.pattern.permute.xlu2 %v4584_v26 }
 0x67b   :  { %v6140_v44 = vpop.permute.xlu2 %2496 }
 0x67c   :  { %2600 = vperm.xlu1 %4029, %v5804_v59  }
 0x67e   :  { %v6133_v10 = vpop.permute.xlu1 %2490 }
 0x681   :  { %2588 = vperm.xlu2 %4027, %v5804_v59  }
 0x684   :  { %4031 = vset.pattern.permute.xlu1 %v4480_v8 }
 0x689   :  { %4030 = vset.pattern.permute.xlu2 %v4601_v36 }
 0x68b   :  { %v6145_v60 = vpop.permute.xlu2 %2515 }
 0x68c   :  { %2613 = vperm.xlu1 %4031, %v5869_v57  }
 0x68e   :  { %v6137_v24 = vpop.permute.xlu1 %2508 }
 0x691   :  { %2606 = vperm.xlu2 %4030, %v5804_v59   ;;  %v2737_v59 = vadd.f32 %v5961_v37, %v5520_v11  ;;  %v2742_v37 = vadd.f32 %v5969_v32, %v5619_v42  ;;  %v2740_v42 = vadd.f32 %v5965_v49, %v5635_v2  ;;  %v2750_v2 = vadd.f32 %v5995_v40, %v5595_v13  ;;  %v6899_v40 = vld [vmem:[#allocation41_spill] sm:$0xff] }
 0x693   :  { %v2817_v46 = vmax.f32 %v2737_v59, 0.0  ;;  %v2822_v22 = vmax.f32 %v2742_v37, 0.0  ;;  %v2830_v49 = vmax.f32 %v2750_v2, 0.0  ;;  %v2756_v59 = vadd.f32 %v6008_v18, %v6899_v40 }
 0x694   :  { %4034 = vset.pattern.permute.xlu1 %v4498_v21 }
 0x699   :  { %4032 = vset.pattern.permute.xlu2 %v4626_v53 }
 0x69b   :  { %v6149_v21 = vpop.permute.xlu2 %2527 }
 0x69c   :  { %2631 = vperm.xlu1 %4034, %v5869_v57  }
 0x69e   :  { %v2522_v48 = vpop.permute.xlu1 %2521 }
 0x69f   :  { %v2794_v27 = vadd.f32 %v2522_v48, %v5881_v15  ;;  %v2738_v48 = vadd.f32 %v5941_v3, %v5613_v35  ;;  %v2747_v35 = vadd.f32 %v5979_v17, %v5574_v31  ;;  %v2820_v3 = vmax.f32 %v2740_v42, 0.0  ;;  %v6907_v42 = vld [vmem:[#allocation53_spill] sm:$0xff] }
 0x6a0   :  { %v2745_v31 = vadd.f32 %v5982_v25, %v5642_v34  ;;  %v2836_v34 = vmax.f32 %v2756_v59, 0.0  ;;  %v6900_v25 = vld [vmem:[#allocation10_spill] sm:$0xff]  ;;  %v6915_v59 = vld [vmem:[#allocation15_spill] sm:$0xff] }
 0x6a1   :  { %v2874_v36 = vmax.f32 %v2794_v27, 0.0  ;;  %2619 = vperm.xlu2 %4032, %v5869_v57   ;;  %v2743_v27 = vadd.f32 %v5976_v45, %v5657_v62  ;;  %v6898_v45 = vld [vmem:[#allocation49_spill] sm:$0xff] }
 0x6a3   :  { %3159 = vperm.xlu0 %4040, %v2874_v36  }
 0x6a4   :  { %4036 = vset.pattern.permute.xlu1 %v4574_v16  ;;  %v2739_v16 = vadd.f32 %v6057_v61, %v5600_v43  ;;  %v2818_v43 = vmax.f32 %v2738_v48, 0.0 }
 0x6a9   :  { %4035 = vset.pattern.permute.xlu2 %v4584_v26  ;;  %v2819_v26 = vmax.f32 %v2739_v16, 0.0 }
 0x6ab   :  { %v6156_v5 = vpop.permute.xlu2 %2545 }
 0x6ac   :  { %2643 = vperm.xlu1 %4036, %v5869_v57  }
 0x6ae   :  { %v2540_v53 = vpop.permute.xlu1 %2539 }
 0x6af   :  { %v2797_v15 = vadd.f32 %v2540_v53, %v5886_v55  ;;  %v2748_v53 = vadd.f32 %v6898_v45, %v5668_v28  ;;  %v6914_v45 = vld [vmem:[#allocation65_spill] sm:$0xff] }
 0x6b1   :  { %v2877_v0 = vmax.f32 %v2797_v15, 0.0  ;;  %2637 = vperm.xlu2 %4035, %v5869_v57   ;;  %v2828_v15 = vmax.f32 %v2748_v53, 0.0 }
 0x6b3   :  { %3168 = vperm.xlu0 %4040, %v2877_v0   ;;  %v6901_v0 = vld [vmem:[#allocation6_spill] sm:$0xff] }
 0x6b4   :  { %4038 = vset.pattern.permute.xlu1 %v6770_v54 }
 0x6b5   :  { %2988 = vperm.xlu1 %4038, %v2817_v46   ;;  %v2751_v46 = vadd.f32 %v6901_v0, %v6900_v25 }
 0x6b9   :  { %4037 = vset.pattern.permute.xlu2 %v4610_v41  ;;  %v2744_v41 = vadd.f32 %v5973_v23, %v5560_v47  ;;  %v2806_v47 = vadd.f32 %v6050_v9, %v5913_v4  ;;  %v2827_v23 = vmax.f32 %v2747_v35, 0.0  ;;  %v2753_v4 = vadd.f32 %v6000_v20, %v5616_v14  ;;  %v6902_v20 = vld [vmem:[#allocation11_spill] sm:$0xff] }
 0x6ba   :  { %v2825_v9 = vmax.f32 %v2745_v31, 0.0  ;;  %v2759_v16 = vadd.f32 %v6030_v6, %v6902_v20 }
 0x6bb   :  { %v2558_v30 = vpop.permute.xlu2 %2557  ;;  %v2886_v36 = vmax.f32 %v2806_v47, 0.0  ;;  %v2833_v62 = vmax.f32 %v2753_v4, 0.0 }
 0x6bc   :  { %v2800_v11 = vadd.f32 %v2558_v30, %v5895_v19  ;;  %v2824_v19 = vmax.f32 %v2744_v41, 0.0  ;;  %v2839_v28 = vmax.f32 %v2759_v16, 0.0  ;;  %v6903_v30 = vld [vmem:[#allocation13_spill] sm:$0xff]  ;;  %v6917_v16 = vld [vmem:[#allocation58_spill] sm:$0xff] }
 0x6bd   :  { %2994 = vperm.xlu1 %4038, %v2819_v26   ;;  %v2831_v26 = vmax.f32 %v2751_v46, 0.0 }
 0x6be   :  { %v2880_v55 = vmax.f32 %v2800_v11, 0.0  ;;  %v6184_v17 = vpop.permute.xlu1 %2551  ;;  %v2754_v11 = vadd.f32 %v6022_v1, %v6903_v30  ;;  %v6909_v1 = vld [vmem:[#allocation37_spill] sm:$0xff] }
 0x6bf   :  { %v6919_v30 = vld [vmem:[#allocation57_spill] sm:$0xff] }
 0x6c0   :  { %3177 = vperm.xlu0 %4040, %v2880_v55   ;;  %v6904_v55 = vld [vmem:[#allocation55_spill] sm:$0xff] }
 0x6c1   :  { %2649 = vperm.xlu2 %4037, %v5869_v57   ;;  %v2762_v37 = vadd.f32 %v6034_v51, %v6904_v55 }
 0x6c3   :  { %v2842_v48 = vmax.f32 %v2762_v37, 0.0 }
 0x6c5   :  { %3003 = vperm.xlu1 %4038, %v2822_v22   ;;  %v2834_v22 = vmax.f32 %v2754_v11, 0.0  ;;  %v2774_v11 = vadd.f32 %v6087_v58, %v6919_v30 }
 0x6c7   :  { %v2854_v37 = vmax.f32 %v2774_v11, 0.0 }
 0x6c9   :  { %4039 = vset.pattern.permute.xlu2 %v6770_v54 }
 0x6ca   :  { %2991 = vperm.xlu2 %4039, %v2818_v43   ;;  %v6905_v43 = vld [vmem:[#allocation56_spill] sm:$0xff] }
 0x6cb   :  { %v2577_v61 = vpop.permute.xlu2 %2576 }
 0x6cc   :  { %v2803_v32 = vadd.f32 %v2577_v61, %v5904_v7  ;;  %v2823_v7 = vmax.f32 %v2743_v27, 0.0  ;;  %v6910_v27 = vld [vmem:[#allocation14_spill] sm:$0xff] }
 0x6cd   :  { %3009 = vperm.xlu1 %4038, %v2824_v19   ;;  %v6906_v19 = vld [vmem:[#allocation61_spill] sm:$0xff] }
 0x6ce   :  { %v2883_v57 = vmax.f32 %v2803_v32, 0.0  ;;  %v6190_v13 = vpop.permute.xlu1 %2570  ;;  %v2757_v6 = vadd.f32 %v6906_v19, %v6905_v43  ;;  %v6908_v32 = vld [vmem:[#allocation66_spill] sm:$0xff]  ;;  %v6921_v43 = vld [vmem:[#allocation39_spill] sm:$0xff] }
 0x6d0   :  { %3186 = vperm.xlu0 %4040, %v2883_v57   ;;  %v2765_v57 = vadd.f32 %v6908_v32, %v6907_v42  ;;  %v6922_v42 = vld [vmem:[#allocation16_spill] sm:$0xff] }
 0x6d1   :  { %v2777_v32 = vadd.f32 %v6091_v38, %v6922_v42 }
 0x6d2   :  { %2997 = vperm.xlu2 %4039, %v2820_v3   ;;  %v2837_v3 = vmax.f32 %v2757_v6, 0.0 }
 0x6d3   :  { %v2857_v58 = vmax.f32 %v2777_v32, 0.0 }
 0x6d5   :  { %3018 = vperm.xlu1 %4038, %v2827_v23   ;;  %v2845_v23 = vmax.f32 %v2765_v57, 0.0 }
 0x6d8   :  { %3195 = vperm.xlu0 %4040, %v2886_v36   ;;  %v6911_v36 = vld [vmem:[#allocation63_spill] sm:$0xff] }
 0x6d9   :  { %v2760_v2 = vadd.f32 %v6911_v36, %v6910_v27 }
 0x6da   :  { %3006 = vperm.xlu2 %4039, %v2823_v7   ;;  %v6912_v7 = vld [vmem:[#allocation12_spill] sm:$0xff] }
 0x6db   :  { %v6206_v41 = vpop.permute.xlu2 %2588  ;;  %v2840_v31 = vmax.f32 %v2760_v2, 0.0 }
 0x6dd   :  { %3027 = vperm.xlu1 %4038, %v2830_v49   ;;  %v2768_v49 = vadd.f32 %v6059_v56, %v6912_v7  ;;  %v6926_v7 = vld [vmem:[#allocation4_spill] sm:$0xff] }
 0x6de   :  { %v6196_v14 = vpop.permute.xlu1 %2582 }
 0x6df   :  { %v2848_v4 = vmax.f32 %v2768_v49, 0.0 }
 0x6e2   :  { %3012 = vperm.xlu2 %4039, %v2825_v9  }
 0x6e5   :  { %3036 = vperm.xlu1 %4038, %v2833_v62   ;;  %v6913_v62 = vld [vmem:[#allocation17_spill] sm:$0xff] }
 0x6e6   :  { %v2763_v53 = vadd.f32 %v6914_v45, %v6913_v62  ;;  %v6928_v45 = vld [vmem:[#allocation20_spill] sm:$0xff] }
 0x6e8   :  { %v2843_v0 = vmax.f32 %v2763_v53, 0.0  ;;  %v6929_v53 = vld [vmem:[#allocation69_spill] sm:$0xff] }
 0x6ea   :  { %3021 = vperm.xlu2 %4039, %v2828_v15   ;;  %v2771_v15 = vadd.f32 %v6065_v12, %v6915_v59 }
 0x6eb   :  { %v6213_v51 = vpop.permute.xlu2 %2606 }
 0x6ec   :  { %v2851_v20 = vmax.f32 %v2771_v15, 0.0 }
 0x6ed   :  { %3045 = vperm.xlu1 %4038, %v2836_v34   ;;  %v6916_v34 = vld [vmem:[#allocation36_spill] sm:$0xff] }
 0x6ee   :  { %v6202_v18 = vpop.permute.xlu1 %2600 }
 0x6f2   :  { %3030 = vperm.xlu2 %4039, %v2831_v26   ;;  %v6918_v26 = vld [vmem:[#allocation64_spill] sm:$0xff] }
 0x6f5   :  { %3054 = vperm.xlu1 %4038, %v2839_v28   ;;  %v2766_v28 = vadd.f32 %v6918_v26, %v6917_v16  ;;  %v6932_v16 = vld [vmem:[#allocation38_spill] sm:$0xff] }
 0x6f7   :  { %v2846_v55 = vmax.f32 %v2766_v28, 0.0  ;;  %v6933_v28 = vld [vmem:[#allocation5_spill] sm:$0xff] }
 0x6fa   :  { %3039 = vperm.xlu2 %4039, %v2834_v22   ;;  %v6920_v22 = vld [vmem:[#allocation44_spill] sm:$0xff] }
 0x6fb   :  { %v6219_v9 = vpop.permute.xlu2 %2619 }
 0x6fd   :  { %3063 = vperm.xlu1 %4038, %v2842_v48   ;;  %v2769_v48 = vadd.f32 %v6079_v39, %v6920_v22  ;;  %v6925_v39 = vld [vmem:[#allocation19_spill] sm:$0xff] }
 0x6fe   :  { %v2614_v61 = vpop.permute.xlu1 %2613  ;;  %v2780_v27 = vadd.f32 %v6103_v50, %v6925_v39 }
 0x6ff   :  { %v2809_v35 = vadd.f32 %v2614_v61, %v6909_v1  ;;  %v2849_v57 = vmax.f32 %v2769_v48, 0.0  ;;  %v6923_v1 = vld [vmem:[#allocation21_spill] sm:$0xff] }
 0x700   :  { %v2860_v62 = vmax.f32 %v2780_v27, 0.0  ;;  %v6939_v27 = vld [vmem:[#allocation24_spill] sm:$0xff] }
 0x701   :  { %v2889_v47 = vmax.f32 %v2809_v35, 0.0  ;;  %v6924_v35 = vld [vmem:[#allocation68_spill] sm:$0xff] }
 0x702   :  { %3048 = vperm.xlu2 %4039, %v2837_v3   ;;  %v2772_v3 = vadd.f32 %v6924_v35, %v6923_v1  ;;  %v6938_v35 = vld [vmem:[#allocation8_spill] sm:$0xff] }
 0x703   :  { %3204 = vperm.xlu0 %4040, %v2889_v47  }
 0x704   :  { %v2852_v2 = vmax.f32 %v2772_v3, 0.0 }
 0x705   :  { %3072 = vperm.xlu1 %4038, %v2845_v23   ;;  %v6241_v23 = vpop.permute.xlu0 %2655 }
 0x70a   :  { %3057 = vperm.xlu2 %4039, %v2840_v31   ;;  %v6927_v31 = vld [vmem:[#allocation2_spill] sm:$0xff] }
 0x70b   :  { %v6226_v56 = vpop.permute.xlu2 %2637 }
 0x70d   :  { %3081 = vperm.xlu1 %4038, %v2848_v4   ;;  %v3001_v15 = vpop.permute.xlu0 %3000 }
 0x70e   :  { %v2632_v40 = vpop.permute.xlu1 %2631  ;;  %v3234_v30 = vperm.slane %v3001_v15, %v6933_v28 }
 0x70f   :  { %v2812_v25 = vadd.f32 %v2632_v40, %v6916_v34  ;;  %v2775_v40 = vadd.f32 %v6929_v53, %v6928_v45  ;;  %v6930_v34 = vld [vmem:[#allocation18_spill] sm:$0xff]  ;;  %v6942_v53 = vld [vmem:[#allocation9_spill] sm:$0xff] }
 0x710   :  { %v2783_v50 = vadd.f32 %v6108_v33, %v6930_v34 }
 0x711   :  { %v2892_v46 = vmax.f32 %v2812_v25, 0.0 }
 0x712   :  { %3066 = vperm.xlu2 %4039, %v2843_v0   ;;  %v2855_v0 = vmax.f32 %v2775_v40, 0.0 }
 0x713   :  { %3213 = vperm.xlu0 %4040, %v2892_v46   ;;  %v6931_v46 = vld [vmem:[#allocation3_spill] sm:$0xff] }
 0x715   :  { %3090 = vperm.xlu1 %4038, %v2851_v20   ;;  %v3016_v1 = vpop.permute.xlu0 %3015 }
 0x71a   :  { %3075 = vperm.xlu2 %4039, %v2846_v55   ;;  %v2863_v55 = vmax.f32 %v2783_v50, 0.0  ;;  %v6943_v50 = vld [vmem:[#allocation26_spill] sm:$0xff] }
 0x71b   :  { %v2650_v12 = vpop.permute.xlu2 %2649 }
 0x71c   :  { %v2815_v19 = vadd.f32 %v2650_v12, %v6921_v43  ;;  %v6934_v12 = vld [vmem:[#allocation22_spill] sm:$0xff] }
 0x71d   :  { %3099 = vperm.xlu1 %4038, %v2854_v37   ;;  %v2778_v22 = vadd.f32 %v6099_v63, %v6934_v12  ;;  %v6935_v43 = vld [vmem:[#allocation50_spill] sm:$0xff] }
 0x71e   :  { %v2895_v6 = vmax.f32 %v2815_v19, 0.0  ;;  %v6235_v61 = vpop.permute.xlu1 %2643  ;;  %v6936_v19 = vld [vmem:[#allocation47_spill] sm:$0xff] }
 0x71f   :  { %v2858_v32 = vmax.f32 %v2778_v22, 0.0 }
 0x720   :  { %3222 = vperm.xlu0 %4040, %v2895_v6   ;;  %v2786_v6 = vadd.f32 %v6936_v19, %v6935_v43 }
 0x722   :  { %3084 = vperm.xlu2 %4039, %v2849_v57   ;;  %v6937_v57 = vld [vmem:[#allocation7_spill] sm:$0xff]  ;;  %v2866_v39 = vmax.f32 %v2786_v6, 0.0 }
 0x724   :  { %v2992_v47 = vpop.permute.xlu2 %2991 }
 0x725   :  { %3108 = vperm.xlu1 %4038, %v2857_v58   ;;  %v3228_v49 = vperm.slane %v2992_v47, %v6926_v7 }
 0x727   :  { %v2989_v36 = vpop.permute.xlu1 %2988 }
 0x728   :  { %v3227_v38 = vperm.slane %v2989_v36, %v6927_v31  ;;  %4041 = vset.pattern.permute.xlu0 %v4480_v8  ;;  %v6940_v36 = vld [vmem:[#allocation42_spill] sm:$0xff] }
 0x72a   :  { %v3229_v4 = vsel %vm1608_vm1, %v3228_v49, %v3227_v38  ;;  %3093 = vperm.xlu2 %4039, %v2852_v2   ;;  %v2781_v2 = vadd.f32 %v6940_v36, %v6939_v27  ;;  %v6941_v38 = vld [vmem:[#allocation23_spill] sm:$0xff] }
 0x72c   :  { %v2998_v59 = vpop.permute.xlu2 %2997  ;;  %v2861_v45 = vmax.f32 %v2781_v2, 0.0  ;;  %v2898_v2 = vld [vmem:[%s6689_s3 + $0x8] sm:$0xff] }
 0x72d   :  { %3117 = vperm.xlu1 %4038, %v2860_v62   ;;  %v3232_v26 = vperm.slane %v2998_v59, %v6932_v16  ;;  %v3025_v59 = vpop.permute.xlu0 %3024 }
 0x72f   :  { %v2995_v25 = vpop.permute.xlu1 %2994 }
 0x730   :  { %v3230_v20 = vperm.slane %v2995_v25, %v6931_v46  ;;  %v2784_v25 = vadd.f32 %v6125_v29, %v6943_v50 }
 0x732   :  { %v3231_v11 = vsel %vm1612_vm2, %v3230_v20, %v3229_v4  ;;  %3102 = vperm.xlu2 %4039, %v2855_v0   ;;  %v2789_v4 = vadd.f32 %v6133_v10, %v6941_v38  ;;  %v6947_v38 = vld [vmem:[#allocation31_spill] sm:$0xff] }
 0x733   :  { %v3233_v37 = vsel %vm1616_vm3, %v3232_v26, %v3231_v11  ;;  %v6944_v26 = vld [vmem:[#allocation25_spill] sm:$0xff]  ;;  %v3243_v11 = vperm.slane %v3016_v1, %v6926_v7 }
 0x734   :  { %v3007_v48 = vpop.permute.xlu2 %3006  ;;  %v3235_v33 = vsel %vm1620_vm4, %v3234_v30, %v3233_v37  ;;  %v2869_v34 = vmax.f32 %v2789_v4, 0.0  ;;  %v2792_v10 = vadd.f32 %v6137_v24, %v6944_v26  ;;  %v2790_v4 = vadd.f32 %v6140_v44, %v6947_v38 }
 0x735   :  { %3126 = vperm.xlu1 %4038, %v2863_v55   ;;  %v3238_v3 = vperm.slane %v3007_v48, %v6938_v35  ;;  %v2864_v55 = vmax.f32 %v2784_v25, 0.0  ;;  %v3034_v12 = vpop.permute.xlu0 %3033 }
 0x736   :  { %v2872_v48 = vmax.f32 %v2792_v10, 0.0  ;;  %v3255_v27 = vperm.slane %v3034_v12, %v6942_v53 }
 0x737   :  { %v3004_v42 = vpop.permute.xlu1 %3003 }
 0x738   :  { %v3236_v58 = vperm.slane %v3004_v42, %v6937_v57  ;;  %v3249_v42 = vperm.slane %v3025_v59, %v6933_v28  ;;  %v6948_v59 = vld [vmem:[#allocation51_spill] sm:$0xff] }
 0x73a   :  { %v3237_v47 = vsel %vm1624_vm5, %v3236_v58, %v3235_v33  ;;  %3111 = vperm.xlu2 %4039, %v2858_v32   ;;  %v6945_v33 = vld [vmem:[#allocation29_spill] sm:$0xff]  ;;  %v6946_v32 = vld [vmem:[#allocation27_spill] sm:$0xff] }
 0x73b   :  { %v3239_v63 = vsel %vm1628_vm6, %v3238_v3, %v3237_v47  ;;  %v2787_v43 = vadd.f32 %v6129_v52, %v6945_v33  ;;  %v2795_v58 = vadd.f32 %v6149_v21, %v6946_v32 }
 0x73c   :  { %v3013_v49 = vpop.permute.xlu2 %3012 }
 0x73d   :  { %3135 = vperm.xlu1 %4038, %v2866_v39   ;;  %v3242_v20 = vperm.slane %v3013_v49, %v6927_v31  ;;  %v2867_v3 = vmax.f32 %v2787_v43, 0.0  ;;  %v3043_v39 = vpop.permute.xlu0 %3042  ;;  %v2875_v49 = vmax.f32 %v2795_v58, 0.0 }
 0x73e   :  { %v3260_v10 = vperm.slane %v3043_v39, %v6931_v46 }
 0x73f   :  { %v3010_v62 = vpop.permute.xlu1 %3009  ;;  %v3244_v22 = vsel %vm1608_vm1, %v3243_v11, %v3242_v20 }
 0x740   :  { %v3240_v40 = vperm.slane %v3010_v62, %v6942_v53 }
 0x742   :  { %3120 = vperm.xlu2 %4039, %v2861_v45   ;;  %v6273_v15 = vsel %vm1632_vm7, %v3240_v40, %v3239_v63 }
 0x744   :  { %v3022_v0 = vpop.permute.xlu2 %3021 }
 0x745   :  { %3144 = vperm.xlu1 %4038, %v2869_v34   ;;  %v3247_v19 = vperm.slane %v3022_v0, %v6932_v16  ;;  %v2798_v34 = vadd.f32 %v6156_v5, %v6948_v59  ;;  %v2870_v0 = vmax.f32 %v2790_v4, 0.0  ;;  %v3052_v44 = vpop.permute.xlu0 %3051 }
 0x747   :  { %v3019_v30 = vpop.permute.xlu1 %3018  ;;  %v2878_v11 = vmax.f32 %v2798_v34, 0.0 }
 0x748   :  { %v3245_v37 = vperm.slane %v3019_v30, %v6931_v46 }
 0x74a   :  { %3129 = vperm.xlu2 %4039, %v2864_v55   ;;  %v3246_v29 = vsel %vm1612_vm2, %v3245_v37, %v3244_v22  ;;  %v6949_v37 = vld [vmem:[#allocation30_spill] sm:$0xff]  ;;  %v6950_v22 = vld [vmem:[#allocation28_spill] sm:$0xff] }
 0x74b   :  { %v3248_v24 = vsel %vm1616_vm3, %v3247_v19, %v3246_v29  ;;  %v2793_v5 = vadd.f32 %v6145_v60, %v6949_v37  ;;  %v6957_v37 = vld [vmem:[#allocation40_spill] sm:$0xff] }
 0x74c   :  { %v3031_v6 = vpop.permute.xlu2 %3030  ;;  %v3250_v52 = vsel %vm1620_vm4, %v3249_v42, %v3248_v24  ;;  %v3266_v24 = vperm.slane %v3052_v44, %v6937_v57 }
 0x74d   :  { %3153 = vperm.xlu1 %4038, %v2872_v48   ;;  %v3253_v63 = vperm.slane %v3031_v6, %v6938_v35  ;;  %v6951_v48 = vld [vmem:[#allocation62_spill] sm:$0xff]  ;;  %v2873_v43 = vmax.f32 %v2793_v5, 0.0  ;;  %v3061_v58 = vpop.permute.xlu0 %3060 }
 0x74e   :  { %v2801_v29 = vadd.f32 %v6951_v48, %v6950_v22  ;;  %v6958_v22 = vld [vmem:[#allocation35_spill] sm:$0xff] }
 0x74f   :  { %v3028_v1 = vpop.permute.xlu1 %3027  ;;  %v2810_v48 = vadd.f32 %v6219_v9, %v6958_v22  ;;  %v2901_v22 = vld [vmem:[%s6689_s3 + $0x20] sm:$0xff] }
 0x750   :  { %v3251_v47 = vperm.slane %v3028_v1, %v6937_v57  ;;  %v2881_v32 = vmax.f32 %v2801_v29, 0.0  ;;  %v6952_v1 = vld [vmem:[#allocation32_spill] sm:$0xff] }
 0x752   :  { %v3252_v36 = vsel %vm1624_vm5, %v3251_v47, %v3250_v52  ;;  %3138 = vperm.xlu2 %4039, %v2867_v3   ;;  %v6953_v3 = vld [vmem:[#allocation60_spill] sm:$0xff] }
 0x753   :  { %v3254_v21 = vsel %vm1628_vm6, %v3253_v63, %v3252_v36  ;;  %v2796_v47 = vadd.f32 %v6953_v3, %v6952_v1  ;;  %v6954_v52 = vld [vmem:[#allocation52_spill] sm:$0xff]  ;;  %v6960_v3 = vld [vmem:[#allocation54_spill] sm:$0xff] }
 0x754   :  { %v3040_v62 = vpop.permute.xlu2 %3039  ;;  %v3256_v45 = vsel %vm1632_vm7, %v3255_v27, %v3254_v21  ;;  %v2804_v27 = vadd.f32 %v6196_v14, %v6954_v52  ;;  %v6956_v14 = vld [vmem:[#allocation33_spill] sm:$0xff] }
 0x755   :  { %3162 = vperm.xlu1 %4038, %v2875_v49   ;;  %v3448_v40 = vmul.f32 %v3256_v45, %v2898_v2  ;;  %v3258_v20 = vperm.slane %v3040_v62, %v6926_v7  ;;  %v2876_v2 = vmax.f32 %v2796_v47, 0.0  ;;  %v3070_v4 = vpop.permute.xlu0 %3069  ;;  %v2813_v47 = vadd.f32 %v6226_v56, %v6960_v3 }
 0x756   :  { %v2884_v62 = vmax.f32 %v2804_v27, 0.0  ;;  %v3277_v44 = vperm.slane %v3070_v4, %v6932_v16  ;;  %v6962_v4 = vld [vmem:[#allocation43_spill] sm:$0xff] }
 0x757   :  { %v3037_v50 = vpop.permute.xlu1 %3036  ;;  %v3460_v25 = vsel %vm1926_vm8, %v3448_v40, 0.0  ;;  %v6955_v40 = vld [vmem:[#allocation34_spill] sm:$0xff]  ;;  %v2816_v56 = vadd.f32 %v6241_v23, %v6962_v4  ;;  %v2899_v4 = vld [vmem:[%s6689_s3 + $0x10] sm:$0xff] }
 0x758   :  { %v3257_v26 = vperm.slane %v3037_v50, %v6927_v31  ;;  %3461 = vadd.xlane.f32.xlu0 %v3460_v25  ;;  %v2799_v59 = vadd.f32 %v6184_v17, %v6955_v40  ;;  %v2807_v50 = vadd.f32 %v6202_v18, %v6956_v14  ;;  %v2802_v18 = vadd.f32 %v6190_v13, %v6957_v37 }
 0x759   :  { %v2890_v13 = vmax.f32 %v2810_v48, 0.0 }
 0x75a   :  { %v3259_v30 = vsel %vm1608_vm1, %v3258_v20, %v3257_v26  ;;  %3147 = vperm.xlu2 %4039, %v2870_v0   ;;  %v3272_v0 = vperm.slane %v3061_v58, %v6927_v31  ;;  %v2879_v20 = vmax.f32 %v2799_v59, 0.0  ;;  %v2887_v17 = vmax.f32 %v2807_v50, 0.0  ;;  %v6959_v58 = vld [vmem:[#allocation59_spill] sm:$0xff] }
 0x75b   :  { %v3261_v55 = vsel %vm1612_vm2, %v3260_v10, %v3259_v30  ;;  %v2896_v50 = vmax.f32 %v2816_v56, 0.0 }
 0x75c   :  { %v3049_v12 = vpop.permute.xlu2 %3048 }
 0x75d   :  { %3171 = vperm.xlu1 %4038, %v2878_v11   ;;  %v3264_v6 = vperm.slane %v3049_v12, %v6933_v28  ;;  %v3079_v11 = vpop.permute.xlu0 %3078 }
 0x75f   :  { %v3046_v33 = vpop.permute.xlu1 %3045 }
 0x760   :  { %v3262_v19 = vperm.slane %v3046_v33, %v6932_v16  ;;  %v2882_v33 = vmax.f32 %v2802_v18, 0.0 }
 0x762   :  { %v3263_v42 = vsel %vm1616_vm3, %v3262_v19, %v3261_v55  ;;  %3156 = vperm.xlu2 %4039, %v2873_v43  }
 0x763   :  { %v3265_v60 = vsel %vm1620_vm4, %v3264_v6, %v3263_v42  ;;  %v3283_v6 = vperm.slane %v3079_v11, %v6938_v35 }
 0x764   :  { %v3058_v39 = vpop.permute.xlu2 %3057  ;;  %v3267_v63 = vsel %vm1624_vm5, %v3266_v24, %v3265_v60  ;;  %v2805_v60 = vadd.f32 %v6206_v41, %v6959_v58 }
 0x765   :  { %3180 = vperm.xlu1 %4038, %v2881_v32   ;;  %v3270_v21 = vperm.slane %v3058_v39, %v6942_v53  ;;  %v3088_v42 = vpop.permute.xlu0 %3087 }
 0x766   :  { %v3288_v40 = vperm.slane %v3088_v42, %v6926_v7 }
 0x767   :  { %v3055_v36 = vpop.permute.xlu1 %3054 }
 0x768   :  { %v3268_v49 = vperm.slane %v3055_v36, %v6938_v35 }
 0x76a   :  { %v3269_v38 = vsel %vm1628_vm6, %v3268_v49, %v3267_v63  ;;  %3165 = vperm.xlu2 %4039, %v2876_v2   ;;  %v2885_v63 = vmax.f32 %v2805_v60, 0.0  ;;  %v2893_v2 = vmax.f32 %v2813_v47, 0.0  ;;  %v6961_v49 = vld [vmem:[#allocation46_spill] sm:$0xff] }
 0x76b   :  { %v6329_v45 = vsel %vm1632_vm7, %v3270_v21, %v3269_v38  ;;  %v2808_v41 = vadd.f32 %v6213_v51, %v6961_v49  ;;  %v6963_v51 = vld [vmem:[#allocation45_spill] sm:$0xff] }
 0x76c   :  { %v3067_v34 = vpop.permute.xlu2 %3066 }
 0x76d   :  { %3189 = vperm.xlu1 %4038, %v2884_v62   ;;  %v3275_v10 = vperm.slane %v3067_v34, %v6931_v46  ;;  %v3097_v36 = vpop.permute.xlu0 %3096  ;;  %v2888_v59 = vmax.f32 %v2808_v41, 0.0 }
 0x76f   :  { %v3064_v25 = vpop.permute.xlu1 %3063 }
 0x770   :  { %v3273_v26 = vperm.slane %v3064_v25, %v6926_v7 }
 0x772   :  { %v3274_v30 = vsel %vm1608_vm1, %v3273_v26, %v3272_v0  ;;  %3174 = vperm.xlu2 %4039, %v2879_v20   ;;  %v6964_v0 = vld [vmem:[#allocation67_spill] sm:$0xff] }
 0x773   :  { %v3276_v55 = vsel %vm1612_vm2, %v3275_v10, %v3274_v30  ;;  %v2811_v20 = vadd.f32 %v6964_v0, %v6963_v51  ;;  %v3294_v30 = vperm.slane %v3097_v36, %v6933_v28 }
 0x774   :  { %v3076_v5 = vpop.permute.xlu2 %3075  ;;  %v3278_v12 = vsel %vm1616_vm3, %v3277_v44, %v3276_v55 }
 0x775   :  { %3198 = vperm.xlu1 %4038, %v2887_v17   ;;  %v3281_v19 = vperm.slane %v3076_v5, %v6937_v57  ;;  %v3106_v44 = vpop.permute.xlu0 %3105  ;;  %v2891_v17 = vmax.f32 %v2811_v20, 0.0 }
 0x776   :  { %v3300_v5 = vperm.slane %v3106_v44, %v6942_v53 }
 0x777   :  { %v3073_v29 = vpop.permute.xlu1 %3072 }
 0x778   :  { %v3279_v43 = vperm.slane %v3073_v29, %v6933_v28  ;;  %v6965_v29 = vld [vmem:[#allocation48_spill] sm:$0xff] }
 0x77a   :  { %v3280_v24 = vsel %vm1620_vm4, %v3279_v43, %v3278_v12  ;;  %3183 = vperm.xlu2 %4039, %v2882_v33   ;;  %v2814_v33 = vadd.f32 %v6235_v61, %v6965_v29 }
 0x77b   :  { %v3282_v32 = vsel %vm1624_vm5, %v3281_v19, %v3280_v24 }
 0x77c   :  { %v3085_v1 = vpop.permute.xlu2 %3084  ;;  %v3284_v9 = vsel %vm1628_vm6, %v3283_v6, %v3282_v32  ;;  %v2894_v32 = vmax.f32 %v2814_v33, 0.0 }
 0x77d   :  { %3207 = vperm.xlu1 %4038, %v2890_v13   ;;  %v3287_v38 = vperm.slane %v3085_v1, %v6927_v31  ;;  %v3115_v6 = vpop.permute.xlu0 %3114 }
 0x77e   :  { %v3305_v36 = vperm.slane %v3115_v6, %v6931_v46 }
 0x77f   :  { %v3082_v39 = vpop.permute.xlu1 %3081  ;;  %v3289_v14 = vsel %vm1608_vm1, %v3288_v40, %v3287_v38 }
 0x780   :  { %v3285_v52 = vperm.slane %v3082_v39, %v6942_v53 }
 0x782   :  { %3192 = vperm.xlu2 %4039, %v2885_v63   ;;  %v6358_v27 = vsel %vm1632_vm7, %v3285_v52, %v3284_v9 }
 0x784   :  { %v3094_v21 = vpop.permute.xlu2 %3093 }
 0x785   :  { %3216 = vperm.xlu1 %4038, %v2893_v2   ;;  %v3292_v26 = vperm.slane %v3094_v21, %v6932_v16  ;;  %v3124_v60 = vpop.permute.xlu0 %3123 }
 0x786   :  { %v3311_v40 = vperm.slane %v3124_v60, %v6937_v57 }
 0x787   :  { %v3091_v62 = vpop.permute.xlu1 %3090 }
 0x788   :  { %v3290_v34 = vperm.slane %v3091_v62, %v6931_v46 }
 0x78a   :  { %3201 = vperm.xlu2 %4039, %v2888_v59   ;;  %v3291_v25 = vsel %vm1612_vm2, %v3290_v34, %v3289_v14  ;;  %v3449_v59 = vmul.f32 %v6329_v45, %v2899_v4 }
 0x78b   :  { %v3293_v23 = vsel %vm1616_vm3, %v3292_v26, %v3291_v25  ;;  %v2902_v26 = vld [vmem:[%s6689_s3 + $0x28] sm:$0xff] }
 0x78c   :  { %v3103_v10 = vpop.permute.xlu2 %3102  ;;  %v3295_v18 = vsel %vm1620_vm4, %v3294_v30, %v3293_v23  ;;  %v3463_v51 = vsel %vm1926_vm8, %v3449_v59, 0.0  ;;  %v2897_v30 = vld [vmem:[%s6689_s3] sm:$0xff] }
 0x78d   :  { %3225 = vperm.xlu1 %4038, %v2896_v50   ;;  %v3298_v37 = vperm.slane %v3103_v10, %v6938_v35  ;;  %v3133_v61 = vpop.permute.xlu0 %3132 }
 0x78e   :  { %v3317_v23 = vperm.slane %v3133_v61, %v6927_v31 }
 0x78f   :  { %v3100_v11 = vpop.permute.xlu1 %3099 }
 0x790   :  { %v3296_v55 = vperm.slane %v3100_v11, %v6937_v57 }
 0x792   :  { %v3297_v12 = vsel %vm1624_vm5, %v3296_v55, %v3295_v18  ;;  %3210 = vperm.xlu2 %4039, %v2891_v17   ;;  %v3447_v18 = vmul.f32 %v6273_v15, %v2897_v30 }
 0x793   :  { %v3299_v48 = vsel %vm1628_vm6, %v3298_v37, %v3297_v12 }
 0x794   :  { %v3112_v43 = vpop.permute.xlu2 %3111  ;;  %v3301_v19 = vsel %vm1632_vm7, %v3300_v5, %v3299_v48  ;;  %v3457_v33 = vsel %vm1926_vm8, %v3447_v18, 0.0 }
 0x795   :  { %v3451_v24 = vmul.f32 %v3301_v19, %v2901_v22  ;;  %4042 = vset.pattern.permute.xlu1 %v4480_v8  ;;  %v3303_v47 = vperm.slane %v3112_v43, %v6926_v7  ;;  %v3142_v41 = vpop.permute.xlu0 %3141  ;;  %v2900_v19 = vld [vmem:[%s6689_s3 + $0x18] sm:$0xff] }
 0x796   :  { %v3322_v29 = vperm.slane %v3142_v41, %v6932_v16 }
 0x797   :  { %v3109_v42 = vpop.permute.xlu1 %3108  ;;  %v3469_v13 = vsel %vm1926_vm8, %v3451_v24, 0.0 }
 0x798   :  { %3470 = vadd.xlane.f32.xlu0 %v3469_v13  ;;  %v3302_v3 = vperm.slane %v3109_v42, %v6927_v31  ;;  %v3450_v13 = vmul.f32 %v6358_v27, %v2900_v19 }
 0x79a   :  { %3219 = vperm.xlu2 %4039, %v2894_v32   ;;  %v3304_v63 = vsel %vm1608_vm1, %v3303_v47, %v3302_v3 }
 0x79b   :  { %v3306_v2 = vsel %vm1612_vm2, %v3305_v36, %v3304_v63 }
 0x79c   :  { %v3121_v58 = vpop.permute.xlu2 %3120 }
 0x79d   :  { %v3151_v0 = vpop.permute.xlu0 %3150 }
 0x79f   :  { %v3118_v1 = vpop.permute.xlu1 %3117 }
 0x7a0   :  { %v3307_v52 = vperm.slane %v3118_v1, %v6932_v16 }
 0x7a2   :  { %4043 = vset.pattern.permute.xlu2 %v4480_v8  ;;  %v3308_v21 = vsel %vm1616_vm3, %v3307_v52, %v3306_v2  ;;  %v3309_v8 = vperm.slane %v3121_v58, %v6933_v28  ;;  %v2903_v52 = vld [vmem:[%s6689_s3 + $0x30] sm:$0xff] }
 0x7a4   :  { %v3130_v9 = vpop.permute.xlu2 %3129  ;;  %v3310_v56 = vsel %vm1620_vm4, %v3309_v8, %v3308_v21 }
 0x7a5   :  { %v3312_v34 = vsel %vm1624_vm5, %v3311_v40, %v3310_v56  ;;  %v3315_v25 = vperm.slane %v3130_v9, %v6942_v53  ;;  %v3160_v5 = vpop.permute.xlu0 %3159  ;;  %v3328_v9 = vperm.slane %v3151_v0, %v6938_v35 }
 0x7a6   :  { %v3333_v61 = vperm.slane %v3160_v5, %v6926_v7 }
 0x7a7   :  { %v3127_v39 = vpop.permute.xlu1 %3126 }
 0x7a8   :  { %v3313_v62 = vperm.slane %v3127_v39, %v6938_v35  ;;  %v3466_v39 = vsel %vm1926_vm8, %v3450_v13, 0.0  ;;  %v2905_v13 = vld [vmem:[%s6689_s3 + $0x40] sm:$0xff] }
 0x7aa   :  { %v3314_v14 = vsel %vm1628_vm6, %v3313_v62, %v3312_v34 }
 0x7ab   :  { %v3316_v10 = vsel %vm1632_vm7, %v3315_v25, %v3314_v14 }
 0x7ac   :  { %v3139_v49 = vpop.permute.xlu2 %3138  ;;  %v3452_v44 = vmul.f32 %v3316_v10, %v2902_v26 }
 0x7ad   :  { %v3320_v55 = vperm.slane %v3139_v49, %v6931_v46  ;;  %v3169_v32 = vpop.permute.xlu0 %3168 }
 0x7ae   :  { %v3472_v37 = vsel %vm1926_vm8, %v3452_v44, 0.0  ;;  %v3339_v8 = vperm.slane %v3169_v32, %v6933_v28 }
 0x7af   :  { %v3136_v38 = vpop.permute.xlu1 %3135 }
 0x7b0   :  { %v3318_v45 = vperm.slane %v3136_v38, %v6926_v7 }
 0x7b2   :  { %v3319_v17 = vsel %vm1608_vm1, %v3318_v45, %v3317_v23 }
 0x7b3   :  { %v3321_v22 = vsel %vm1612_vm2, %v3320_v55, %v3319_v17 }
 0x7b4   :  { %v3148_v50 = vpop.permute.xlu2 %3147  ;;  %v3323_v43 = vsel %vm1616_vm3, %v3322_v29, %v3321_v22 }
 0x7b5   :  { %v3326_v24 = vperm.slane %v3148_v50, %v6937_v57  ;;  %v3178_v38 = vpop.permute.xlu0 %3177  ;;  %v2904_v50 = vld [vmem:[%s6689_s3 + $0x38] sm:$0xff] }
 0x7b6   :  { %v3345_v59 = vperm.slane %v3178_v38, %v6942_v53 }
 0x7b7   :  { %v3145_v20 = vpop.permute.xlu1 %3144  ;;  %3464 = vadd.xlane.f32.xlu1 %v3463_v51 }
 0x7b8   :  { %v3324_v48 = vperm.slane %v3145_v20, %v6933_v28 }
 0x7ba   :  { %v3325_v15 = vsel %vm1620_vm4, %v3324_v48, %v3323_v43 }
 0x7bb   :  { %v3327_v58 = vsel %vm1624_vm5, %v3326_v24, %v3325_v15  ;;  %v4097_v15 = vld [vmem:[%s6687_s4] sm:$0x7] }
 0x7bc   :  { %v3157_v11 = vpop.permute.xlu2 %3156  ;;  %v3329_v63 = vsel %vm1628_vm6, %v3328_v9, %v3327_v58 }
 0x7bd   :  { %v3332_v42 = vperm.slane %v3157_v11, %v6927_v31  ;;  %v3187_v45 = vpop.permute.xlu0 %3186 }
 0x7be   :  { %v3350_v55 = vperm.slane %v3187_v45, %v6931_v46  ;;  %v4103_v45 = vld [vmem:[%s6687_s4 + $0x20] sm:$0x7] }
 0x7bf   :  { %v3154_v12 = vpop.permute.xlu1 %3153  ;;  %3473 = vadd.xlane.f32.xlu1 %v3472_v37  ;;  %v3334_v47 = vsel %vm1608_vm1, %v3333_v61, %v3332_v42 }
 0x7c0   :  { %v3330_v60 = vperm.slane %v3154_v12, %v6942_v53 }
 0x7c2   :  { %v3331_v36 = vsel %vm1632_vm7, %v3330_v60, %v3329_v63 }
 0x7c3   :  { %3458 = vadd.xlane.f32.xlu2 %v3457_v33  ;;  %v3453_v21 = vmul.f32 %v3331_v36, %v2903_v52 }
 0x7c4   :  { %v3166_v6 = vpop.permute.xlu2 %3165 }
 0x7c5   :  { %v3337_v2 = vperm.slane %v3166_v6, %v6932_v16  ;;  %v3475_v14 = vsel %vm1926_vm8, %v3453_v21, 0.0  ;;  %v3196_v12 = vpop.permute.xlu0 %3195  ;;  %v3487_v6 = vperm.slane %v4097_v15, 2 }
 0x7c6   :  { %v3356_v33 = vperm.slane %v3196_v12, %v6937_v57 }
 0x7c7   :  { %v3163_v1 = vpop.permute.xlu1 %3162 }
 0x7c8   :  { %v3335_v3 = vperm.slane %v3163_v1, %v6931_v46 }
 0x7ca   :  { %v3336_v27 = vsel %vm1612_vm2, %v3335_v3, %v3334_v47 }
 0x7cb   :  { %3467 = vadd.xlane.f32.xlu2 %v3466_v39  ;;  %v3338_v41 = vsel %vm1616_vm3, %v3337_v2, %v3336_v27  ;;  %v4098_v39 = vld [vmem:[%s6687_s4 + $0x1c] sm:$0x7] }
 0x7cc   :  { %v3175_v49 = vpop.permute.xlu2 %3174  ;;  %v3340_v40 = vsel %vm1620_vm4, %v3339_v8, %v3338_v41  ;;  %v3536_v63 = vperm.slane %v4098_v39, 2 }
 0x7cd   :  { %v3343_v62 = vperm.slane %v3175_v49, %v6938_v35  ;;  %v3205_v60 = vpop.permute.xlu0 %3204 }
 0x7ce   :  { %v3362_v27 = vperm.slane %v3205_v60, %v6927_v31 }
 0x7cf   :  { %v3172_v4 = vpop.permute.xlu1 %3171 }
 0x7d0   :  { %v3341_v56 = vperm.slane %v3172_v4, %v6937_v57 }
 0x7d2   :  { %v3342_v34 = vsel %vm1624_vm5, %v3341_v56, %v3340_v40 }
 0x7d3   :  { %3476 = vadd.xlane.f32.xlu2 %v3475_v14  ;;  %v3344_v25 = vsel %vm1628_vm6, %v3343_v62, %v3342_v34 }
 0x7d4   :  { %v3184_v51 = vpop.permute.xlu2 %3183  ;;  %v3346_v0 = vsel %vm1632_vm7, %v3345_v59, %v3344_v25 }
 0x7d5   :  { %v3454_v20 = vmul.f32 %v3346_v0, %v2904_v50  ;;  %v3348_v30 = vperm.slane %v3184_v51, %v6926_v7  ;;  %v3214_v52 = vpop.permute.xlu0 %3213  ;;  %v4101_v0 = vld [vmem:[%s6687_s4 + $0x14] sm:$0x7] }
 0x7d6   :  { %v3367_v21 = vperm.slane %v3214_v52, %v6932_v16 }
 0x7d7   :  { %v3181_v26 = vpop.permute.xlu1 %3180  ;;  %v3478_v10 = vsel %vm1926_vm8, %v3454_v20, 0.0  ;;  %v3522_v20 = vperm.slane %v4101_v0, 2 }
 0x7d8   :  { %3479 = vadd.xlane.f32.xlu0 %v3478_v10  ;;  %v3347_v44 = vperm.slane %v3181_v26, %v6927_v31  ;;  %v4102_v26 = vld [vmem:[%s6687_s4 + $0x8] sm:$0x7] }
 0x7d9   :  { %v3501_v10 = vperm.slane %v4102_v26, 2 }
 0x7da   :  { %v3349_v11 = vsel %vm1608_vm1, %v3348_v30, %v3347_v44  ;;  %v3543_v44 = vperm.slane %v4103_v45, 2 }
 0x7db   :  { %v3351_v18 = vsel %vm1612_vm2, %v3350_v55, %v3349_v11  ;;  %v4105_v11 = vld [vmem:[%s6687_s4 + $0x18] sm:$0x7]  ;;  %v4106_v55 = vld [vmem:[%s6687_s4 + $0x24] sm:$0x7] }
 0x7dc   :  { %v3193_v23 = vpop.permute.xlu2 %3192 }
 0x7dd   :  { %v3354_v22 = vperm.slane %v3193_v23, %v6933_v28  ;;  %v3223_v56 = vpop.permute.xlu0 %3222  ;;  %v4104_v23 = vld [vmem:[%s6687_s4 + $0x10] sm:$0x7] }
 0x7de   :  { %v3515_v30 = vperm.slane %v4104_v23, 2 }
 0x7df   :  { %v3190_v17 = vpop.permute.xlu1 %3189 }
 0x7e0   :  { %v3352_v37 = vperm.slane %v3190_v17, %v6932_v16  ;;  %v2906_v16 = vld [vmem:[%s6689_s3 + $0x48] sm:$0xff]  ;;  %v3529_v17 = vperm.slane %v4105_v11, 2 }
 0x7e2   :  { %v3353_v5 = vsel %vm1616_vm3, %v3352_v37, %v3351_v18  ;;  %v3550_v37 = vperm.slane %v4106_v55, 2 }
 0x7e3   :  { %v3355_v29 = vsel %vm1620_vm4, %v3354_v22, %v3353_v5 }
 0x7e4   :  { %v3202_v48 = vpop.permute.xlu2 %3201  ;;  %v3357_v42 = vsel %vm1624_vm5, %v3356_v33, %v3355_v29 }
 0x7e5   :  { %v3360_v24 = vperm.slane %v3202_v48, %v6942_v53  ;;  %v3462_v18 = vpop.xlane.xlu0 %3461 }
 0x7e7   :  { %v3199_v43 = vpop.permute.xlu1 %3198 }
 0x7e8   :  { %v3358_v19 = vperm.slane %v3199_v43, %v6938_v35 }
 0x7ea   :  { %v3359_v32 = vsel %vm1628_vm6, %v3358_v19, %v3357_v42 }
 0x7eb   :  { %v3361_v58 = vsel %vm1632_vm7, %v3360_v24, %v3359_v32 }
 0x7ec   :  { %3492 = vperm.xlu0 %4041, %v3487_v6   ;;  %v3455_v1 = vmul.f32 %v3361_v58, %v2905_v13  ;;  %v3211_v61 = vpop.permute.xlu2 %3210 }
 0x7ed   :  { %v3365_v2 = vperm.slane %v3211_v61, %v6931_v46  ;;  %v3373_v46 = vperm.slane %v3223_v56, %v6938_v35  ;;  %v4100_v35 = vld [vmem:[%s6687_s4 + $0xc] sm:$0x7] }
 0x7ee   :  { %v3481_v9 = vsel %vm1926_vm8, %v3455_v1, 0.0 }
 0x7ef   :  { %v3208_v3 = vpop.permute.xlu1 %3207  ;;  %3482 = vadd.xlane.f32.xlu1 %v3481_v9 }
 0x7f0   :  { %v3363_v47 = vperm.slane %v3208_v3, %v6926_v7 }
 0x7f2   :  { %v3364_v36 = vsel %vm1608_vm1, %v3363_v47, %v3362_v27 }
 0x7f3   :  { %v3366_v49 = vsel %vm1612_vm2, %v3365_v2, %v3364_v36 }
 0x7f4   :  { %3541 = vperm.xlu0 %4041, %v3536_v63   ;;  %v3220_v8 = vpop.permute.xlu2 %3219  ;;  %v3368_v38 = vsel %vm1616_vm3, %v3367_v21, %v3366_v49 }
 0x7f5   :  { %v3371_v62 = vperm.slane %v3220_v8, %v6937_v57  ;;  %v4099_v57 = vld [vmem:[%s6687_s4 + $0x4] sm:$0x7] }
 0x7f6   :  { %v3494_v25 = vperm.slane %v4099_v57, 2 }
 0x7f7   :  { %v3217_v41 = vpop.permute.xlu1 %3216 }
 0x7f8   :  { %v3369_v7 = vperm.slane %v3217_v41, %v6933_v28 }
 0x7fa   :  { %v3370_v4 = vsel %vm1620_vm4, %v3369_v7, %v3368_v38 }
 0x7fb   :  { %v3372_v40 = vsel %vm1624_vm5, %v3371_v62, %v3370_v4 }
 0x7fc   :  { %4044 = vset.pattern.permute.xlu0 %v6770_v54  ;;  %v3374_v28 = vsel %vm1628_vm6, %v3373_v46, %v3372_v40 }
 0x7ff   :  { %v3226_v59 = vpop.permute.xlu1 %3225 }
 0x800   :  { %v3375_v34 = vperm.slane %v3226_v59, %v6942_v53  ;;  %v3508_v53 = vperm.slane %v4100_v35, 2 }
 0x802   :  { %v3376_v14 = vsel %vm1632_vm7, %v3375_v34, %v3374_v28 }
 0x803   :  { %v3456_v50 = vmul.f32 %v3376_v14, %v2906_v16 }
 0x805   :  { %v3484_v51 = vsel %vm1926_vm8, %v3456_v50, 0.0 }
 0x806   :  { %3485 = vadd.xlane.f32.xlu2 %v3484_v51 }
 0x808   :  { %3499 = vperm.xlu1 %4042, %v3494_v25  }
 0x80b   :  { %v3471_v5 = vpop.xlane.xlu0 %3470 }
 0x810   :  { %3513 = vperm.xlu1 %4042, %v3508_v53  }
 0x818   :  { %3527 = vperm.xlu1 %4042, %v3522_v20  }
 0x81e   :  { %3506 = vperm.xlu2 %4043, %v3501_v10  }
 0x820   :  { %3548 = vperm.xlu1 %4042, %v3543_v44  }
 0x826   :  { %3520 = vperm.xlu2 %4043, %v3515_v30  }
 0x828   :  { %4045 = vset.pattern.permute.xlu1 %v6770_v54 }
 0x82a   :  { %v3465_v33 = vpop.xlane.xlu1 %3464 }
 0x82e   :  { %3534 = vperm.xlu2 %4043, %v3529_v17  }
 0x832   :  { %v3474_v24 = vpop.xlane.xlu1 %3473 }
 0x836   :  { %3555 = vperm.xlu2 %4043, %v3550_v37   ;;  %v3459_v22 = vpop.xlane.xlu2 %3458 }
 0x83e   :  { %4046 = vset.pattern.permute.xlu2 %v6770_v54  ;;  %v3468_v6 = vpop.xlane.xlu2 %3467 }
 0x846   :  { %v6535_v54 = vpop.xlane.xlu2 %3476 }
 0x84b   :  { %v3480_v12 = vpop.xlane.xlu0 %3479 }
 0x85e   :  { %v3493_v48 = vpop.permute.xlu0 %3492 }
 0x85f   :  { %v6532_v29 = vadd.f32 %v3493_v48, %v3459_v22 }
 0x861   :  { %v3610_v43 = vand.u32 2147483647, %v6532_v29  ;;  %v3580_v63 = vmax.f32 %v6532_v29, 0.0  ;;  %vm3590_vm10 = vcmp.ne.f32.partialorder %v6532_v29, %v6532_v29 }
 0x862   :  { %v6537_v58 = vpop.xlane.xlu1 %3482 }
 0x863   :  { %v3620_v19 = vsub.f32 0.0, %v3610_v43 }
 0x865   :  { %v3630_v15 = vmul.f32 1.442695, %v3620_v19 }
 0x866   :  { %v3542_v1 = vpop.permute.xlu0 %3541 }
 0x867   :  { %4047 = vpow2.f32 %v3630_v15  ;;  %v6539_v3 = vadd.f32 %v3542_v1, %v3480_v12 }
 0x869   :  { %v3617_v49 = vand.u32 2147483647, %v6539_v3 }
 0x86b   :  { %v3627_v8 = vsub.f32 0.0, %v3617_v49 }
 0x86d   :  { %v4048_v42 = vpop.eup %4047  ;;  %v3644_v46 = vmul.f32 1.442695, %v3627_v8 }
 0x86e   :  { %v3650_v13 = vadd.f32 1.0, %v4048_v42  ;;  %v3653_v32 = vmul.f32 -0.5, %v4048_v42  ;;  %v3656_v9 = vand.u32 2147483647, %v4048_v42 }
 0x870   :  { %4049 = vlog2.f32 %v3650_v13  ;;  %v3654_v60 = vadd.f32 1.0, %v3653_v32  ;;  %vm3657_vm9 = vcmp.lt.f32.partialorder %v3656_v9, 0.0004427343 }
 0x872   :  { %v3655_v39 = vmul.f32 %v4048_v42, %v3654_v60 }
 0x876   :  { %v4050_v61 = vpop.eup %4049 }
 0x877   :  { %v3652_v47 = vmul.f32 0.6931472, %v4050_v61 }
 0x879   :  { %v6542_v27 = vpop.xlane.xlu2 %3485  ;;  %v3658_v52 = vsel %vm3657_vm9, %v3655_v39, %v3652_v47  ;;  %vm3597_vm9 = vcmp.ne.f32.partialorder %v6539_v3, %v6539_v3 }
 0x87a   :  { %v3500_v36 = vpop.permute.xlu1 %3499  ;;  %v3740_v2 = vadd.f32 %v3658_v52, %v3580_v63 }
 0x87b   :  { %v6545_v41 = vadd.f32 %v3500_v36, %v3462_v18 }
 0x87c   :  { %v3750_v21 = vsel %vm3590_vm10, %v6532_v29, %v3740_v2 }
 0x87d   :  { %v3611_v7 = vand.u32 2147483647, %v6545_v41  ;;  %3771 = vperm.xlu0 %4044, %v3750_v21   ;;  %v3581_v48 = vmax.f32 %v6545_v41, 0.0  ;;  %vm3591_vm12 = vcmp.ne.f32.partialorder %v6545_v41, %v6545_v41 }
 0x87f   :  { %v3621_v38 = vsub.f32 0.0, %v3611_v7 }
 0x881   :  { %v3632_v4 = vmul.f32 1.442695, %v3621_v38  ;;  %v3507_v56 = vpop.permute.xlu2 %3506 }
 0x882   :  { %v6551_v62 = vadd.f32 %v3507_v56, %v3465_v33  ;;  %v3514_v40 = vpop.permute.xlu1 %3513 }
 0x883   :  { %4051 = vpow2.f32 %v3632_v4  ;;  %v6553_v59 = vadd.f32 %v3514_v40, %v3468_v6 }
 0x884   :  { %v3612_v34 = vand.u32 2147483647, %v6551_v62  ;;  %4053 = vpow2.f32 %v3644_v46  ;;  %v3582_v56 = vmax.f32 %v6551_v62, 0.0  ;;  %vm3592_vm15 = vcmp.ne.f32.partialorder %v6551_v62, %v6551_v62 }
 0x885   :  { %v3613_v16 = vand.u32 2147483647, %v6553_v59  ;;  %vm3593_vm0 = vcmp.ne.f32.partialorder %v6553_v59, %v6553_v59 }
 0x886   :  { %v3622_v28 = vsub.f32 0.0, %v3612_v34 }
 0x887   :  { %v3623_v14 = vsub.f32 0.0, %v3613_v16 }
 0x888   :  { %v3634_v50 = vmul.f32 1.442695, %v3622_v28 }
 0x889   :  { %v4052_v57 = vpop.eup %4051  ;;  %v3636_v25 = vmul.f32 1.442695, %v3623_v14  ;;  %v3521_v51 = vpop.permute.xlu2 %3520 }
 0x88a   :  { %4055 = vpow2.f32 %v3634_v50  ;;  %v6557_v35 = vadd.f32 %v3521_v51, %v3471_v5  ;;  %v3528_v53 = vpop.permute.xlu1 %3527  ;;  %v3659_v0 = vadd.f32 1.0, %v4052_v57  ;;  %v3662_v20 = vmul.f32 -0.5, %v4052_v57  ;;  %v6562_v45 = vpop.eup %4053 }
 0x88b   :  { %4057 = vpow2.f32 %v3636_v25  ;;  %v6559_v26 = vadd.f32 %v3528_v53, %v3474_v24  ;;  %v3665_v37 = vand.u32 2147483647, %v4052_v57  ;;  %v3713_v18 = vadd.f32 1.0, %v6562_v45 }
 0x88c   :  { %v3614_v10 = vand.u32 2147483647, %v6557_v35  ;;  %4059 = vlog2.f32 %v3659_v0  ;;  %v3663_v23 = vadd.f32 1.0, %v3662_v20  ;;  %v3716_v36 = vmul.f32 -0.5, %v6562_v45 }
 0x88d   :  { %v3615_v44 = vand.u32 2147483647, %v6559_v26  ;;  %vm3666_vm11 = vcmp.lt.f32.partialorder %v3665_v37, 0.0004427343  ;;  %vm3594_vm3 = vcmp.ne.f32.partialorder %v6557_v35, %v6557_v35  ;;  %vm3595_vm4 = vcmp.ne.f32.partialorder %v6559_v26, %v6559_v26 }
 0x88e   :  { %v3624_v30 = vsub.f32 0.0, %v3614_v10  ;;  %v3664_v33 = vmul.f32 %v4052_v57, %v3663_v23 }
 0x88f   :  { %v3625_v11 = vsub.f32 0.0, %v3615_v44  ;;  %v3583_v44 = vmax.f32 %v6553_v59, 0.0 }
 0x890   :  { %v4056_v17 = vpop.eup %4055  ;;  %v3638_v55 = vmul.f32 1.442695, %v3624_v30 }
 0x891   :  { %v4058_v5 = vpop.eup %4057  ;;  %v3640_v12 = vmul.f32 1.442695, %v3625_v11  ;;  %v3535_v22 = vpop.permute.xlu2 %3534  ;;  %v3668_v43 = vadd.f32 1.0, %v4056_v17  ;;  %v3671_v24 = vmul.f32 -0.5, %v4056_v17  ;;  %v3674_v9 = vand.u32 2147483647, %v4056_v17 }
 0x892   :  { %v4060_v19 = vpop.eup %4059  ;;  %4061 = vpow2.f32 %v3638_v55  ;;  %v6568_v15 = vadd.f32 %v3535_v22, %v6535_v54  ;;  %v3549_v6 = vpop.permute.xlu1 %3548  ;;  %v3677_v42 = vadd.f32 1.0, %v4058_v5  ;;  %v3680_v60 = vmul.f32 -0.5, %v4058_v5 }
 0x893   :  { %4063 = vpow2.f32 %v3640_v12  ;;  %v6571_v13 = vadd.f32 %v3549_v6, %v6537_v58  ;;  %v3661_v32 = vmul.f32 0.6931472, %v4060_v19  ;;  %v3672_v63 = vadd.f32 1.0, %v3671_v24 }
 0x894   :  { %v3616_v1 = vand.u32 2147483647, %v6568_v15  ;;  %4065 = vlog2.f32 %v3668_v43  ;;  %v3681_v58 = vadd.f32 1.0, %v3680_v60  ;;  %vm6579_vm13 = vcmp.lt.f32.partialorder %v3674_v9, 0.0004427343 }
 0x895   :  { %v3618_v61 = vand.u32 2147483647, %v6571_v13  ;;  %v3667_v47 = vsel %vm3666_vm11, %v3664_v33, %v3661_v32  ;;  %4067 = vlog2.f32 %v3677_v42  ;;  %v3683_v40 = vand.u32 2147483647, %v4058_v5 }
 0x896   :  { %v3626_v54 = vsub.f32 0.0, %v3616_v1  ;;  %v3741_v39 = vadd.f32 %v3667_v47, %v3581_v48  ;;  %4069 = vlog2.f32 %v3713_v18  ;;  %v3673_v28 = vmul.f32 %v4056_v17, %v3672_v63 }
 0x897   :  { %v3628_v52 = vsub.f32 0.0, %v3618_v61  ;;  %v3682_v25 = vmul.f32 %v4058_v5, %v3681_v58  ;;  %vm3684_vm14 = vcmp.lt.f32.partialorder %v3683_v40, 0.0004427343  ;;  %v3719_v17 = vand.u32 2147483647, %v6562_v45 }
 0x898   :  { %v4062_v2 = vpop.eup %4061  ;;  %v3642_v49 = vmul.f32 1.442695, %v3626_v54  ;;  %v3751_v21 = vsel %vm3591_vm12, %v6545_v41, %v3741_v39  ;;  %v3717_v6 = vadd.f32 1.0, %v3716_v36  ;;  %v3584_v32 = vmax.f32 %v6557_v35, 0.0 }
 0x899   :  { %v4064_v8 = vpop.eup %4063  ;;  %v3646_v38 = vmul.f32 1.442695, %v3628_v52  ;;  %3774 = vperm.xlu1 %4045, %v3751_v21   ;;  %v3556_v4 = vpop.permute.xlu2 %3555  ;;  %v3686_v46 = vadd.f32 1.0, %v4062_v2  ;;  %v3689_v51 = vmul.f32 -0.5, %v4062_v2  ;;  %v3692_v22 = vand.u32 2147483647, %v4062_v2 }
 0x89a   :  { %v4066_v34 = vpop.eup %4065  ;;  %4071 = vpow2.f32 %v3642_v49  ;;  %v6585_v16 = vadd.f32 %v3556_v4, %v6542_v27  ;;  %v3695_v14 = vadd.f32 1.0, %v4064_v8  ;;  %v3698_v20 = vmul.f32 -0.5, %v4064_v8 }
 0x89b   :  { %v4068_v50 = vpop.eup %4067  ;;  %4073 = vpow2.f32 %v3646_v38  ;;  %v3670_v57 = vmul.f32 0.6931472, %v4066_v34  ;;  %v3690_v37 = vadd.f32 1.0, %v3689_v51  ;;  %v3701_v19 = vand.u32 2147483647, %v4064_v8 }
 0x89c   :  { %v3619_v53 = vand.u32 2147483647, %v6585_v16  ;;  %v3679_v0 = vmul.f32 0.6931472, %v4068_v50  ;;  %4075 = vlog2.f32 %v3686_v46  ;;  %v4070_v27 = vpop.eup %4069  ;;  %v3699_v48 = vadd.f32 1.0, %v3698_v20 }
 0x89d   :  { %v3676_v10 = vsel %vm6579_vm13, %v3673_v28, %v3670_v57  ;;  %4077 = vlog2.f32 %v3695_v14  ;;  %v3691_v47 = vmul.f32 %v4062_v2, %v3690_v37  ;;  %vm3693_vm1 = vcmp.lt.f32.partialorder %v3692_v22, 0.0004427343 }
 0x89e   :  { %v3629_v23 = vsub.f32 0.0, %v3619_v53  ;;  %v3742_v30 = vadd.f32 %v3676_v10, %v3582_v56  ;;  %v3685_v11 = vsel %vm3684_vm14, %v3682_v25, %v3679_v0  ;;  %v3700_v63 = vmul.f32 %v4064_v8, %v3699_v48 }
 0x89f   :  { %v3743_v55 = vadd.f32 %v3685_v11, %v3583_v44  ;;  %v3585_v58 = vmax.f32 %v6559_v26, 0.0  ;;  %vm3702_vm2 = vcmp.lt.f32.partialorder %v3701_v19, 0.0004427343  ;;  %v3715_v36 = vmul.f32 0.6931472, %v4070_v27 }
 0x8a0   :  { %v4072_v18 = vpop.eup %4071  ;;  %v3648_v5 = vmul.f32 1.442695, %v3629_v23  ;;  %v3752_v12 = vsel %vm3592_vm15, %v6551_v62, %v3742_v30  ;;  %v3718_v7 = vmul.f32 %v6562_v45, %v3717_v6  ;;  %vm6606_vm5 = vcmp.lt.f32.partialorder %v3719_v17, 0.0004427343 }
 0x8a1   :  { %v4074_v33 = vpop.eup %4073  ;;  %3777 = vperm.xlu2 %4046, %v3752_v12   ;;  %v3753_v43 = vsel %vm3593_vm0, %v6553_v59, %v3743_v55  ;;  %v3704_v24 = vadd.f32 1.0, %v4072_v18  ;;  %v3707_v60 = vmul.f32 -0.5, %v4072_v18  ;;  %v3710_v4 = vand.u32 2147483647, %v4072_v18 }
 0x8a2   :  { %v4076_v42 = vpop.eup %4075  ;;  %4079 = vpow2.f32 %v3648_v5  ;;  %3780 = vperm.xlu1 %4045, %v3753_v43   ;;  %v3722_v1 = vadd.f32 1.0, %v4074_v33  ;;  %v3725_v54 = vmul.f32 -0.5, %v4074_v33  ;;  %v3728_v34 = vand.u32 2147483647, %v4074_v33 }
 0x8a3   :  { %v4078_v9 = vpop.eup %4077  ;;  %v3688_v61 = vmul.f32 0.6931472, %v4076_v42  ;;  %4081 = vlog2.f32 %v3704_v24  ;;  %v3708_v38 = vadd.f32 1.0, %v3707_v60  ;;  %v3587_v14 = vmax.f32 %v6539_v3, 0.0 }
 0x8a4   :  { %v3697_v39 = vmul.f32 0.6931472, %v4078_v9  ;;  %4083 = vlog2.f32 %v3722_v1  ;;  %v3726_v56 = vadd.f32 1.0, %v3725_v54  ;;  %v3721_v50 = vsel %vm6606_vm5, %v3718_v7, %v3715_v36 }
 0x8a5   :  { %v3694_v52 = vsel %vm3693_vm1, %v3691_v47, %v3688_v61  ;;  %v3586_v51 = vmax.f32 %v6568_v15, 0.0  ;;  %v3709_v0 = vmul.f32 %v4072_v18, %v3708_v38  ;;  %vm3711_vm6 = vcmp.lt.f32.partialorder %v3710_v4, 0.0004427343 }
 0x8a6   :  { %v3744_v49 = vadd.f32 %v3694_v52, %v3584_v32  ;;  %v3703_v21 = vsel %vm3702_vm2, %v3700_v63, %v3697_v39  ;;  %v3727_v44 = vmul.f32 %v4074_v33, %v3726_v56  ;;  %v3747_v27 = vadd.f32 %v3721_v50, %v3587_v14 }
 0x8a7   :  { %v3745_v2 = vadd.f32 %v3703_v21, %v3585_v58  ;;  %v3588_v30 = vmax.f32 %v6571_v13, 0.0  ;;  %vm3729_vm7 = vcmp.lt.f32.partialorder %v3728_v34, 0.0004427343  ;;  %vm3596_vm8 = vcmp.ne.f32.partialorder %v6568_v15, %v6568_v15 }
 0x8a8   :  { %v4080_v40 = vpop.eup %4079  ;;  %v3754_v8 = vsel %vm3594_vm3, %v6557_v35, %v3744_v49  ;;  %vm3598_vm10 = vcmp.ne.f32.partialorder %v6571_v13, %v6571_v13  ;;  %v3757_v12 = vsel %vm3597_vm9, %v6539_v3, %v3747_v27  ;;  %v3589_v19 = vmax.f32 %v6585_v16, 0.0 }
 0x8a9   :  { %v4082_v28 = vpop.eup %4081  ;;  %3783 = vperm.xlu2 %4046, %v3754_v8   ;;  %v3755_v45 = vsel %vm3595_vm4, %v6559_v26, %v3745_v2  ;;  %v3731_v57 = vadd.f32 1.0, %v4080_v40  ;;  %v3734_v20 = vmul.f32 -0.5, %v4080_v40  ;;  %v3737_v5 = vand.u32 2147483647, %v4080_v40 }
 0x8aa   :  { %v4084_v25 = vpop.eup %4083  ;;  %3786 = vperm.xlu0 %4044, %v3755_v45   ;;  %v3706_v53 = vmul.f32 0.6931472, %v4082_v28  ;;  %vm3599_vm12 = vcmp.ne.f32.partialorder %v6585_v16, %v6585_v16  ;;  %vm1769_vm13 = vcmask 1041409   ;;  %vm1770_vm14 = vcmask 1042434  }
 0x8ab   :  { %v3724_v10 = vmul.f32 0.6931472, %v4084_v25  ;;  %4085 = vlog2.f32 %v3731_v57  ;;  %v3735_v37 = vadd.f32 1.0, %v3734_v20  ;;  %vm3738_vm11 = vcmp.lt.f32.partialorder %v3737_v5, 0.0004427343 }
 0x8ac   :  { %v3712_v23 = vsel %vm3711_vm6, %v3709_v0, %v3706_v53  ;;  %vm1772_vm15 = vcmask 1043459   ;;  %vm1774_vm0 = vcmask 1044484   ;;  %vm1776_vm1 = vcmask 1045509  }
 0x8ad   :  { %v3746_v11 = vadd.f32 %v3712_v23, %v3586_v51  ;;  %v3730_v17 = vsel %vm3729_vm7, %v3727_v44, %v3724_v10  ;;  %v3736_v43 = vmul.f32 %v4080_v40, %v3735_v37  ;;  %vm1778_vm2 = vcmask 1046534  }
 0x8ae   :  { %v3748_v55 = vadd.f32 %v3730_v17, %v3588_v30  ;;  %vm3577_vm3 = vcmp.ge.s32.totalorder %v6927_v31, 2  ;;  %vm3578_vm4 = vcmp.lt.s32.totalorder %v6927_v31, 4  ;;  %vm1780_vm5 = vcmask 1047559  }
 0x8af   :  { %v3756_v18 = vsel %vm3596_vm8, %v6568_v15, %v3746_v11  ;;  %vm6663_vm6 = vmand %vm3577_vm3, %vm3578_vm4  ;;  %vm3882_vm7 = vcmask 64512   ;;  %vm3884_vm8 = vcmask 58368  }
 0x8b0   :  { %3789 = vperm.xlu1 %4045, %v3756_v18   ;;  %v3758_v22 = vsel %vm3598_vm10, %v6571_v13, %v3748_v55 }
 0x8b1   :  { %v4086_v48 = vpop.eup %4085  ;;  %3792 = vperm.xlu2 %4046, %v3757_v12  }
 0x8b2   :  { %3795 = vperm.xlu0 %4044, %v3758_v22   ;;  %v3733_v33 = vmul.f32 0.6931472, %v4086_v48 }
 0x8b4   :  { %v3739_v6 = vsel %vm3738_vm11, %v3736_v43, %v3733_v33 }
 0x8b5   :  { %v3749_v24 = vadd.f32 %v3739_v6, %v3589_v19 }
 0x8b7   :  { %v3759_v42 = vsel %vm3599_vm12, %v6585_v16, %v3749_v24 }
 0x8b8   :  { %3798 = vperm.xlu1 %4045, %v3759_v42  }
 0x8b9   :  { %3831 = vperm.xlu2 %4046, %v6532_v29  }
 0x8ba   :  { %3834 = vperm.xlu0 %4044, %v6545_v41  }
 0x8c0   :  { %3837 = vperm.xlu1 %4045, %v6551_v62  }
 0x8c1   :  { %3840 = vperm.xlu2 %4046, %v6553_v59  }
 0x8c2   :  { %3843 = vperm.xlu0 %4044, %v6557_v35  }
 0x8c8   :  { %3846 = vperm.xlu1 %4045, %v6559_v26  }
 0x8c9   :  { %3849 = vperm.xlu2 %4046, %v6568_v15  }
 0x8ca   :  { %3852 = vperm.xlu0 %4044, %v6539_v3  }
 0x8d0   :  { %3855 = vperm.xlu1 %4045, %v6571_v13  }
 0x8d1   :  { %3858 = vperm.xlu2 %4046, %v6585_v16  }
 0x8ef   :  { %v3772_v41 = vpop.permute.xlu0 %3771 }
 0x8f0   :  { %v3800_v3 = vperm.slane %v3772_v41, %v6927_v31 }
 0x8fb   :  { %v3778_v32 = vpop.permute.xlu2 %3777 }
 0x8fc   :  { %v3802_v36 = vperm.slane %v3778_v32, %v6927_v31 }
 0x903   :  { %v3784_v29 = vpop.permute.xlu2 %3783 }
 0x904   :  { %v3804_v8 = vperm.slane %v3784_v29, %v6927_v31 }
 0x90b   :  { %v3775_v60 = vpop.permute.xlu1 %3774  ;;  %v3793_v1 = vpop.permute.xlu2 %3792 }
 0x90c   :  { %v3801_v15 = vperm.slane %v3775_v60, %v6927_v31  ;;  %v3807_v20 = vperm.slane %v3793_v1, %v6927_v31 }
 0x90e   :  { %v3810_v39 = vsel %vm1769_vm13, %v3801_v15, %v3800_v3 }
 0x90f   :  { %v3811_v7 = vsel %vm1770_vm14, %v3802_v36, %v3810_v39 }
 0x913   :  { %v3832_v59 = vpop.permute.xlu2 %3831 }
 0x914   :  { %v3781_v62 = vpop.permute.xlu1 %3780  ;;  %v3860_v63 = vperm.slane %v3832_v59, %v6927_v31 }
 0x915   :  { %v3803_v52 = vperm.slane %v3781_v62, %v6927_v31 }
 0x917   :  { %v3812_v4 = vsel %vm1772_vm15, %v3803_v52, %v3811_v7 }
 0x918   :  { %v3813_v45 = vsel %vm1774_vm0, %v3804_v8, %v3812_v4 }
 0x91b   :  { %v3841_v26 = vpop.permute.xlu2 %3840 }
 0x91c   :  { %v3787_v9 = vpop.permute.xlu0 %3786  ;;  %v3863_v56 = vperm.slane %v3841_v26, %v6927_v31 }
 0x91d   :  { %v3805_v40 = vperm.slane %v3787_v9, %v6927_v31 }
 0x91f   :  { %v3814_v50 = vsel %vm1776_vm1, %v3805_v40, %v3813_v45 }
 0x922   :  { %v3790_v61 = vpop.permute.xlu1 %3789 }
 0x923   :  { %v3850_v38 = vpop.permute.xlu2 %3849  ;;  %v3806_v46 = vperm.slane %v3790_v61, %v6927_v31 }
 0x924   :  { %v3796_v35 = vpop.permute.xlu0 %3795  ;;  %v3866_v51 = vperm.slane %v3850_v38, %v6927_v31 }
 0x925   :  { %v3815_v25 = vsel %vm1778_vm2, %v3806_v46, %v3814_v50  ;;  %v3808_v5 = vperm.slane %v3796_v35, %v6927_v31 }
 0x926   :  { %v3816_v30 = vsel %vm1780_vm5, %v3807_v20, %v3815_v25 }
 0x92a   :  { %v3799_v47 = vpop.permute.xlu1 %3798 }
 0x92b   :  { %v3859_v17 = vpop.permute.xlu2 %3858  ;;  %v3809_v37 = vperm.slane %v3799_v47, %v6927_v31 }
 0x92c   :  { %v3835_v54 = vpop.permute.xlu0 %3834  ;;  %v3869_v12 = vperm.slane %v3859_v17, %v6927_v31 }
 0x92d   :  { %v3861_v13 = vperm.slane %v3835_v54, %v6927_v31  ;;  %v3817_v48 = vsel %vm1769_vm13, %v3809_v37, %v3808_v5 }
 0x92f   :  { %v3870_v21 = vsel %vm1769_vm13, %v3861_v13, %v3860_v63 }
 0x932   :  { %v3838_v16 = vpop.permute.xlu1 %3837 }
 0x933   :  { %v3862_v58 = vperm.slane %v3838_v16, %v6927_v31 }
 0x934   :  { %v3844_v49 = vpop.permute.xlu0 %3843 }
 0x935   :  { %v3871_v2 = vsel %vm1770_vm14, %v3862_v58, %v3870_v21  ;;  %v3864_v34 = vperm.slane %v3844_v49, %v6927_v31 }
 0x936   :  { %v3872_v28 = vsel %vm1772_vm15, %v3863_v56, %v3871_v2 }
 0x937   :  { %v3873_v53 = vsel %vm1774_vm0, %v3864_v34, %v3872_v28 }
 0x93a   :  { %v3847_v14 = vpop.permute.xlu1 %3846 }
 0x93b   :  { %v3865_v57 = vperm.slane %v3847_v14, %v6927_v31 }
 0x93c   :  { %v3853_v0 = vpop.permute.xlu0 %3852 }
 0x93d   :  { %v3874_v10 = vsel %vm1776_vm1, %v3865_v57, %v3873_v53  ;;  %v3867_v27 = vperm.slane %v3853_v0, %v6927_v31 }
 0x93e   :  { %v3875_v23 = vsel %vm1778_vm2, %v3866_v51, %v3874_v10 }
 0x93f   :  { %v3876_v11 = vsel %vm1780_vm5, %v3867_v27, %v3875_v23 }
 0x940   :  { %v3880_v55 = vsel %vm6663_vm6, %v3816_v30, %v3876_v11 }
 0x941   :  { %3883 = vst.msk [vmem:[%s6690_s5] sm:$0xff] %vm3882_vm7, %v3880_v55 }
 0x942   :  { %v3856_v18 = vpop.permute.xlu1 %3855 }
 0x943   :  { %v3868_v22 = vperm.slane %v3856_v18, %v6927_v31 }
 0x945   :  { %v3877_v33 = vsel %vm1769_vm13, %v3869_v12, %v3868_v22 }
 0x946   :  { %v3881_v43 = vsel %vm6663_vm6, %v3817_v48, %v3877_v33 }
 0x947   :  { %3885 = vst.msk [vmem:[%s6690_s5 + $0x8] sm:$0x3] %vm3884_vm8, %v3881_v43 }

</bundles_post_ra>
